<compile_context>
chip_gen: v7x
topology: tpu7x:2x2x1
jax: 0.10.0
libtpu: 0.0.40
codegen_flags: <defaults>
</compile_context>

<pallas_src>
import jax
import jax.numpy as jnp
from jax import lax
from jax.experimental import pallas as pl
from jax.experimental.pallas import tpu as pltpu

VOCAB = 128       # vocabulary size
EMBED = 32        # embedding dim
HIDDEN = 32       # LSTM hidden size (single layer)
DECODE_STEPS = 8  # max generated sequence length
SOS_TOKEN = 1     # start-of-sequence token fed to the decoder


# ----------------------------- fused Pallas kernel ------------------------- #

def _seq2seq_kernel(lens_ref,     # [B, 1]   int32  valid input lengths
                    tok_ref,      # [T, B, 1] int32  encoder input tokens
                    enc_tab_ref,  # [V, 4H]  bf16   enc_embed @ W_ih + b
                    enc_whh_ref,  # [H, 4H]  bf16
                    dec_tab_ref,  # [V, 4H]  bf16   dec_embed @ W_ih + b
                    dec_w_ref,    # [H, 4H+V] bf16  [dec_whh | out_w] fused
                    out_b_ref,    # [1, V]   f32
                    out_ref):     # [S, B, V] f32   log-softmax scores
    T = tok_ref.shape[0]
    B = lens_ref.shape[0]
    H = enc_whh_ref.shape[0]
    G = enc_whh_ref.shape[1]          # 4H
    V = dec_tab_ref.shape[0]
    S = out_ref.shape[0]

    # Weights / constants loaded once, resident across all steps.
    lens = lens_ref[...]                                   # [B, 1] int32
    enc_tab = enc_tab_ref[...]
    enc_whh = enc_whh_ref[...]
    dec_tab = dec_tab_ref[...]
    dec_w = dec_w_ref[...]
    out_b = jnp.broadcast_to(out_b_ref[...], (B, V))       # broadcast hoisted

    lane = lax.broadcasted_iota(jnp.int32, (B, V), 1)      # vocab index per lane

    def gates_to_hc(gates, c):
        # 2 full-width EUP pushes (sigmoid + tanh over [B,4H]) instead of 4
        # per-gate ones; gate slices come out of the XLU slot.
        sig = jax.nn.sigmoid(gates)
        th = jnp.tanh(gates)
        i = sig[:, 0 * H:1 * H]
        f = sig[:, 1 * H:2 * H]
        g = th[:, 2 * H:3 * H]
        o = sig[:, 3 * H:4 * H]
        c_new = f * c + i * g
        h_new = o * jnp.tanh(c_new)
        return h_new, c_new

    # ------------------------------ encoder ------------------------------- #
    def enc_step(t, carry):
        h, c = carry
        # embedding + input projection as one-hot @ table (off the recurrent
        # critical path: depends only on tokens).
        onehot_x = (lane == tok_ref[t]).astype(jnp.bfloat16)        # [B, V]
        gates = (jnp.dot(onehot_x, enc_tab, preferred_element_type=jnp.float32)
                 + jnp.dot(h.astype(jnp.bfloat16), enc_whh,
                           preferred_element_type=jnp.float32))
        h_new, c_new = gates_to_hc(gates, c)
        # pack_padded_sequence emulation: freeze state once t >= length (vsel)
        keep = lens > t                                              # [B, 1]
        return (jnp.where(keep, h_new, h), jnp.where(keep, c_new, c))

    h0 = jnp.zeros((B, H), jnp.float32)
    c0 = jnp.zeros((B, H), jnp.float32)
    h, c = lax.fori_loop(0, T, enc_step, (h0, c0), unroll=True)

    # ------------------------- greedy decoder ------------------------------ #
    # Prime the fused recurrent contribution with the encoder's final h
    # (the out_w half of this first product is discarded).
    hw0 = jnp.dot(h.astype(jnp.bfloat16), dec_w,
                  preferred_element_type=jnp.float32)                # [B, G+V]
    rec0 = hw0[:, :G]
    onehot0 = (lane == SOS_TOKEN).astype(jnp.bfloat16)               # one-hot(<SOS>)

    def dec_step(s, carry):
        c, onehot, rec = carry
        # one-hot @ (embed @ W_ih + b) == embed[tok] @ W_ih + b
        gates = jnp.dot(onehot, dec_tab, preferred_element_type=jnp.float32) + rec
        h_new, c_new = gates_to_hc(gates, c)

        # single fused dot: [:, :G] = next step's recurrent gate contribution,
        #                   [:, G:] = output logits for this step.
        hw = jnp.dot(h_new.astype(jnp.bfloat16), dec_w,
                     preferred_element_type=jnp.float32)             # [B, G+V]
        logits = hw[:, G:] + out_b
        mx = jnp.max(logits, axis=-1, keepdims=True)
        shifted = logits - mx
        lse = jnp.log(jnp.sum(jnp.exp(shifted), axis=-1, keepdims=True))
        out_ref[s] = shifted - lse                                   # lane-dense [B, 128]

        # argmax (first index on ties) via lane iota on `shifted` (logits dies
        # after the shift), then re-encode as a one-hot for the next lookup.
        cand = jnp.where(shifted >= 0.0, lane, V)
        tok = jnp.min(cand, axis=-1, keepdims=True)                  # [B, 1] int32
        onehot_new = (lane == tok).astype(jnp.bfloat16)
        return (c_new, onehot_new, hw[:, :G])

    lax.fori_loop(0, DECODE_STEPS, dec_step, (c, onehot0, rec0), unroll=True)


# ------------------------------ model pieces ------------------------------- #

def init_params(key):
    ks = jax.random.split(key, 10)
    s = 0.1
    return {
        "enc_embed": jax.random.normal(ks[0], (VOCAB, EMBED), jnp.float32) * s,
        "enc_wih": jax.random.normal(ks[1], (EMBED, 4 * HIDDEN), jnp.float32) * s,
        "enc_whh": jax.random.normal(ks[2], (HIDDEN, 4 * HIDDEN), jnp.float32) * s,
        "enc_b": jax.random.normal(ks[3], (1, 4 * HIDDEN), jnp.float32) * s,   # b_ih+b_hh pre-summed
        "dec_embed": jax.random.normal(ks[4], (VOCAB, EMBED), jnp.float32) * s,
        "dec_wih": jax.random.normal(ks[5], (EMBED, 4 * HIDDEN), jnp.float32) * s,
        "dec_whh": jax.random.normal(ks[6], (HIDDEN, 4 * HIDDEN), jnp.float32) * s,
        "dec_b": jax.random.normal(ks[7], (1, 4 * HIDDEN), jnp.float32) * s,   # b_ih+b_hh pre-summed
        "out_w": jax.random.normal(ks[8], (HIDDEN, VOCAB), jnp.float32) * s,
        "out_b": jax.random.normal(ks[9], (1, VOCAB), jnp.float32) * s,
    }


def _round_up(x, m):
    return -(-x // m) * m


@jax.jit
def seq2seq_forward(params, tokens, input_len):
    """Full Seq2seq.forward: returns decoder log-softmax scores [B, steps, V]."""
    B, T = tokens.shape
    B_pad = max(8, _round_up(B, 8))            # fill the f32 sublane count

    # Tiny host-side precompute (once per forward), then everything is in-kernel.
    # Embedding folded with W_ih and bias: one-hot(tok) @ *_tab reproduces
    # embed[tok] @ W_ih + b exactly.  Cast to bf16 for single-pass MXU pushes.
    enc_tab = (params["enc_embed"] @ params["enc_wih"]
               + params["enc_b"]).astype(jnp.bfloat16)               # [V, 4H]
    dec_tab = (params["dec_embed"] @ params["dec_wih"]
               + params["dec_b"]).astype(jnp.bfloat16)               # [V, 4H]
    enc_whh = params["enc_whh"].astype(jnp.bfloat16)                 # [H, 4H]
    fused_dec = jnp.concatenate([params["dec_whh"], params["out_w"]],
                                axis=1).astype(jnp.bfloat16)         # [H, 4H+V]

    toks = jnp.pad(tokens.astype(jnp.int32), ((0, B_pad - B), (0, 0)))
    toks = jnp.transpose(toks, (1, 0))[:, :, None]                   # [T, B_pad, 1]
    lens2d = jnp.pad(input_len.astype(jnp.int32), (0, B_pad - B))[:, None]

    H, V, S, G = HIDDEN, VOCAB, DECODE_STEPS, 4 * HIDDEN
    flops = (T * (2 * B_pad * V * G + 2 * B_pad * H * G)
             + S * (2 * B_pad * V * G + 2 * B_pad * H * (G + V))
             + 2 * B_pad * H * (G + V))
    transcendentals = (T + S) * B_pad * (2 * G + H) + S * B_pad * V
    bytes_accessed = (2 * (enc_tab.size + dec_tab.size + enc_whh.size + fused_dec.size)
                      + 4 * (params["out_b"].size + lens2d.size + toks.size
                             + S * B_pad * V))

    vmem = pl.BlockSpec(memory_space=pltpu.MemorySpace.VMEM)
    out = pl.pallas_call(
        _seq2seq_kernel,
        out_shape=jax.ShapeDtypeStruct((S, B_pad, V), jnp.float32),
        in_specs=[vmem] * 7,
        out_specs=vmem,
        cost_estimate=pl.CostEstimate(flops=flops,
                                      transcendentals=transcendentals,
                                      bytes_accessed=bytes_accessed),
    )(lens2d, toks, enc_tab, enc_whh, dec_tab, fused_dec, params["out_b"])

    # [steps, B_pad, V] -> [B, steps, V]
    return jnp.transpose(out[:, :B, :], (1, 0, 2))


# ---------------------------------- main ----------------------------------- #

if __name__ == "__main__":
    key = jax.random.PRNGKey(0)
    pkey, dkey = jax.random.split(key)
    params = init_params(pkey)

    B, T = 2, 8
    tokens = jax.random.randint(dkey, (B, T), 0, VOCAB, dtype=jnp.int32)
    input_len = jnp.array([8, 5], dtype=jnp.int32)

    out = seq2seq_forward(params, tokens, input_len)
    jax.block_until_ready(out)
    assert out.shape == (B, DECODE_STEPS, VOCAB)
    assert bool(jnp.all(jnp.isfinite(out)))
    # TODO(synk): Decoder.evaluate (index-only / beam variant) not reproduced; forward only.
    # TODO(synk): for batch >> 8 add a 'parallel' batch-tile grid axis (engages v7x's 2nd
    #             TensorCore) and pad the matmul M dim toward 128/256 rows per instance;
    #             at B_pad=8 a single gridless call is optimal.
    print("KERNEL_OK")
</pallas_src>

<mosaic_0001>
module attributes {stable_mosaic.version = 11 : i64} {
  func.func @_seq2seq_kernel(%arg0: memref<8x1xi32, #tpu.memory_space<vmem>>, %arg1: memref<8x8x1xi32, #tpu.memory_space<vmem>>, %arg2: memref<128x128xbf16, #tpu.memory_space<vmem>>, %arg3: memref<32x128xbf16, #tpu.memory_space<vmem>>, %arg4: memref<128x128xbf16, #tpu.memory_space<vmem>>, %arg5: memref<32x256xbf16, #tpu.memory_space<vmem>>, %arg6: memref<1x128xf32, #tpu.memory_space<vmem>>, %arg7: memref<8x8x128xf32, #tpu.memory_space<vmem>>) attributes {dimension_semantics = [], scalar_prefetch = 0 : i64, scratch_operands = 0 : i64, tpu.core_type = #tpu.core_type<tc>} {
    %c0 = arith.constant 0 : index
    %c0_0 = arith.constant 0 : index
    %0 = vector.load %arg0[%c0, %c0_0] : memref<8x1xi32, #tpu.memory_space<vmem>>, vector<8x1xi32>
    %c0_1 = arith.constant 0 : index
    %c0_2 = arith.constant 0 : index
    %1 = vector.load %arg2[%c0_1, %c0_2] : memref<128x128xbf16, #tpu.memory_space<vmem>>, vector<128x128xbf16>
    %c0_3 = arith.constant 0 : index
    %c0_4 = arith.constant 0 : index
    %2 = vector.load %arg3[%c0_3, %c0_4] : memref<32x128xbf16, #tpu.memory_space<vmem>>, vector<32x128xbf16>
    %c0_5 = arith.constant 0 : index
    %c0_6 = arith.constant 0 : index
    %3 = vector.load %arg4[%c0_5, %c0_6] : memref<128x128xbf16, #tpu.memory_space<vmem>>, vector<128x128xbf16>
    %c0_7 = arith.constant 0 : index
    %c0_8 = arith.constant 0 : index
    %4 = vector.load %arg5[%c0_7, %c0_8] : memref<32x256xbf16, #tpu.memory_space<vmem>>, vector<32x256xbf16>
    %c0_9 = arith.constant 0 : index
    %c0_10 = arith.constant 0 : index
    %5 = vector.load %arg6[%c0_9, %c0_10] : memref<1x128xf32, #tpu.memory_space<vmem>>, vector<1x128xf32>
    %6 = vector.shape_cast %5 : vector<1x128xf32> to vector<1x128xf32>
    %7 = vector.broadcast %6 : vector<1x128xf32> to vector<8x128xf32>
    %8 = tpu.iota {dimensions = array<i32: 1>} : vector<8x128xi32>
    %cst = arith.constant 0.000000e+00 : f32
    %9 = vector.broadcast %cst : f32 to vector<8x32xf32>
    %cst_11 = arith.constant 0.000000e+00 : f32
    %10 = vector.broadcast %cst_11 : f32 to vector<8x32xf32>
    %c0_i32 = arith.constant 0 : i32
    %11 = arith.index_cast %c0_i32 : i32 to index
    %c0_12 = arith.constant 0 : index
    %c0_13 = arith.constant 0 : index
    %12 = vector.load %arg1[%11, %c0_12, %c0_13] : memref<8x8x1xi32, #tpu.memory_space<vmem>>, vector<1x8x1xi32>
    %13 = vector.shape_cast %12 : vector<1x8x1xi32> to vector<8x1xi32>
    %14 = vector.broadcast %13 : vector<8x1xi32> to vector<8x128xi32>
    %15 = arith.cmpi eq, %8, %14 : vector<8x128xi32>
    %16 = arith.extui %15 : vector<8x128xi1> to vector<8x128xi32>
    %17 = arith.sitofp %16 : vector<8x128xi32> to vector<8x128xf32>
    %18 = arith.truncf %17 : vector<8x128xf32> to vector<8x128xbf16>
    %cst_14 = arith.constant dense<0.000000e+00> : vector<8x128xf32>
    %19 = tpu.matmul %18, %1, %cst_14 {dimension_numbers = #tpu.dot_dimension_numbers<[1], [0], [0], [1], [0, 0, 1, 1], [], []>} : vector<8x128xbf16>, vector<128x128xbf16>, vector<8x128xf32> -> vector<8x128xf32>
    %20 = arith.truncf %9 : vector<8x32xf32> to vector<8x32xbf16>
    %cst_15 = arith.constant dense<0.000000e+00> : vector<8x128xf32>
    %21 = tpu.matmul %20, %2, %cst_15 {dimension_numbers = #tpu.dot_dimension_numbers<[1], [0], [0], [1], [0, 0, 1, 1], [], []>} : vector<8x32xbf16>, vector<32x128xbf16>, vector<8x128xf32> -> vector<8x128xf32>
    %22 = arith.addf %19, %21 : vector<8x128xf32>
    %23 = arith.negf %22 : vector<8x128xf32>
    %24 = math.exp %23 : vector<8x128xf32>
    %cst_16 = arith.constant 1.000000e+00 : f32
    %25 = vector.broadcast %cst_16 : f32 to vector<8x128xf32>
    %26 = arith.addf %25, %24 : vector<8x128xf32>
    %27 = arith.divf %25, %26 : vector<8x128xf32>
    %28 = math.tanh %22 : vector<8x128xf32>
    %29 = vector.extract_strided_slice %27 {offsets = [0, 0], sizes = [8, 32], strides = [1, 1]} : vector<8x128xf32> to vector<8x32xf32>
    %30 = vector.extract_strided_slice %27 {offsets = [0, 32], sizes = [8, 32], strides = [1, 1]} : vector<8x128xf32> to vector<8x32xf32>
    %31 = vector.extract_strided_slice %28 {offsets = [0, 64], sizes = [8, 32], strides = [1, 1]} : vector<8x128xf32> to vector<8x32xf32>
    %32 = vector.extract_strided_slice %27 {offsets = [0, 96], sizes = [8, 32], strides = [1, 1]} : vector<8x128xf32> to vector<8x32xf32>
    %33 = arith.mulf %30, %10 : vector<8x32xf32>
    %34 = arith.mulf %29, %31 : vector<8x32xf32>
    %35 = arith.addf %33, %34 : vector<8x32xf32>
    %36 = math.tanh %35 : vector<8x32xf32>
    %37 = arith.mulf %32, %36 : vector<8x32xf32>
    %38 = vector.broadcast %c0_i32 : i32 to vector<8x1xi32>
    %39 = arith.cmpi sgt, %0, %38 : vector<8x1xi32>
    %40 = vector.shape_cast %39 : vector<8x1xi1> to vector<8x1xi1>
    %41 = vector.broadcast %40 : vector<8x1xi1> to vector<8x32xi1>
    %42 = arith.select %41, %37, %9 : vector<8x32xi1>, vector<8x32xf32>
    %43 = vector.shape_cast %39 : vector<8x1xi1> to vector<8x1xi1>
    %44 = vector.broadcast %43 : vector<8x1xi1> to vector<8x32xi1>
    %45 = arith.select %44, %35, %10 : vector<8x32xi1>, vector<8x32xf32>
    %c1_i32 = arith.constant 1 : i32
    %46 = arith.index_cast %c1_i32 : i32 to index
    %c0_17 = arith.constant 0 : index
    %c0_18 = arith.constant 0 : index
    %47 = vector.load %arg1[%46, %c0_17, %c0_18] : memref<8x8x1xi32, #tpu.memory_space<vmem>>, vector<1x8x1xi32>
    %48 = vector.shape_cast %47 : vector<1x8x1xi32> to vector<8x1xi32>
    %49 = vector.broadcast %48 : vector<8x1xi32> to vector<8x128xi32>
    %50 = arith.cmpi eq, %8, %49 : vector<8x128xi32>
    %51 = arith.extui %50 : vector<8x128xi1> to vector<8x128xi32>
    %52 = arith.sitofp %51 : vector<8x128xi32> to vector<8x128xf32>
    %53 = arith.truncf %52 : vector<8x128xf32> to vector<8x128xbf16>
    %cst_19 = arith.constant dense<0.000000e+00> : vector<8x128xf32>
    %54 = tpu.matmul %53, %1, %cst_19 {dimension_numbers = #tpu.dot_dimension_numbers<[1], [0], [0], [1], [0, 0, 1, 1], [], []>} : vector<8x128xbf16>, vector<128x128xbf16>, vector<8x128xf32> -> vector<8x128xf32>
    %55 = arith.truncf %42 : vector<8x32xf32> to vector<8x32xbf16>
    %cst_20 = arith.constant dense<0.000000e+00> : vector<8x128xf32>
    %56 = tpu.matmul %55, %2, %cst_20 {dimension_numbers = #tpu.dot_dimension_numbers<[1], [0], [0], [1], [0, 0, 1, 1], [], []>} : vector<8x32xbf16>, vector<32x128xbf16>, vector<8x128xf32> -> vector<8x128xf32>
    %57 = arith.addf %54, %56 : vector<8x128xf32>
    %58 = arith.negf %57 : vector<8x128xf32>
    %59 = math.exp %58 : vector<8x128xf32>
    %cst_21 = arith.constant 1.000000e+00 : f32
    %60 = vector.broadcast %cst_21 : f32 to vector<8x128xf32>
    %61 = arith.addf %60, %59 : vector<8x128xf32>
    %62 = arith.divf %60, %61 : vector<8x128xf32>
    %63 = math.tanh %57 : vector<8x128xf32>
    %64 = vector.extract_strided_slice %62 {offsets = [0, 0], sizes = [8, 32], strides = [1, 1]} : vector<8x128xf32> to vector<8x32xf32>
    %65 = vector.extract_strided_slice %62 {offsets = [0, 32], sizes = [8, 32], strides = [1, 1]} : vector<8x128xf32> to vector<8x32xf32>
    %66 = vector.extract_strided_slice %63 {offsets = [0, 64], sizes = [8, 32], strides = [1, 1]} : vector<8x128xf32> to vector<8x32xf32>
    %67 = vector.extract_strided_slice %62 {offsets = [0, 96], sizes = [8, 32], strides = [1, 1]} : vector<8x128xf32> to vector<8x32xf32>
    %68 = arith.mulf %65, %45 : vector<8x32xf32>
    %69 = arith.mulf %64, %66 : vector<8x32xf32>
    %70 = arith.addf %68, %69 : vector<8x32xf32>
    %71 = math.tanh %70 : vector<8x32xf32>
    %72 = arith.mulf %67, %71 : vector<8x32xf32>
    %73 = vector.broadcast %c1_i32 : i32 to vector<8x1xi32>
    %74 = arith.cmpi sgt, %0, %73 : vector<8x1xi32>
    %75 = vector.shape_cast %74 : vector<8x1xi1> to vector<8x1xi1>
    %76 = vector.broadcast %75 : vector<8x1xi1> to vector<8x32xi1>
    %77 = arith.select %76, %72, %42 : vector<8x32xi1>, vector<8x32xf32>
    %78 = vector.shape_cast %74 : vector<8x1xi1> to vector<8x1xi1>
    %79 = vector.broadcast %78 : vector<8x1xi1> to vector<8x32xi1>
    %80 = arith.select %79, %70, %45 : vector<8x32xi1>, vector<8x32xf32>
    %c2_i32 = arith.constant 2 : i32
    %81 = arith.index_cast %c2_i32 : i32 to index
    %c0_22 = arith.constant 0 : index
    %c0_23 = arith.constant 0 : index
    %82 = vector.load %arg1[%81, %c0_22, %c0_23] : memref<8x8x1xi32, #tpu.memory_space<vmem>>, vector<1x8x1xi32>
    %83 = vector.shape_cast %82 : vector<1x8x1xi32> to vector<8x1xi32>
    %84 = vector.broadcast %83 : vector<8x1xi32> to vector<8x128xi32>
    %85 = arith.cmpi eq, %8, %84 : vector<8x128xi32>
    %86 = arith.extui %85 : vector<8x128xi1> to vector<8x128xi32>
    %87 = arith.sitofp %86 : vector<8x128xi32> to vector<8x128xf32>
    %88 = arith.truncf %87 : vector<8x128xf32> to vector<8x128xbf16>
    %cst_24 = arith.constant dense<0.000000e+00> : vector<8x128xf32>
    %89 = tpu.matmul %88, %1, %cst_24 {dimension_numbers = #tpu.dot_dimension_numbers<[1], [0], [0], [1], [0, 0, 1, 1], [], []>} : vector<8x128xbf16>, vector<128x128xbf16>, vector<8x128xf32> -> vector<8x128xf32>
    %90 = arith.truncf %77 : vector<8x32xf32> to vector<8x32xbf16>
    %cst_25 = arith.constant dense<0.000000e+00> : vector<8x128xf32>
    %91 = tpu.matmul %90, %2, %cst_25 {dimension_numbers = #tpu.dot_dimension_numbers<[1], [0], [0], [1], [0, 0, 1, 1], [], []>} : vector<8x32xbf16>, vector<32x128xbf16>, vector<8x128xf32> -> vector<8x128xf32>
    %92 = arith.addf %89, %91 : vector<8x128xf32>
    %93 = arith.negf %92 : vector<8x128xf32>
    %94 = math.exp %93 : vector<8x128xf32>
    %cst_26 = arith.constant 1.000000e+00 : f32
    %95 = vector.broadcast %cst_26 : f32 to vector<8x128xf32>
    %96 = arith.addf %95, %94 : vector<8x128xf32>
    %97 = arith.divf %95, %96 : vector<8x128xf32>
    %98 = math.tanh %92 : vector<8x128xf32>
    %99 = vector.extract_strided_slice %97 {offsets = [0, 0], sizes = [8, 32], strides = [1, 1]} : vector<8x128xf32> to vector<8x32xf32>
    %100 = vector.extract_strided_slice %97 {offsets = [0, 32], sizes = [8, 32], strides = [1, 1]} : vector<8x128xf32> to vector<8x32xf32>
    %101 = vector.extract_strided_slice %98 {offsets = [0, 64], sizes = [8, 32], strides = [1, 1]} : vector<8x128xf32> to vector<8x32xf32>
    %102 = vector.extract_strided_slice %97 {offsets = [0, 96], sizes = [8, 32], strides = [1, 1]} : vector<8x128xf32> to vector<8x32xf32>
    %103 = arith.mulf %100, %80 : vector<8x32xf32>
    %104 = arith.mulf %99, %101 : vector<8x32xf32>
    %105 = arith.addf %103, %104 : vector<8x32xf32>
    %106 = math.tanh %105 : vector<8x32xf32>
    %107 = arith.mulf %102, %106 : vector<8x32xf32>
    %108 = vector.broadcast %c2_i32 : i32 to vector<8x1xi32>
    %109 = arith.cmpi sgt, %0, %108 : vector<8x1xi32>
    %110 = vector.shape_cast %109 : vector<8x1xi1> to vector<8x1xi1>
    %111 = vector.broadcast %110 : vector<8x1xi1> to vector<8x32xi1>
    %112 = arith.select %111, %107, %77 : vector<8x32xi1>, vector<8x32xf32>
    %113 = vector.shape_cast %109 : vector<8x1xi1> to vector<8x1xi1>
    %114 = vector.broadcast %113 : vector<8x1xi1> to vector<8x32xi1>
    %115 = arith.select %114, %105, %80 : vector<8x32xi1>, vector<8x32xf32>
    %c3_i32 = arith.constant 3 : i32
    %116 = arith.index_cast %c3_i32 : i32 to index
    %c0_27 = arith.constant 0 : index
    %c0_28 = arith.constant 0 : index
    %117 = vector.load %arg1[%116, %c0_27, %c0_28] : memref<8x8x1xi32, #tpu.memory_space<vmem>>, vector<1x8x1xi32>
    %118 = vector.shape_cast %117 : vector<1x8x1xi32> to vector<8x1xi32>
    %119 = vector.broadcast %118 : vector<8x1xi32> to vector<8x128xi32>
    %120 = arith.cmpi eq, %8, %119 : vector<8x128xi32>
    %121 = arith.extui %120 : vector<8x128xi1> to vector<8x128xi32>
    %122 = arith.sitofp %121 : vector<8x128xi32> to vector<8x128xf32>
    %123 = arith.truncf %122 : vector<8x128xf32> to vector<8x128xbf16>
    %cst_29 = arith.constant dense<0.000000e+00> : vector<8x128xf32>
    %124 = tpu.matmul %123, %1, %cst_29 {dimension_numbers = #tpu.dot_dimension_numbers<[1], [0], [0], [1], [0, 0, 1, 1], [], []>} : vector<8x128xbf16>, vector<128x128xbf16>, vector<8x128xf32> -> vector<8x128xf32>
    %125 = arith.truncf %112 : vector<8x32xf32> to vector<8x32xbf16>
    %cst_30 = arith.constant dense<0.000000e+00> : vector<8x128xf32>
    %126 = tpu.matmul %125, %2, %cst_30 {dimension_numbers = #tpu.dot_dimension_numbers<[1], [0], [0], [1], [0, 0, 1, 1], [], []>} : vector<8x32xbf16>, vector<32x128xbf16>, vector<8x128xf32> -> vector<8x128xf32>
    %127 = arith.addf %124, %126 : vector<8x128xf32>
    %128 = arith.negf %127 : vector<8x128xf32>
    %129 = math.exp %128 : vector<8x128xf32>
    %cst_31 = arith.constant 1.000000e+00 : f32
    %130 = vector.broadcast %cst_31 : f32 to vector<8x128xf32>
    %131 = arith.addf %130, %129 : vector<8x128xf32>
    %132 = arith.divf %130, %131 : vector<8x128xf32>
    %133 = math.tanh %127 : vector<8x128xf32>
    %134 = vector.extract_strided_slice %132 {offsets = [0, 0], sizes = [8, 32], strides = [1, 1]} : vector<8x128xf32> to vector<8x32xf32>
    %135 = vector.extract_strided_slice %132 {offsets = [0, 32], sizes = [8, 32], strides = [1, 1]} : vector<8x128xf32> to vector<8x32xf32>
    %136 = vector.extract_strided_slice %133 {offsets = [0, 64], sizes = [8, 32], strides = [1, 1]} : vector<8x128xf32> to vector<8x32xf32>
    %137 = vector.extract_strided_slice %132 {offsets = [0, 96], sizes = [8, 32], strides = [1, 1]} : vector<8x128xf32> to vector<8x32xf32>
    %138 = arith.mulf %135, %115 : vector<8x32xf32>
    %139 = arith.mulf %134, %136 : vector<8x32xf32>
    %140 = arith.addf %138, %139 : vector<8x32xf32>
    %141 = math.tanh %140 : vector<8x32xf32>
    %142 = arith.mulf %137, %141 : vector<8x32xf32>
    %143 = vector.broadcast %c3_i32 : i32 to vector<8x1xi32>
    %144 = arith.cmpi sgt, %0, %143 : vector<8x1xi32>
    %145 = vector.shape_cast %144 : vector<8x1xi1> to vector<8x1xi1>
    %146 = vector.broadcast %145 : vector<8x1xi1> to vector<8x32xi1>
    %147 = arith.select %146, %142, %112 : vector<8x32xi1>, vector<8x32xf32>
    %148 = vector.shape_cast %144 : vector<8x1xi1> to vector<8x1xi1>
    %149 = vector.broadcast %148 : vector<8x1xi1> to vector<8x32xi1>
    %150 = arith.select %149, %140, %115 : vector<8x32xi1>, vector<8x32xf32>
    %c4_i32 = arith.constant 4 : i32
    %151 = arith.index_cast %c4_i32 : i32 to index
    %c0_32 = arith.constant 0 : index
    %c0_33 = arith.constant 0 : index
    %152 = vector.load %arg1[%151, %c0_32, %c0_33] : memref<8x8x1xi32, #tpu.memory_space<vmem>>, vector<1x8x1xi32>
    %153 = vector.shape_cast %152 : vector<1x8x1xi32> to vector<8x1xi32>
    %154 = vector.broadcast %153 : vector<8x1xi32> to vector<8x128xi32>
    %155 = arith.cmpi eq, %8, %154 : vector<8x128xi32>
    %156 = arith.extui %155 : vector<8x128xi1> to vector<8x128xi32>
    %157 = arith.sitofp %156 : vector<8x128xi32> to vector<8x128xf32>
    %158 = arith.truncf %157 : vector<8x128xf32> to vector<8x128xbf16>
    %cst_34 = arith.constant dense<0.000000e+00> : vector<8x128xf32>
    %159 = tpu.matmul %158, %1, %cst_34 {dimension_numbers = #tpu.dot_dimension_numbers<[1], [0], [0], [1], [0, 0, 1, 1], [], []>} : vector<8x128xbf16>, vector<128x128xbf16>, vector<8x128xf32> -> vector<8x128xf32>
    %160 = arith.truncf %147 : vector<8x32xf32> to vector<8x32xbf16>
    %cst_35 = arith.constant dense<0.000000e+00> : vector<8x128xf32>
    %161 = tpu.matmul %160, %2, %cst_35 {dimension_numbers = #tpu.dot_dimension_numbers<[1], [0], [0], [1], [0, 0, 1, 1], [], []>} : vector<8x32xbf16>, vector<32x128xbf16>, vector<8x128xf32> -> vector<8x128xf32>
    %162 = arith.addf %159, %161 : vector<8x128xf32>
    %163 = arith.negf %162 : vector<8x128xf32>
    %164 = math.exp %163 : vector<8x128xf32>
    %cst_36 = arith.constant 1.000000e+00 : f32
    %165 = vector.broadcast %cst_36 : f32 to vector<8x128xf32>
    %166 = arith.addf %165, %164 : vector<8x128xf32>
    %167 = arith.divf %165, %166 : vector<8x128xf32>
    %168 = math.tanh %162 : vector<8x128xf32>
    %169 = vector.extract_strided_slice %167 {offsets = [0, 0], sizes = [8, 32], strides = [1, 1]} : vector<8x128xf32> to vector<8x32xf32>
    %170 = vector.extract_strided_slice %167 {offsets = [0, 32], sizes = [8, 32], strides = [1, 1]} : vector<8x128xf32> to vector<8x32xf32>
    %171 = vector.extract_strided_slice %168 {offsets = [0, 64], sizes = [8, 32], strides = [1, 1]} : vector<8x128xf32> to vector<8x32xf32>
    %172 = vector.extract_strided_slice %167 {offsets = [0, 96], sizes = [8, 32], strides = [1, 1]} : vector<8x128xf32> to vector<8x32xf32>
    %173 = arith.mulf %170, %150 : vector<8x32xf32>
    %174 = arith.mulf %169, %171 : vector<8x32xf32>
    %175 = arith.addf %173, %174 : vector<8x32xf32>
    %176 = math.tanh %175 : vector<8x32xf32>
    %177 = arith.mulf %172, %176 : vector<8x32xf32>
    %178 = vector.broadcast %c4_i32 : i32 to vector<8x1xi32>
    %179 = arith.cmpi sgt, %0, %178 : vector<8x1xi32>
    %180 = vector.shape_cast %179 : vector<8x1xi1> to vector<8x1xi1>
    %181 = vector.broadcast %180 : vector<8x1xi1> to vector<8x32xi1>
    %182 = arith.select %181, %177, %147 : vector<8x32xi1>, vector<8x32xf32>
    %183 = vector.shape_cast %179 : vector<8x1xi1> to vector<8x1xi1>
    %184 = vector.broadcast %183 : vector<8x1xi1> to vector<8x32xi1>
    %185 = arith.select %184, %175, %150 : vector<8x32xi1>, vector<8x32xf32>
    %c5_i32 = arith.constant 5 : i32
    %186 = arith.index_cast %c5_i32 : i32 to index
    %c0_37 = arith.constant 0 : index
    %c0_38 = arith.constant 0 : index
    %187 = vector.load %arg1[%186, %c0_37, %c0_38] : memref<8x8x1xi32, #tpu.memory_space<vmem>>, vector<1x8x1xi32>
    %188 = vector.shape_cast %187 : vector<1x8x1xi32> to vector<8x1xi32>
    %189 = vector.broadcast %188 : vector<8x1xi32> to vector<8x128xi32>
    %190 = arith.cmpi eq, %8, %189 : vector<8x128xi32>
    %191 = arith.extui %190 : vector<8x128xi1> to vector<8x128xi32>
    %192 = arith.sitofp %191 : vector<8x128xi32> to vector<8x128xf32>
    %193 = arith.truncf %192 : vector<8x128xf32> to vector<8x128xbf16>
    %cst_39 = arith.constant dense<0.000000e+00> : vector<8x128xf32>
    %194 = tpu.matmul %193, %1, %cst_39 {dimension_numbers = #tpu.dot_dimension_numbers<[1], [0], [0], [1], [0, 0, 1, 1], [], []>} : vector<8x128xbf16>, vector<128x128xbf16>, vector<8x128xf32> -> vector<8x128xf32>
    %195 = arith.truncf %182 : vector<8x32xf32> to vector<8x32xbf16>
    %cst_40 = arith.constant dense<0.000000e+00> : vector<8x128xf32>
    %196 = tpu.matmul %195, %2, %cst_40 {dimension_numbers = #tpu.dot_dimension_numbers<[1], [0], [0], [1], [0, 0, 1, 1], [], []>} : vector<8x32xbf16>, vector<32x128xbf16>, vector<8x128xf32> -> vector<8x128xf32>
    %197 = arith.addf %194, %196 : vector<8x128xf32>
    %198 = arith.negf %197 : vector<8x128xf32>
    %199 = math.exp %198 : vector<8x128xf32>
    %cst_41 = arith.constant 1.000000e+00 : f32
    %200 = vector.broadcast %cst_41 : f32 to vector<8x128xf32>
    %201 = arith.addf %200, %199 : vector<8x128xf32>
    %202 = arith.divf %200, %201 : vector<8x128xf32>
    %203 = math.tanh %197 : vector<8x128xf32>
    %204 = vector.extract_strided_slice %202 {offsets = [0, 0], sizes = [8, 32], strides = [1, 1]} : vector<8x128xf32> to vector<8x32xf32>
    %205 = vector.extract_strided_slice %202 {offsets = [0, 32], sizes = [8, 32], strides = [1, 1]} : vector<8x128xf32> to vector<8x32xf32>
    %206 = vector.extract_strided_slice %203 {offsets = [0, 64], sizes = [8, 32], strides = [1, 1]} : vector<8x128xf32> to vector<8x32xf32>
    %207 = vector.extract_strided_slice %202 {offsets = [0, 96], sizes = [8, 32], strides = [1, 1]} : vector<8x128xf32> to vector<8x32xf32>
    %208 = arith.mulf %205, %185 : vector<8x32xf32>
    %209 = arith.mulf %204, %206 : vector<8x32xf32>
    %210 = arith.addf %208, %209 : vector<8x32xf32>
    %211 = math.tanh %210 : vector<8x32xf32>
    %212 = arith.mulf %207, %211 : vector<8x32xf32>
    %213 = vector.broadcast %c5_i32 : i32 to vector<8x1xi32>
    %214 = arith.cmpi sgt, %0, %213 : vector<8x1xi32>
    %215 = vector.shape_cast %214 : vector<8x1xi1> to vector<8x1xi1>
    %216 = vector.broadcast %215 : vector<8x1xi1> to vector<8x32xi1>
    %217 = arith.select %216, %212, %182 : vector<8x32xi1>, vector<8x32xf32>
    %218 = vector.shape_cast %214 : vector<8x1xi1> to vector<8x1xi1>
    %219 = vector.broadcast %218 : vector<8x1xi1> to vector<8x32xi1>
    %220 = arith.select %219, %210, %185 : vector<8x32xi1>, vector<8x32xf32>
    %c6_i32 = arith.constant 6 : i32
    %221 = arith.index_cast %c6_i32 : i32 to index
    %c0_42 = arith.constant 0 : index
    %c0_43 = arith.constant 0 : index
    %222 = vector.load %arg1[%221, %c0_42, %c0_43] : memref<8x8x1xi32, #tpu.memory_space<vmem>>, vector<1x8x1xi32>
    %223 = vector.shape_cast %222 : vector<1x8x1xi32> to vector<8x1xi32>
    %224 = vector.broadcast %223 : vector<8x1xi32> to vector<8x128xi32>
    %225 = arith.cmpi eq, %8, %224 : vector<8x128xi32>
    %226 = arith.extui %225 : vector<8x128xi1> to vector<8x128xi32>
    %227 = arith.sitofp %226 : vector<8x128xi32> to vector<8x128xf32>
    %228 = arith.truncf %227 : vector<8x128xf32> to vector<8x128xbf16>
    %cst_44 = arith.constant dense<0.000000e+00> : vector<8x128xf32>
    %229 = tpu.matmul %228, %1, %cst_44 {dimension_numbers = #tpu.dot_dimension_numbers<[1], [0], [0], [1], [0, 0, 1, 1], [], []>} : vector<8x128xbf16>, vector<128x128xbf16>, vector<8x128xf32> -> vector<8x128xf32>
    %230 = arith.truncf %217 : vector<8x32xf32> to vector<8x32xbf16>
    %cst_45 = arith.constant dense<0.000000e+00> : vector<8x128xf32>
    %231 = tpu.matmul %230, %2, %cst_45 {dimension_numbers = #tpu.dot_dimension_numbers<[1], [0], [0], [1], [0, 0, 1, 1], [], []>} : vector<8x32xbf16>, vector<32x128xbf16>, vector<8x128xf32> -> vector<8x128xf32>
    %232 = arith.addf %229, %231 : vector<8x128xf32>
    %233 = arith.negf %232 : vector<8x128xf32>
    %234 = math.exp %233 : vector<8x128xf32>
    %cst_46 = arith.constant 1.000000e+00 : f32
    %235 = vector.broadcast %cst_46 : f32 to vector<8x128xf32>
    %236 = arith.addf %235, %234 : vector<8x128xf32>
    %237 = arith.divf %235, %236 : vector<8x128xf32>
    %238 = math.tanh %232 : vector<8x128xf32>
    %239 = vector.extract_strided_slice %237 {offsets = [0, 0], sizes = [8, 32], strides = [1, 1]} : vector<8x128xf32> to vector<8x32xf32>
    %240 = vector.extract_strided_slice %237 {offsets = [0, 32], sizes = [8, 32], strides = [1, 1]} : vector<8x128xf32> to vector<8x32xf32>
    %241 = vector.extract_strided_slice %238 {offsets = [0, 64], sizes = [8, 32], strides = [1, 1]} : vector<8x128xf32> to vector<8x32xf32>
    %242 = vector.extract_strided_slice %237 {offsets = [0, 96], sizes = [8, 32], strides = [1, 1]} : vector<8x128xf32> to vector<8x32xf32>
    %243 = arith.mulf %240, %220 : vector<8x32xf32>
    %244 = arith.mulf %239, %241 : vector<8x32xf32>
    %245 = arith.addf %243, %244 : vector<8x32xf32>
    %246 = math.tanh %245 : vector<8x32xf32>
    %247 = arith.mulf %242, %246 : vector<8x32xf32>
    %248 = vector.broadcast %c6_i32 : i32 to vector<8x1xi32>
    %249 = arith.cmpi sgt, %0, %248 : vector<8x1xi32>
    %250 = vector.shape_cast %249 : vector<8x1xi1> to vector<8x1xi1>
    %251 = vector.broadcast %250 : vector<8x1xi1> to vector<8x32xi1>
    %252 = arith.select %251, %247, %217 : vector<8x32xi1>, vector<8x32xf32>
    %253 = vector.shape_cast %249 : vector<8x1xi1> to vector<8x1xi1>
    %254 = vector.broadcast %253 : vector<8x1xi1> to vector<8x32xi1>
    %255 = arith.select %254, %245, %220 : vector<8x32xi1>, vector<8x32xf32>
    %c7_i32 = arith.constant 7 : i32
    %256 = arith.index_cast %c7_i32 : i32 to index
    %c0_47 = arith.constant 0 : index
    %c0_48 = arith.constant 0 : index
    %257 = vector.load %arg1[%256, %c0_47, %c0_48] : memref<8x8x1xi32, #tpu.memory_space<vmem>>, vector<1x8x1xi32>
    %258 = vector.shape_cast %257 : vector<1x8x1xi32> to vector<8x1xi32>
    %259 = vector.broadcast %258 : vector<8x1xi32> to vector<8x128xi32>
    %260 = arith.cmpi eq, %8, %259 : vector<8x128xi32>
    %261 = arith.extui %260 : vector<8x128xi1> to vector<8x128xi32>
    %262 = arith.sitofp %261 : vector<8x128xi32> to vector<8x128xf32>
    %263 = arith.truncf %262 : vector<8x128xf32> to vector<8x128xbf16>
    %cst_49 = arith.constant dense<0.000000e+00> : vector<8x128xf32>
    %264 = tpu.matmul %263, %1, %cst_49 {dimension_numbers = #tpu.dot_dimension_numbers<[1], [0], [0], [1], [0, 0, 1, 1], [], []>} : vector<8x128xbf16>, vector<128x128xbf16>, vector<8x128xf32> -> vector<8x128xf32>
    %265 = arith.truncf %252 : vector<8x32xf32> to vector<8x32xbf16>
    %cst_50 = arith.constant dense<0.000000e+00> : vector<8x128xf32>
    %266 = tpu.matmul %265, %2, %cst_50 {dimension_numbers = #tpu.dot_dimension_numbers<[1], [0], [0], [1], [0, 0, 1, 1], [], []>} : vector<8x32xbf16>, vector<32x128xbf16>, vector<8x128xf32> -> vector<8x128xf32>
    %267 = arith.addf %264, %266 : vector<8x128xf32>
    %268 = arith.negf %267 : vector<8x128xf32>
    %269 = math.exp %268 : vector<8x128xf32>
    %cst_51 = arith.constant 1.000000e+00 : f32
    %270 = vector.broadcast %cst_51 : f32 to vector<8x128xf32>
    %271 = arith.addf %270, %269 : vector<8x128xf32>
    %272 = arith.divf %270, %271 : vector<8x128xf32>
    %273 = math.tanh %267 : vector<8x128xf32>
    %274 = vector.extract_strided_slice %272 {offsets = [0, 0], sizes = [8, 32], strides = [1, 1]} : vector<8x128xf32> to vector<8x32xf32>
    %275 = vector.extract_strided_slice %272 {offsets = [0, 32], sizes = [8, 32], strides = [1, 1]} : vector<8x128xf32> to vector<8x32xf32>
    %276 = vector.extract_strided_slice %273 {offsets = [0, 64], sizes = [8, 32], strides = [1, 1]} : vector<8x128xf32> to vector<8x32xf32>
    %277 = vector.extract_strided_slice %272 {offsets = [0, 96], sizes = [8, 32], strides = [1, 1]} : vector<8x128xf32> to vector<8x32xf32>
    %278 = arith.mulf %275, %255 : vector<8x32xf32>
    %279 = arith.mulf %274, %276 : vector<8x32xf32>
    %280 = arith.addf %278, %279 : vector<8x32xf32>
    %281 = math.tanh %280 : vector<8x32xf32>
    %282 = arith.mulf %277, %281 : vector<8x32xf32>
    %283 = vector.broadcast %c7_i32 : i32 to vector<8x1xi32>
    %284 = arith.cmpi sgt, %0, %283 : vector<8x1xi32>
    %285 = vector.shape_cast %284 : vector<8x1xi1> to vector<8x1xi1>
    %286 = vector.broadcast %285 : vector<8x1xi1> to vector<8x32xi1>
    %287 = arith.select %286, %282, %252 : vector<8x32xi1>, vector<8x32xf32>
    %288 = vector.shape_cast %284 : vector<8x1xi1> to vector<8x1xi1>
    %289 = vector.broadcast %288 : vector<8x1xi1> to vector<8x32xi1>
    %290 = arith.select %289, %280, %255 : vector<8x32xi1>, vector<8x32xf32>
    %c8_i32 = arith.constant 8 : i32
    %291 = arith.truncf %287 : vector<8x32xf32> to vector<8x32xbf16>
    %cst_52 = arith.constant dense<0.000000e+00> : vector<8x256xf32>
    %292 = tpu.matmul %291, %4, %cst_52 {dimension_numbers = #tpu.dot_dimension_numbers<[1], [0], [0], [1], [0, 0, 1, 1], [], []>} : vector<8x32xbf16>, vector<32x256xbf16>, vector<8x256xf32> -> vector<8x256xf32>
    %293 = vector.extract_strided_slice %292 {offsets = [0, 0], sizes = [8, 128], strides = [1, 1]} : vector<8x256xf32> to vector<8x128xf32>
    %c1_i32_53 = arith.constant 1 : i32
    %294 = vector.broadcast %c1_i32_53 : i32 to vector<8x128xi32>
    %295 = arith.cmpi eq, %8, %294 : vector<8x128xi32>
    %296 = arith.extui %295 : vector<8x128xi1> to vector<8x128xi32>
    %297 = arith.sitofp %296 : vector<8x128xi32> to vector<8x128xf32>
    %298 = arith.truncf %297 : vector<8x128xf32> to vector<8x128xbf16>
    %c0_i32_54 = arith.constant 0 : i32
    %cst_55 = arith.constant dense<0.000000e+00> : vector<8x128xf32>
    %299 = tpu.matmul %298, %3, %cst_55 {dimension_numbers = #tpu.dot_dimension_numbers<[1], [0], [0], [1], [0, 0, 1, 1], [], []>} : vector<8x128xbf16>, vector<128x128xbf16>, vector<8x128xf32> -> vector<8x128xf32>
    %300 = arith.addf %299, %293 : vector<8x128xf32>
    %301 = arith.negf %300 : vector<8x128xf32>
    %302 = math.exp %301 : vector<8x128xf32>
    %cst_56 = arith.constant 1.000000e+00 : f32
    %303 = vector.broadcast %cst_56 : f32 to vector<8x128xf32>
    %304 = arith.addf %303, %302 : vector<8x128xf32>
    %305 = arith.divf %303, %304 : vector<8x128xf32>
    %306 = math.tanh %300 : vector<8x128xf32>
    %307 = vector.extract_strided_slice %305 {offsets = [0, 0], sizes = [8, 32], strides = [1, 1]} : vector<8x128xf32> to vector<8x32xf32>
    %308 = vector.extract_strided_slice %305 {offsets = [0, 32], sizes = [8, 32], strides = [1, 1]} : vector<8x128xf32> to vector<8x32xf32>
    %309 = vector.extract_strided_slice %306 {offsets = [0, 64], sizes = [8, 32], strides = [1, 1]} : vector<8x128xf32> to vector<8x32xf32>
    %310 = vector.extract_strided_slice %305 {offsets = [0, 96], sizes = [8, 32], strides = [1, 1]} : vector<8x128xf32> to vector<8x32xf32>
    %311 = arith.mulf %308, %290 : vector<8x32xf32>
    %312 = arith.mulf %307, %309 : vector<8x32xf32>
    %313 = arith.addf %311, %312 : vector<8x32xf32>
    %314 = math.tanh %313 : vector<8x32xf32>
    %315 = arith.mulf %310, %314 : vector<8x32xf32>
    %316 = arith.truncf %315 : vector<8x32xf32> to vector<8x32xbf16>
    %cst_57 = arith.constant dense<0.000000e+00> : vector<8x256xf32>
    %317 = tpu.matmul %316, %4, %cst_57 {dimension_numbers = #tpu.dot_dimension_numbers<[1], [0], [0], [1], [0, 0, 1, 1], [], []>} : vector<8x32xbf16>, vector<32x256xbf16>, vector<8x256xf32> -> vector<8x256xf32>
    %318 = vector.extract_strided_slice %317 {offsets = [0, 128], sizes = [8, 128], strides = [1, 1]} : vector<8x256xf32> to vector<8x128xf32>
    %319 = arith.addf %318, %7 : vector<8x128xf32>
    %cst_58 = arith.constant dense<0xFF800000> : vector<8xf32>
    %320 = vector.multi_reduction <maximumf>, %319, %cst_58 [1] : vector<8x128xf32> to vector<8xf32>
    %321 = vector.shape_cast %320 : vector<8xf32> to vector<8x1xf32>
    %322 = vector.broadcast %321 : vector<8x1xf32> to vector<8x128xf32>
    %323 = arith.subf %319, %322 : vector<8x128xf32>
    %324 = math.exp %323 : vector<8x128xf32>
    %cst_59 = arith.constant dense<0.000000e+00> : vector<8xf32>
    %325 = vector.multi_reduction <add>, %324, %cst_59 [1] : vector<8x128xf32> to vector<8xf32>
    %326 = vector.shape_cast %325 : vector<8xf32> to vector<8x1xf32>
    %327 = math.log %326 : vector<8x1xf32>
    %328 = vector.broadcast %327 : vector<8x1xf32> to vector<8x128xf32>
    %329 = arith.subf %323, %328 : vector<8x128xf32>
    %330 = arith.index_cast %c0_i32_54 : i32 to index
    %c0_60 = arith.constant 0 : index
    %c0_61 = arith.constant 0 : index
    %331 = vector.load %arg7[%330, %c0_60, %c0_61] : memref<8x8x128xf32, #tpu.memory_space<vmem>>, vector<1x8x128xf32>
    %332 = vector.shape_cast %331 : vector<1x8x128xf32> to vector<8x128xf32>
    %333 = vector.shape_cast %329 : vector<8x128xf32> to vector<1x8x128xf32>
    tpu.vector_store %arg7[%330, %c0_60, %c0_61], %333 {strides = array<i32>} : memref<8x8x128xf32, #tpu.memory_space<vmem>>, vector<1x8x128xf32>,
    %cst_62 = arith.constant 0.000000e+00 : f32
    %334 = vector.broadcast %cst_62 : f32 to vector<8x128xf32>
    %335 = arith.cmpf oge, %323, %334 : vector<8x128xf32>
    %c128_i32 = arith.constant 128 : i32
    %336 = vector.broadcast %c128_i32 : i32 to vector<8x128xi32>
    %337 = arith.select %335, %8, %336 : vector<8x128xi1>, vector<8x128xi32>
    %cst_63 = arith.constant dense<2147483647> : vector<8xi32>
    %338 = vector.multi_reduction <minsi>, %337, %cst_63 [1] : vector<8x128xi32> to vector<8xi32>
    %339 = vector.shape_cast %338 : vector<8xi32> to vector<8x1xi32>
    %340 = vector.broadcast %339 : vector<8x1xi32> to vector<8x128xi32>
    %341 = arith.cmpi eq, %8, %340 : vector<8x128xi32>
    %342 = arith.extui %341 : vector<8x128xi1> to vector<8x128xi32>
    %343 = arith.sitofp %342 : vector<8x128xi32> to vector<8x128xf32>
    %344 = arith.truncf %343 : vector<8x128xf32> to vector<8x128xbf16>
    %345 = vector.extract_strided_slice %317 {offsets = [0, 0], sizes = [8, 128], strides = [1, 1]} : vector<8x256xf32> to vector<8x128xf32>
    %c1_i32_64 = arith.constant 1 : i32
    %cst_65 = arith.constant dense<0.000000e+00> : vector<8x128xf32>
    %346 = tpu.matmul %344, %3, %cst_65 {dimension_numbers = #tpu.dot_dimension_numbers<[1], [0], [0], [1], [0, 0, 1, 1], [], []>} : vector<8x128xbf16>, vector<128x128xbf16>, vector<8x128xf32> -> vector<8x128xf32>
    %347 = arith.addf %346, %345 : vector<8x128xf32>
    %348 = arith.negf %347 : vector<8x128xf32>
    %349 = math.exp %348 : vector<8x128xf32>
    %cst_66 = arith.constant 1.000000e+00 : f32
    %350 = vector.broadcast %cst_66 : f32 to vector<8x128xf32>
    %351 = arith.addf %350, %349 : vector<8x128xf32>
    %352 = arith.divf %350, %351 : vector<8x128xf32>
    %353 = math.tanh %347 : vector<8x128xf32>
    %354 = vector.extract_strided_slice %352 {offsets = [0, 0], sizes = [8, 32], strides = [1, 1]} : vector<8x128xf32> to vector<8x32xf32>
    %355 = vector.extract_strided_slice %352 {offsets = [0, 32], sizes = [8, 32], strides = [1, 1]} : vector<8x128xf32> to vector<8x32xf32>
    %356 = vector.extract_strided_slice %353 {offsets = [0, 64], sizes = [8, 32], strides = [1, 1]} : vector<8x128xf32> to vector<8x32xf32>
    %357 = vector.extract_strided_slice %352 {offsets = [0, 96], sizes = [8, 32], strides = [1, 1]} : vector<8x128xf32> to vector<8x32xf32>
    %358 = arith.mulf %355, %313 : vector<8x32xf32>
    %359 = arith.mulf %354, %356 : vector<8x32xf32>
    %360 = arith.addf %358, %359 : vector<8x32xf32>
    %361 = math.tanh %360 : vector<8x32xf32>
    %362 = arith.mulf %357, %361 : vector<8x32xf32>
    %363 = arith.truncf %362 : vector<8x32xf32> to vector<8x32xbf16>
    %cst_67 = arith.constant dense<0.000000e+00> : vector<8x256xf32>
    %364 = tpu.matmul %363, %4, %cst_67 {dimension_numbers = #tpu.dot_dimension_numbers<[1], [0], [0], [1], [0, 0, 1, 1], [], []>} : vector<8x32xbf16>, vector<32x256xbf16>, vector<8x256xf32> -> vector<8x256xf32>
    %365 = vector.extract_strided_slice %364 {offsets = [0, 128], sizes = [8, 128], strides = [1, 1]} : vector<8x256xf32> to vector<8x128xf32>
    %366 = arith.addf %365, %7 : vector<8x128xf32>
    %cst_68 = arith.constant dense<0xFF800000> : vector<8xf32>
    %367 = vector.multi_reduction <maximumf>, %366, %cst_68 [1] : vector<8x128xf32> to vector<8xf32>
    %368 = vector.shape_cast %367 : vector<8xf32> to vector<8x1xf32>
    %369 = vector.broadcast %368 : vector<8x1xf32> to vector<8x128xf32>
    %370 = arith.subf %366, %369 : vector<8x128xf32>
    %371 = math.exp %370 : vector<8x128xf32>
    %cst_69 = arith.constant dense<0.000000e+00> : vector<8xf32>
    %372 = vector.multi_reduction <add>, %371, %cst_69 [1] : vector<8x128xf32> to vector<8xf32>
    %373 = vector.shape_cast %372 : vector<8xf32> to vector<8x1xf32>
    %374 = math.log %373 : vector<8x1xf32>
    %375 = vector.broadcast %374 : vector<8x1xf32> to vector<8x128xf32>
    %376 = arith.subf %370, %375 : vector<8x128xf32>
    %377 = arith.index_cast %c1_i32_64 : i32 to index
    %c0_70 = arith.constant 0 : index
    %c0_71 = arith.constant 0 : index
    %378 = vector.load %arg7[%377, %c0_70, %c0_71] : memref<8x8x128xf32, #tpu.memory_space<vmem>>, vector<1x8x128xf32>
    %379 = vector.shape_cast %378 : vector<1x8x128xf32> to vector<8x128xf32>
    %380 = vector.shape_cast %376 : vector<8x128xf32> to vector<1x8x128xf32>
    tpu.vector_store %arg7[%377, %c0_70, %c0_71], %380 {strides = array<i32>} : memref<8x8x128xf32, #tpu.memory_space<vmem>>, vector<1x8x128xf32>,
    %cst_72 = arith.constant 0.000000e+00 : f32
    %381 = vector.broadcast %cst_72 : f32 to vector<8x128xf32>
    %382 = arith.cmpf oge, %370, %381 : vector<8x128xf32>
    %c128_i32_73 = arith.constant 128 : i32
    %383 = vector.broadcast %c128_i32_73 : i32 to vector<8x128xi32>
    %384 = arith.select %382, %8, %383 : vector<8x128xi1>, vector<8x128xi32>
    %cst_74 = arith.constant dense<2147483647> : vector<8xi32>
    %385 = vector.multi_reduction <minsi>, %384, %cst_74 [1] : vector<8x128xi32> to vector<8xi32>
    %386 = vector.shape_cast %385 : vector<8xi32> to vector<8x1xi32>
    %387 = vector.broadcast %386 : vector<8x1xi32> to vector<8x128xi32>
    %388 = arith.cmpi eq, %8, %387 : vector<8x128xi32>
    %389 = arith.extui %388 : vector<8x128xi1> to vector<8x128xi32>
    %390 = arith.sitofp %389 : vector<8x128xi32> to vector<8x128xf32>
    %391 = arith.truncf %390 : vector<8x128xf32> to vector<8x128xbf16>
    %392 = vector.extract_strided_slice %364 {offsets = [0, 0], sizes = [8, 128], strides = [1, 1]} : vector<8x256xf32> to vector<8x128xf32>
    %c2_i32_75 = arith.constant 2 : i32
    %cst_76 = arith.constant dense<0.000000e+00> : vector<8x128xf32>
    %393 = tpu.matmul %391, %3, %cst_76 {dimension_numbers = #tpu.dot_dimension_numbers<[1], [0], [0], [1], [0, 0, 1, 1], [], []>} : vector<8x128xbf16>, vector<128x128xbf16>, vector<8x128xf32> -> vector<8x128xf32>
    %394 = arith.addf %393, %392 : vector<8x128xf32>
    %395 = arith.negf %394 : vector<8x128xf32>
    %396 = math.exp %395 : vector<8x128xf32>
    %cst_77 = arith.constant 1.000000e+00 : f32
    %397 = vector.broadcast %cst_77 : f32 to vector<8x128xf32>
    %398 = arith.addf %397, %396 : vector<8x128xf32>
    %399 = arith.divf %397, %398 : vector<8x128xf32>
    %400 = math.tanh %394 : vector<8x128xf32>
    %401 = vector.extract_strided_slice %399 {offsets = [0, 0], sizes = [8, 32], strides = [1, 1]} : vector<8x128xf32> to vector<8x32xf32>
    %402 = vector.extract_strided_slice %399 {offsets = [0, 32], sizes = [8, 32], strides = [1, 1]} : vector<8x128xf32> to vector<8x32xf32>
    %403 = vector.extract_strided_slice %400 {offsets = [0, 64], sizes = [8, 32], strides = [1, 1]} : vector<8x128xf32> to vector<8x32xf32>
    %404 = vector.extract_strided_slice %399 {offsets = [0, 96], sizes = [8, 32], strides = [1, 1]} : vector<8x128xf32> to vector<8x32xf32>
    %405 = arith.mulf %402, %360 : vector<8x32xf32>
    %406 = arith.mulf %401, %403 : vector<8x32xf32>
    %407 = arith.addf %405, %406 : vector<8x32xf32>
    %408 = math.tanh %407 : vector<8x32xf32>
    %409 = arith.mulf %404, %408 : vector<8x32xf32>
    %410 = arith.truncf %409 : vector<8x32xf32> to vector<8x32xbf16>
    %cst_78 = arith.constant dense<0.000000e+00> : vector<8x256xf32>
    %411 = tpu.matmul %410, %4, %cst_78 {dimension_numbers = #tpu.dot_dimension_numbers<[1], [0], [0], [1], [0, 0, 1, 1], [], []>} : vector<8x32xbf16>, vector<32x256xbf16>, vector<8x256xf32> -> vector<8x256xf32>
    %412 = vector.extract_strided_slice %411 {offsets = [0, 128], sizes = [8, 128], strides = [1, 1]} : vector<8x256xf32> to vector<8x128xf32>
    %413 = arith.addf %412, %7 : vector<8x128xf32>
    %cst_79 = arith.constant dense<0xFF800000> : vector<8xf32>
    %414 = vector.multi_reduction <maximumf>, %413, %cst_79 [1] : vector<8x128xf32> to vector<8xf32>
    %415 = vector.shape_cast %414 : vector<8xf32> to vector<8x1xf32>
    %416 = vector.broadcast %415 : vector<8x1xf32> to vector<8x128xf32>
    %417 = arith.subf %413, %416 : vector<8x128xf32>
    %418 = math.exp %417 : vector<8x128xf32>
    %cst_80 = arith.constant dense<0.000000e+00> : vector<8xf32>
    %419 = vector.multi_reduction <add>, %418, %cst_80 [1] : vector<8x128xf32> to vector<8xf32>
    %420 = vector.shape_cast %419 : vector<8xf32> to vector<8x1xf32>
    %421 = math.log %420 : vector<8x1xf32>
    %422 = vector.broadcast %421 : vector<8x1xf32> to vector<8x128xf32>
    %423 = arith.subf %417, %422 : vector<8x128xf32>
    %424 = arith.index_cast %c2_i32_75 : i32 to index
    %c0_81 = arith.constant 0 : index
    %c0_82 = arith.constant 0 : index
    %425 = vector.load %arg7[%424, %c0_81, %c0_82] : memref<8x8x128xf32, #tpu.memory_space<vmem>>, vector<1x8x128xf32>
    %426 = vector.shape_cast %425 : vector<1x8x128xf32> to vector<8x128xf32>
    %427 = vector.shape_cast %423 : vector<8x128xf32> to vector<1x8x128xf32>
    tpu.vector_store %arg7[%424, %c0_81, %c0_82], %427 {strides = array<i32>} : memref<8x8x128xf32, #tpu.memory_space<vmem>>, vector<1x8x128xf32>,
    %cst_83 = arith.constant 0.000000e+00 : f32
    %428 = vector.broadcast %cst_83 : f32 to vector<8x128xf32>
    %429 = arith.cmpf oge, %417, %428 : vector<8x128xf32>
    %c128_i32_84 = arith.constant 128 : i32
    %430 = vector.broadcast %c128_i32_84 : i32 to vector<8x128xi32>
    %431 = arith.select %429, %8, %430 : vector<8x128xi1>, vector<8x128xi32>
    %cst_85 = arith.constant dense<2147483647> : vector<8xi32>
    %432 = vector.multi_reduction <minsi>, %431, %cst_85 [1] : vector<8x128xi32> to vector<8xi32>
    %433 = vector.shape_cast %432 : vector<8xi32> to vector<8x1xi32>
    %434 = vector.broadcast %433 : vector<8x1xi32> to vector<8x128xi32>
    %435 = arith.cmpi eq, %8, %434 : vector<8x128xi32>
    %436 = arith.extui %435 : vector<8x128xi1> to vector<8x128xi32>
    %437 = arith.sitofp %436 : vector<8x128xi32> to vector<8x128xf32>
    %438 = arith.truncf %437 : vector<8x128xf32> to vector<8x128xbf16>
    %439 = vector.extract_strided_slice %411 {offsets = [0, 0], sizes = [8, 128], strides = [1, 1]} : vector<8x256xf32> to vector<8x128xf32>
    %c3_i32_86 = arith.constant 3 : i32
    %cst_87 = arith.constant dense<0.000000e+00> : vector<8x128xf32>
    %440 = tpu.matmul %438, %3, %cst_87 {dimension_numbers = #tpu.dot_dimension_numbers<[1], [0], [0], [1], [0, 0, 1, 1], [], []>} : vector<8x128xbf16>, vector<128x128xbf16>, vector<8x128xf32> -> vector<8x128xf32>
    %441 = arith.addf %440, %439 : vector<8x128xf32>
    %442 = arith.negf %441 : vector<8x128xf32>
    %443 = math.exp %442 : vector<8x128xf32>
    %cst_88 = arith.constant 1.000000e+00 : f32
    %444 = vector.broadcast %cst_88 : f32 to vector<8x128xf32>
    %445 = arith.addf %444, %443 : vector<8x128xf32>
    %446 = arith.divf %444, %445 : vector<8x128xf32>
    %447 = math.tanh %441 : vector<8x128xf32>
    %448 = vector.extract_strided_slice %446 {offsets = [0, 0], sizes = [8, 32], strides = [1, 1]} : vector<8x128xf32> to vector<8x32xf32>
    %449 = vector.extract_strided_slice %446 {offsets = [0, 32], sizes = [8, 32], strides = [1, 1]} : vector<8x128xf32> to vector<8x32xf32>
    %450 = vector.extract_strided_slice %447 {offsets = [0, 64], sizes = [8, 32], strides = [1, 1]} : vector<8x128xf32> to vector<8x32xf32>
    %451 = vector.extract_strided_slice %446 {offsets = [0, 96], sizes = [8, 32], strides = [1, 1]} : vector<8x128xf32> to vector<8x32xf32>
    %452 = arith.mulf %449, %407 : vector<8x32xf32>
    %453 = arith.mulf %448, %450 : vector<8x32xf32>
    %454 = arith.addf %452, %453 : vector<8x32xf32>
    %455 = math.tanh %454 : vector<8x32xf32>
    %456 = arith.mulf %451, %455 : vector<8x32xf32>
    %457 = arith.truncf %456 : vector<8x32xf32> to vector<8x32xbf16>
    %cst_89 = arith.constant dense<0.000000e+00> : vector<8x256xf32>
    %458 = tpu.matmul %457, %4, %cst_89 {dimension_numbers = #tpu.dot_dimension_numbers<[1], [0], [0], [1], [0, 0, 1, 1], [], []>} : vector<8x32xbf16>, vector<32x256xbf16>, vector<8x256xf32> -> vector<8x256xf32>
    %459 = vector.extract_strided_slice %458 {offsets = [0, 128], sizes = [8, 128], strides = [1, 1]} : vector<8x256xf32> to vector<8x128xf32>
    %460 = arith.addf %459, %7 : vector<8x128xf32>
    %cst_90 = arith.constant dense<0xFF800000> : vector<8xf32>
    %461 = vector.multi_reduction <maximumf>, %460, %cst_90 [1] : vector<8x128xf32> to vector<8xf32>
    %462 = vector.shape_cast %461 : vector<8xf32> to vector<8x1xf32>
    %463 = vector.broadcast %462 : vector<8x1xf32> to vector<8x128xf32>
    %464 = arith.subf %460, %463 : vector<8x128xf32>
    %465 = math.exp %464 : vector<8x128xf32>
    %cst_91 = arith.constant dense<0.000000e+00> : vector<8xf32>
    %466 = vector.multi_reduction <add>, %465, %cst_91 [1] : vector<8x128xf32> to vector<8xf32>
    %467 = vector.shape_cast %466 : vector<8xf32> to vector<8x1xf32>
    %468 = math.log %467 : vector<8x1xf32>
    %469 = vector.broadcast %468 : vector<8x1xf32> to vector<8x128xf32>
    %470 = arith.subf %464, %469 : vector<8x128xf32>
    %471 = arith.index_cast %c3_i32_86 : i32 to index
    %c0_92 = arith.constant 0 : index
    %c0_93 = arith.constant 0 : index
    %472 = vector.load %arg7[%471, %c0_92, %c0_93] : memref<8x8x128xf32, #tpu.memory_space<vmem>>, vector<1x8x128xf32>
    %473 = vector.shape_cast %472 : vector<1x8x128xf32> to vector<8x128xf32>
    %474 = vector.shape_cast %470 : vector<8x128xf32> to vector<1x8x128xf32>
    tpu.vector_store %arg7[%471, %c0_92, %c0_93], %474 {strides = array<i32>} : memref<8x8x128xf32, #tpu.memory_space<vmem>>, vector<1x8x128xf32>,
    %cst_94 = arith.constant 0.000000e+00 : f32
    %475 = vector.broadcast %cst_94 : f32 to vector<8x128xf32>
    %476 = arith.cmpf oge, %464, %475 : vector<8x128xf32>
    %c128_i32_95 = arith.constant 128 : i32
    %477 = vector.broadcast %c128_i32_95 : i32 to vector<8x128xi32>
    %478 = arith.select %476, %8, %477 : vector<8x128xi1>, vector<8x128xi32>
    %cst_96 = arith.constant dense<2147483647> : vector<8xi32>
    %479 = vector.multi_reduction <minsi>, %478, %cst_96 [1] : vector<8x128xi32> to vector<8xi32>
    %480 = vector.shape_cast %479 : vector<8xi32> to vector<8x1xi32>
    %481 = vector.broadcast %480 : vector<8x1xi32> to vector<8x128xi32>
    %482 = arith.cmpi eq, %8, %481 : vector<8x128xi32>
    %483 = arith.extui %482 : vector<8x128xi1> to vector<8x128xi32>
    %484 = arith.sitofp %483 : vector<8x128xi32> to vector<8x128xf32>
    %485 = arith.truncf %484 : vector<8x128xf32> to vector<8x128xbf16>
    %486 = vector.extract_strided_slice %458 {offsets = [0, 0], sizes = [8, 128], strides = [1, 1]} : vector<8x256xf32> to vector<8x128xf32>
    %c4_i32_97 = arith.constant 4 : i32
    %cst_98 = arith.constant dense<0.000000e+00> : vector<8x128xf32>
    %487 = tpu.matmul %485, %3, %cst_98 {dimension_numbers = #tpu.dot_dimension_numbers<[1], [0], [0], [1], [0, 0, 1, 1], [], []>} : vector<8x128xbf16>, vector<128x128xbf16>, vector<8x128xf32> -> vector<8x128xf32>
    %488 = arith.addf %487, %486 : vector<8x128xf32>
    %489 = arith.negf %488 : vector<8x128xf32>
    %490 = math.exp %489 : vector<8x128xf32>
    %cst_99 = arith.constant 1.000000e+00 : f32
    %491 = vector.broadcast %cst_99 : f32 to vector<8x128xf32>
    %492 = arith.addf %491, %490 : vector<8x128xf32>
    %493 = arith.divf %491, %492 : vector<8x128xf32>
    %494 = math.tanh %488 : vector<8x128xf32>
    %495 = vector.extract_strided_slice %493 {offsets = [0, 0], sizes = [8, 32], strides = [1, 1]} : vector<8x128xf32> to vector<8x32xf32>
    %496 = vector.extract_strided_slice %493 {offsets = [0, 32], sizes = [8, 32], strides = [1, 1]} : vector<8x128xf32> to vector<8x32xf32>
    %497 = vector.extract_strided_slice %494 {offsets = [0, 64], sizes = [8, 32], strides = [1, 1]} : vector<8x128xf32> to vector<8x32xf32>
    %498 = vector.extract_strided_slice %493 {offsets = [0, 96], sizes = [8, 32], strides = [1, 1]} : vector<8x128xf32> to vector<8x32xf32>
    %499 = arith.mulf %496, %454 : vector<8x32xf32>
    %500 = arith.mulf %495, %497 : vector<8x32xf32>
    %501 = arith.addf %499, %500 : vector<8x32xf32>
    %502 = math.tanh %501 : vector<8x32xf32>
    %503 = arith.mulf %498, %502 : vector<8x32xf32>
    %504 = arith.truncf %503 : vector<8x32xf32> to vector<8x32xbf16>
    %cst_100 = arith.constant dense<0.000000e+00> : vector<8x256xf32>
    %505 = tpu.matmul %504, %4, %cst_100 {dimension_numbers = #tpu.dot_dimension_numbers<[1], [0], [0], [1], [0, 0, 1, 1], [], []>} : vector<8x32xbf16>, vector<32x256xbf16>, vector<8x256xf32> -> vector<8x256xf32>
    %506 = vector.extract_strided_slice %505 {offsets = [0, 128], sizes = [8, 128], strides = [1, 1]} : vector<8x256xf32> to vector<8x128xf32>
    %507 = arith.addf %506, %7 : vector<8x128xf32>
    %cst_101 = arith.constant dense<0xFF800000> : vector<8xf32>
    %508 = vector.multi_reduction <maximumf>, %507, %cst_101 [1] : vector<8x128xf32> to vector<8xf32>
    %509 = vector.shape_cast %508 : vector<8xf32> to vector<8x1xf32>
    %510 = vector.broadcast %509 : vector<8x1xf32> to vector<8x128xf32>
    %511 = arith.subf %507, %510 : vector<8x128xf32>
    %512 = math.exp %511 : vector<8x128xf32>
    %cst_102 = arith.constant dense<0.000000e+00> : vector<8xf32>
    %513 = vector.multi_reduction <add>, %512, %cst_102 [1] : vector<8x128xf32> to vector<8xf32>
    %514 = vector.shape_cast %513 : vector<8xf32> to vector<8x1xf32>
    %515 = math.log %514 : vector<8x1xf32>
    %516 = vector.broadcast %515 : vector<8x1xf32> to vector<8x128xf32>
    %517 = arith.subf %511, %516 : vector<8x128xf32>
    %518 = arith.index_cast %c4_i32_97 : i32 to index
    %c0_103 = arith.constant 0 : index
    %c0_104 = arith.constant 0 : index
    %519 = vector.load %arg7[%518, %c0_103, %c0_104] : memref<8x8x128xf32, #tpu.memory_space<vmem>>, vector<1x8x128xf32>
    %520 = vector.shape_cast %519 : vector<1x8x128xf32> to vector<8x128xf32>
    %521 = vector.shape_cast %517 : vector<8x128xf32> to vector<1x8x128xf32>
    tpu.vector_store %arg7[%518, %c0_103, %c0_104], %521 {strides = array<i32>} : memref<8x8x128xf32, #tpu.memory_space<vmem>>, vector<1x8x128xf32>,
    %cst_105 = arith.constant 0.000000e+00 : f32
    %522 = vector.broadcast %cst_105 : f32 to vector<8x128xf32>
    %523 = arith.cmpf oge, %511, %522 : vector<8x128xf32>
    %c128_i32_106 = arith.constant 128 : i32
    %524 = vector.broadcast %c128_i32_106 : i32 to vector<8x128xi32>
    %525 = arith.select %523, %8, %524 : vector<8x128xi1>, vector<8x128xi32>
    %cst_107 = arith.constant dense<2147483647> : vector<8xi32>
    %526 = vector.multi_reduction <minsi>, %525, %cst_107 [1] : vector<8x128xi32> to vector<8xi32>
    %527 = vector.shape_cast %526 : vector<8xi32> to vector<8x1xi32>
    %528 = vector.broadcast %527 : vector<8x1xi32> to vector<8x128xi32>
    %529 = arith.cmpi eq, %8, %528 : vector<8x128xi32>
    %530 = arith.extui %529 : vector<8x128xi1> to vector<8x128xi32>
    %531 = arith.sitofp %530 : vector<8x128xi32> to vector<8x128xf32>
    %532 = arith.truncf %531 : vector<8x128xf32> to vector<8x128xbf16>
    %533 = vector.extract_strided_slice %505 {offsets = [0, 0], sizes = [8, 128], strides = [1, 1]} : vector<8x256xf32> to vector<8x128xf32>
    %c5_i32_108 = arith.constant 5 : i32
    %cst_109 = arith.constant dense<0.000000e+00> : vector<8x128xf32>
    %534 = tpu.matmul %532, %3, %cst_109 {dimension_numbers = #tpu.dot_dimension_numbers<[1], [0], [0], [1], [0, 0, 1, 1], [], []>} : vector<8x128xbf16>, vector<128x128xbf16>, vector<8x128xf32> -> vector<8x128xf32>
    %535 = arith.addf %534, %533 : vector<8x128xf32>
    %536 = arith.negf %535 : vector<8x128xf32>
    %537 = math.exp %536 : vector<8x128xf32>
    %cst_110 = arith.constant 1.000000e+00 : f32
    %538 = vector.broadcast %cst_110 : f32 to vector<8x128xf32>
    %539 = arith.addf %538, %537 : vector<8x128xf32>
    %540 = arith.divf %538, %539 : vector<8x128xf32>
    %541 = math.tanh %535 : vector<8x128xf32>
    %542 = vector.extract_strided_slice %540 {offsets = [0, 0], sizes = [8, 32], strides = [1, 1]} : vector<8x128xf32> to vector<8x32xf32>
    %543 = vector.extract_strided_slice %540 {offsets = [0, 32], sizes = [8, 32], strides = [1, 1]} : vector<8x128xf32> to vector<8x32xf32>
    %544 = vector.extract_strided_slice %541 {offsets = [0, 64], sizes = [8, 32], strides = [1, 1]} : vector<8x128xf32> to vector<8x32xf32>
    %545 = vector.extract_strided_slice %540 {offsets = [0, 96], sizes = [8, 32], strides = [1, 1]} : vector<8x128xf32> to vector<8x32xf32>
    %546 = arith.mulf %543, %501 : vector<8x32xf32>
    %547 = arith.mulf %542, %544 : vector<8x32xf32>
    %548 = arith.addf %546, %547 : vector<8x32xf32>
    %549 = math.tanh %548 : vector<8x32xf32>
    %550 = arith.mulf %545, %549 : vector<8x32xf32>
    %551 = arith.truncf %550 : vector<8x32xf32> to vector<8x32xbf16>
    %cst_111 = arith.constant dense<0.000000e+00> : vector<8x256xf32>
    %552 = tpu.matmul %551, %4, %cst_111 {dimension_numbers = #tpu.dot_dimension_numbers<[1], [0], [0], [1], [0, 0, 1, 1], [], []>} : vector<8x32xbf16>, vector<32x256xbf16>, vector<8x256xf32> -> vector<8x256xf32>
    %553 = vector.extract_strided_slice %552 {offsets = [0, 128], sizes = [8, 128], strides = [1, 1]} : vector<8x256xf32> to vector<8x128xf32>
    %554 = arith.addf %553, %7 : vector<8x128xf32>
    %cst_112 = arith.constant dense<0xFF800000> : vector<8xf32>
    %555 = vector.multi_reduction <maximumf>, %554, %cst_112 [1] : vector<8x128xf32> to vector<8xf32>
    %556 = vector.shape_cast %555 : vector<8xf32> to vector<8x1xf32>
    %557 = vector.broadcast %556 : vector<8x1xf32> to vector<8x128xf32>
    %558 = arith.subf %554, %557 : vector<8x128xf32>
    %559 = math.exp %558 : vector<8x128xf32>
    %cst_113 = arith.constant dense<0.000000e+00> : vector<8xf32>
    %560 = vector.multi_reduction <add>, %559, %cst_113 [1] : vector<8x128xf32> to vector<8xf32>
    %561 = vector.shape_cast %560 : vector<8xf32> to vector<8x1xf32>
    %562 = math.log %561 : vector<8x1xf32>
    %563 = vector.broadcast %562 : vector<8x1xf32> to vector<8x128xf32>
    %564 = arith.subf %558, %563 : vector<8x128xf32>
    %565 = arith.index_cast %c5_i32_108 : i32 to index
    %c0_114 = arith.constant 0 : index
    %c0_115 = arith.constant 0 : index
    %566 = vector.load %arg7[%565, %c0_114, %c0_115] : memref<8x8x128xf32, #tpu.memory_space<vmem>>, vector<1x8x128xf32>
    %567 = vector.shape_cast %566 : vector<1x8x128xf32> to vector<8x128xf32>
    %568 = vector.shape_cast %564 : vector<8x128xf32> to vector<1x8x128xf32>
    tpu.vector_store %arg7[%565, %c0_114, %c0_115], %568 {strides = array<i32>} : memref<8x8x128xf32, #tpu.memory_space<vmem>>, vector<1x8x128xf32>,
    %cst_116 = arith.constant 0.000000e+00 : f32
    %569 = vector.broadcast %cst_116 : f32 to vector<8x128xf32>
    %570 = arith.cmpf oge, %558, %569 : vector<8x128xf32>
    %c128_i32_117 = arith.constant 128 : i32
    %571 = vector.broadcast %c128_i32_117 : i32 to vector<8x128xi32>
    %572 = arith.select %570, %8, %571 : vector<8x128xi1>, vector<8x128xi32>
    %cst_118 = arith.constant dense<2147483647> : vector<8xi32>
    %573 = vector.multi_reduction <minsi>, %572, %cst_118 [1] : vector<8x128xi32> to vector<8xi32>
    %574 = vector.shape_cast %573 : vector<8xi32> to vector<8x1xi32>
    %575 = vector.broadcast %574 : vector<8x1xi32> to vector<8x128xi32>
    %576 = arith.cmpi eq, %8, %575 : vector<8x128xi32>
    %577 = arith.extui %576 : vector<8x128xi1> to vector<8x128xi32>
    %578 = arith.sitofp %577 : vector<8x128xi32> to vector<8x128xf32>
    %579 = arith.truncf %578 : vector<8x128xf32> to vector<8x128xbf16>
    %580 = vector.extract_strided_slice %552 {offsets = [0, 0], sizes = [8, 128], strides = [1, 1]} : vector<8x256xf32> to vector<8x128xf32>
    %c6_i32_119 = arith.constant 6 : i32
    %cst_120 = arith.constant dense<0.000000e+00> : vector<8x128xf32>
    %581 = tpu.matmul %579, %3, %cst_120 {dimension_numbers = #tpu.dot_dimension_numbers<[1], [0], [0], [1], [0, 0, 1, 1], [], []>} : vector<8x128xbf16>, vector<128x128xbf16>, vector<8x128xf32> -> vector<8x128xf32>
    %582 = arith.addf %581, %580 : vector<8x128xf32>
    %583 = arith.negf %582 : vector<8x128xf32>
    %584 = math.exp %583 : vector<8x128xf32>
    %cst_121 = arith.constant 1.000000e+00 : f32
    %585 = vector.broadcast %cst_121 : f32 to vector<8x128xf32>
    %586 = arith.addf %585, %584 : vector<8x128xf32>
    %587 = arith.divf %585, %586 : vector<8x128xf32>
    %588 = math.tanh %582 : vector<8x128xf32>
    %589 = vector.extract_strided_slice %587 {offsets = [0, 0], sizes = [8, 32], strides = [1, 1]} : vector<8x128xf32> to vector<8x32xf32>
    %590 = vector.extract_strided_slice %587 {offsets = [0, 32], sizes = [8, 32], strides = [1, 1]} : vector<8x128xf32> to vector<8x32xf32>
    %591 = vector.extract_strided_slice %588 {offsets = [0, 64], sizes = [8, 32], strides = [1, 1]} : vector<8x128xf32> to vector<8x32xf32>
    %592 = vector.extract_strided_slice %587 {offsets = [0, 96], sizes = [8, 32], strides = [1, 1]} : vector<8x128xf32> to vector<8x32xf32>
    %593 = arith.mulf %590, %548 : vector<8x32xf32>
    %594 = arith.mulf %589, %591 : vector<8x32xf32>
    %595 = arith.addf %593, %594 : vector<8x32xf32>
    %596 = math.tanh %595 : vector<8x32xf32>
    %597 = arith.mulf %592, %596 : vector<8x32xf32>
    %598 = arith.truncf %597 : vector<8x32xf32> to vector<8x32xbf16>
    %cst_122 = arith.constant dense<0.000000e+00> : vector<8x256xf32>
    %599 = tpu.matmul %598, %4, %cst_122 {dimension_numbers = #tpu.dot_dimension_numbers<[1], [0], [0], [1], [0, 0, 1, 1], [], []>} : vector<8x32xbf16>, vector<32x256xbf16>, vector<8x256xf32> -> vector<8x256xf32>
    %600 = vector.extract_strided_slice %599 {offsets = [0, 128], sizes = [8, 128], strides = [1, 1]} : vector<8x256xf32> to vector<8x128xf32>
    %601 = arith.addf %600, %7 : vector<8x128xf32>
    %cst_123 = arith.constant dense<0xFF800000> : vector<8xf32>
    %602 = vector.multi_reduction <maximumf>, %601, %cst_123 [1] : vector<8x128xf32> to vector<8xf32>
    %603 = vector.shape_cast %602 : vector<8xf32> to vector<8x1xf32>
    %604 = vector.broadcast %603 : vector<8x1xf32> to vector<8x128xf32>
    %605 = arith.subf %601, %604 : vector<8x128xf32>
    %606 = math.exp %605 : vector<8x128xf32>
    %cst_124 = arith.constant dense<0.000000e+00> : vector<8xf32>
    %607 = vector.multi_reduction <add>, %606, %cst_124 [1] : vector<8x128xf32> to vector<8xf32>
    %608 = vector.shape_cast %607 : vector<8xf32> to vector<8x1xf32>
    %609 = math.log %608 : vector<8x1xf32>
    %610 = vector.broadcast %609 : vector<8x1xf32> to vector<8x128xf32>
    %611 = arith.subf %605, %610 : vector<8x128xf32>
    %612 = arith.index_cast %c6_i32_119 : i32 to index
    %c0_125 = arith.constant 0 : index
    %c0_126 = arith.constant 0 : index
    %613 = vector.load %arg7[%612, %c0_125, %c0_126] : memref<8x8x128xf32, #tpu.memory_space<vmem>>, vector<1x8x128xf32>
    %614 = vector.shape_cast %613 : vector<1x8x128xf32> to vector<8x128xf32>
    %615 = vector.shape_cast %611 : vector<8x128xf32> to vector<1x8x128xf32>
    tpu.vector_store %arg7[%612, %c0_125, %c0_126], %615 {strides = array<i32>} : memref<8x8x128xf32, #tpu.memory_space<vmem>>, vector<1x8x128xf32>,
    %cst_127 = arith.constant 0.000000e+00 : f32
    %616 = vector.broadcast %cst_127 : f32 to vector<8x128xf32>
    %617 = arith.cmpf oge, %605, %616 : vector<8x128xf32>
    %c128_i32_128 = arith.constant 128 : i32
    %618 = vector.broadcast %c128_i32_128 : i32 to vector<8x128xi32>
    %619 = arith.select %617, %8, %618 : vector<8x128xi1>, vector<8x128xi32>
    %cst_129 = arith.constant dense<2147483647> : vector<8xi32>
    %620 = vector.multi_reduction <minsi>, %619, %cst_129 [1] : vector<8x128xi32> to vector<8xi32>
    %621 = vector.shape_cast %620 : vector<8xi32> to vector<8x1xi32>
    %622 = vector.broadcast %621 : vector<8x1xi32> to vector<8x128xi32>
    %623 = arith.cmpi eq, %8, %622 : vector<8x128xi32>
    %624 = arith.extui %623 : vector<8x128xi1> to vector<8x128xi32>
    %625 = arith.sitofp %624 : vector<8x128xi32> to vector<8x128xf32>
    %626 = arith.truncf %625 : vector<8x128xf32> to vector<8x128xbf16>
    %627 = vector.extract_strided_slice %599 {offsets = [0, 0], sizes = [8, 128], strides = [1, 1]} : vector<8x256xf32> to vector<8x128xf32>
    %c7_i32_130 = arith.constant 7 : i32
    %cst_131 = arith.constant dense<0.000000e+00> : vector<8x128xf32>
    %628 = tpu.matmul %626, %3, %cst_131 {dimension_numbers = #tpu.dot_dimension_numbers<[1], [0], [0], [1], [0, 0, 1, 1], [], []>} : vector<8x128xbf16>, vector<128x128xbf16>, vector<8x128xf32> -> vector<8x128xf32>
    %629 = arith.addf %628, %627 : vector<8x128xf32>
    %630 = arith.negf %629 : vector<8x128xf32>
    %631 = math.exp %630 : vector<8x128xf32>
    %cst_132 = arith.constant 1.000000e+00 : f32
    %632 = vector.broadcast %cst_132 : f32 to vector<8x128xf32>
    %633 = arith.addf %632, %631 : vector<8x128xf32>
    %634 = arith.divf %632, %633 : vector<8x128xf32>
    %635 = math.tanh %629 : vector<8x128xf32>
    %636 = vector.extract_strided_slice %634 {offsets = [0, 0], sizes = [8, 32], strides = [1, 1]} : vector<8x128xf32> to vector<8x32xf32>
    %637 = vector.extract_strided_slice %634 {offsets = [0, 32], sizes = [8, 32], strides = [1, 1]} : vector<8x128xf32> to vector<8x32xf32>
    %638 = vector.extract_strided_slice %635 {offsets = [0, 64], sizes = [8, 32], strides = [1, 1]} : vector<8x128xf32> to vector<8x32xf32>
    %639 = vector.extract_strided_slice %634 {offsets = [0, 96], sizes = [8, 32], strides = [1, 1]} : vector<8x128xf32> to vector<8x32xf32>
    %640 = arith.mulf %637, %595 : vector<8x32xf32>
    %641 = arith.mulf %636, %638 : vector<8x32xf32>
    %642 = arith.addf %640, %641 : vector<8x32xf32>
    %643 = math.tanh %642 : vector<8x32xf32>
    %644 = arith.mulf %639, %643 : vector<8x32xf32>
    %645 = arith.truncf %644 : vector<8x32xf32> to vector<8x32xbf16>
    %cst_133 = arith.constant dense<0.000000e+00> : vector<8x256xf32>
    %646 = tpu.matmul %645, %4, %cst_133 {dimension_numbers = #tpu.dot_dimension_numbers<[1], [0], [0], [1], [0, 0, 1, 1], [], []>} : vector<8x32xbf16>, vector<32x256xbf16>, vector<8x256xf32> -> vector<8x256xf32>
    %647 = vector.extract_strided_slice %646 {offsets = [0, 128], sizes = [8, 128], strides = [1, 1]} : vector<8x256xf32> to vector<8x128xf32>
    %648 = arith.addf %647, %7 : vector<8x128xf32>
    %cst_134 = arith.constant dense<0xFF800000> : vector<8xf32>
    %649 = vector.multi_reduction <maximumf>, %648, %cst_134 [1] : vector<8x128xf32> to vector<8xf32>
    %650 = vector.shape_cast %649 : vector<8xf32> to vector<8x1xf32>
    %651 = vector.broadcast %650 : vector<8x1xf32> to vector<8x128xf32>
    %652 = arith.subf %648, %651 : vector<8x128xf32>
    %653 = math.exp %652 : vector<8x128xf32>
    %cst_135 = arith.constant dense<0.000000e+00> : vector<8xf32>
    %654 = vector.multi_reduction <add>, %653, %cst_135 [1] : vector<8x128xf32> to vector<8xf32>
    %655 = vector.shape_cast %654 : vector<8xf32> to vector<8x1xf32>
    %656 = math.log %655 : vector<8x1xf32>
    %657 = vector.broadcast %656 : vector<8x1xf32> to vector<8x128xf32>
    %658 = arith.subf %652, %657 : vector<8x128xf32>
    %659 = arith.index_cast %c7_i32_130 : i32 to index
    %c0_136 = arith.constant 0 : index
    %c0_137 = arith.constant 0 : index
    %660 = vector.load %arg7[%659, %c0_136, %c0_137] : memref<8x8x128xf32, #tpu.memory_space<vmem>>, vector<1x8x128xf32>
    %661 = vector.shape_cast %660 : vector<1x8x128xf32> to vector<8x128xf32>
    %662 = vector.shape_cast %658 : vector<8x128xf32> to vector<1x8x128xf32>
    tpu.vector_store %arg7[%659, %c0_136, %c0_137], %662 {strides = array<i32>} : memref<8x8x128xf32, #tpu.memory_space<vmem>>, vector<1x8x128xf32>,
    %cst_138 = arith.constant 0.000000e+00 : f32
    %663 = vector.broadcast %cst_138 : f32 to vector<8x128xf32>
    %664 = arith.cmpf oge, %652, %663 : vector<8x128xf32>
    %c128_i32_139 = arith.constant 128 : i32
    %665 = vector.broadcast %c128_i32_139 : i32 to vector<8x128xi32>
    %666 = arith.select %664, %8, %665 : vector<8x128xi1>, vector<8x128xi32>
    %cst_140 = arith.constant dense<2147483647> : vector<8xi32>
    %667 = vector.multi_reduction <minsi>, %666, %cst_140 [1] : vector<8x128xi32> to vector<8xi32>
    %668 = vector.shape_cast %667 : vector<8xi32> to vector<8x1xi32>
    %669 = vector.broadcast %668 : vector<8x1xi32> to vector<8x128xi32>
    %670 = arith.cmpi eq, %8, %669 : vector<8x128xi32>
    %671 = arith.extui %670 : vector<8x128xi1> to vector<8x128xi32>
    %672 = arith.sitofp %671 : vector<8x128xi32> to vector<8x128xf32>
    %673 = arith.truncf %672 : vector<8x128xf32> to vector<8x128xbf16>
    %674 = vector.extract_strided_slice %646 {offsets = [0, 0], sizes = [8, 128], strides = [1, 1]} : vector<8x256xf32> to vector<8x128xf32>
    %c8_i32_141 = arith.constant 8 : i32
    return
  }
}

</mosaic_0001>

<bundles_post_ra>
// kernel: seq2seq_forward.1
= control target key start
LH: loop header
LB: loop body
LE: loop exit
PB: predicated region body
PF: predicated region fallthrough
CT: control target
= control target key end

     0   :  { %v3328_v0 = vmov 0   ;;  %v3329_v2 = vmov 0.0   ;;  %vm3330_vm0 = vmmov 0   ;;  %v75_v13 = vlaneseq  ;;  %s3333_s24 = smov 32   ;;  %s4230_s1 = inlined_call_operand.vmem [shape: s32[8,8,1], index: 1, kind: input, shape index: {}]   ;;  %s4231_s3 = inlined_call_operand.vmem [shape: bf16[32,128], index: 3, kind: input, shape index: {}]   ;;  %s4232_s2 = inlined_call_operand.vmem [shape: bf16[128,128], index: 2, kind: input, shape index: {}]   ;;  %s4233_s0 = inlined_call_operand.vmem [shape: s32[8,1], index: 0, kind: input, shape index: {}]   ;;  %s4234_s5 = inlined_call_operand.vmem [shape: bf16[32,256], index: 5, kind: input, shape index: {}]   ;;  %s4235_s4 = inlined_call_operand.vmem [shape: bf16[128,128], index: 4, kind: input, shape index: {}]   ;;  %s4236_s6 = inlined_call_operand.vmem [shape: f32[1,128], index: 6, kind: input, shape index: {}]   ;;  %s4237_s7 = inlined_call_operand.vmem [shape: f32[8,8,128], index: 7, kind: output, shape index: {}]  }
   0x1   :  { %3129 = vset.pattern.permute.xlu0 %v3328_v0  ;;  %v77_v1 = vld [vmem:[%s4230_s1] sm:$0xff]  ;;  %2703 = vmatprep.subr.bf16.mxu0 %v3329_v2  ;;  %v3392_v4 = vld [vmem:[%s4231_s3 + $0x8] sm:$0xff]   ;;  %v3422_v7 = vld [vmem:[%s4232_s2 + $0x10] sm:$0xff]   ;;  %v3331_v16 = vmov 1.0|1.0   ;;  %vm97_vm5 = vcmask 261120  }
   0x2   :  { %79 = vperm.xlu0 %3129, %v77_v1   ;;  %v3382_v3 = vld [vmem:[%s4231_s3] sm:$0xff]   ;;  %2707 = vmatprep.mubr.msk.bf16.mxu0 %vm3330_vm0, %v3329_v2  ;;  %v3413_v6 = vld [vmem:[%s4232_s2 + $0x8] sm:$0xff]   ;;  %v3429_v8 = vld [vmem:[%s4232_s2 + $0x18] sm:$0xff]   ;;  %v3462_v14 = vand.u32 127, %v75_v13 }
   0x3   :  { %3130 = vset.pattern.permute.xlu1 %v3328_v0  ;;  %2731 = vmatprep.subr.bf16.mxu1 %v3329_v2  ;;  %v3403_v5 = vld [vmem:[%s4232_s2] sm:$0xff]   ;;  %v3443_v10 = vld [vmem:[%s4232_s2 + $0x28] sm:$0xff]   ;;  %v3450_v11 = vld [vmem:[%s4232_s2 + $0x30] sm:$0xff]  }
   0x4   :  { %2704 = vmatpush3.bf16.msra.mxu0 %v3382_v3  ;;  %2732 = vmatpush3.bf16.msra.mxu1 %v3382_v3  ;;  %v3436_v9 = vld [vmem:[%s4232_s2 + $0x20] sm:$0xff]   ;;  %v3457_v12 = vld [vmem:[%s4232_s2 + $0x38] sm:$0xff]   ;;  %s3332_s2 = smov 64   ;;  %v2433_v34 = vld [vmem:[%s4230_s1 + $0x8] sm:$0xff] }
   0x5   :  { %2705 = vmatprep.subr.bf16.mxu0 %v3329_v2  ;;  %2733 = vmatprep.subr.bf16.mxu1 %v3329_v2  ;;  %v3476_v25 = vld [vmem:[%s4233_s0] sm:$0xff]  ;;  %v2439_v59 = vld [vmem:[%s4230_s1 + $0x10] sm:$0xff] }
   0x6   :  { %2735 = vmatprep.mubr.msk.bf16.mxu1 %vm3330_vm0, %v3329_v2  ;;  %vm253_vm3 = vcmp.gt.s32.totalorder %v3476_v25, 0  ;;  %vm381_vm8 = vcmp.gt.s32.totalorder %v3476_v25, 1  ;;  %vm509_vm12 = vcmp.gt.s32.totalorder %v3476_v25, 2 }
   0x7   :  { %v254_v29 = vsel %vm253_vm3, 1, %v3328_v0  ;;  %v382_v47 = vsel %vm381_vm8, 1, %v3328_v0 }
   0x8   :  { %2706 = vmatpush3.bf16.msra.mxu0 %v3392_v4  ;;  %2734 = vmatpush3.bf16.msra.mxu1 %v3392_v4 }
   0x9   :  { %2711 = vmatprep.subr.bf16.mxu0 %v3329_v2  ;;  %2739 = vmatprep.subr.bf16.mxu1 %v3329_v2 }
   0xb   :  { %2708 = vmatmul.mubr.bf16.vlgmr.msra.gmra.mrb[0].mxu0 %v3328_v0 }
   0xc   :  { %2712 = vmatpush3.bf16.msra.mxu0 %v3403_v5  ;;  %2727 = vmatprep.mubr.msk.bf16.mxu0 %vm3330_vm0, %v3329_v2 }
   0xd   :  { %2713 = vmatprep.subr.bf16.mxu0 %v3329_v2 }
  0x10   :  { %2714 = vmatpush3.bf16.msra.mxu0 %v3413_v6 }
  0x11   :  { %2715 = vmatprep.subr.bf16.mxu0 %v3329_v2 }
  0x14   :  { %2716 = vmatpush3.bf16.msra.mxu0 %v3422_v7 }
  0x15   :  { %2717 = vmatprep.subr.bf16.mxu0 %v3329_v2 }
  0x18   :  { %2718 = vmatpush3.bf16.msra.mxu0 %v3429_v8 }
  0x19   :  { %2719 = vmatprep.subr.bf16.mxu0 %v3329_v2 }
  0x1c   :  { %2720 = vmatpush3.bf16.msra.mxu0 %v3436_v9 }
  0x1d   :  { %2721 = vmatprep.subr.bf16.mxu0 %v3329_v2 }
  0x20   :  { %2722 = vmatpush3.bf16.msra.mxu0 %v3443_v10 }
  0x21   :  { %2723 = vmatprep.subr.bf16.mxu0 %v3329_v2 }
  0x24   :  { %2724 = vmatpush3.bf16.msra.mxu0 %v3450_v11 }
  0x25   :  { %2725 = vmatprep.subr.bf16.mxu0 %v3329_v2 }
  0x28   :  { %2726 = vmatpush3.bf16.msra.mxu0 %v3457_v12 }
  0x29   :  { %2759 = vmatprep.subr.bf16.mxu0 %v3329_v2 }
  0x81   :  { %v80_v15 = vpop.permute.xlu0 %79 }
  0x82   :  { %vm81_vm1 = vcmp.eq.s32.totalorder %v3462_v14, %v80_v15 }
  0x83   :  { %vm2430_vm2 = vmpackc.low %vm81_vm1, %vm81_vm1  ;;  %vm637_vm1 = vcmp.gt.s32.totalorder %v3476_v25, 3 }
  0x84   :  { %2728 = vmatmul.mubr.msk.bf16.vlgmr.msra.gmra.mrb[0].mxu0 %vm2430_vm2, %v3331_v16 }
  0x85   :  { %2760 = vmatpush3.bf16.msra.mxu0 %v3382_v3  ;;  %2763 = vmatprep.mubr.msk.bf16.mxu0 %vm3330_vm0, %v3329_v2 }
  0x86   :  { %2761 = vmatprep.subr.bf16.mxu0 %v3329_v2 }
  0x89   :  { %2762 = vmatpush3.bf16.msra.mxu0 %v3392_v4 }
  0x8a   :  { %2767 = vmatprep.subr.bf16.mxu0 %v3329_v2 }
 0x157   :  { %v223_v17 = vpop.f32.mrb[0].mxu0 }
 0x158   :  { %3155 = vtanh.f32 %v223_v17  ;;  %v2729_v18 = vpop.f32.mrb[1].mxu0  ;;  %v2432_v22 = vmul.f32 -1.442695, %v223_v17 }
 0x159   :  { %v226_v19 = vpop.f32.mrb[2].mxu0 }
 0x15a   :  { %v2730_v20 = vpop.f32.mrb[3].mxu0  ;;  %3157 = vpow2.f32 %v2432_v22  ;;  %v510_v22 = vsel %vm509_vm12, 1, %v3328_v0 }
 0x162   :  { %v3156_v21 = vpop.eup %3155 }
 0x163   :  { %238 = vrot.lane.b32.xlu0 %v3156_v21, %s3332_s2 }
 0x164   :  { %v3158_v23 = vpop.eup %3157 }
 0x165   :  { %v232_v24 = vadd.f32 1.0, %v3158_v23 }
 0x167   :  { %3159 = vrcp.f32 %v232_v24 }
 0x171   :  { %v3160_v26 = vpop.eup %3159 }
 0x172   :  { %v236_v30 = vmul.f32 0.0, %v3160_v26 }
 0x1d5   :  { %v239_v27 = vpop.permute.xlu0 %238 }
 0x1d6   :  { %v241_v28 = vmul.f32 %v3160_v26, %v239_v27 }
 0x1d8   :  { %243 = vrot.lane.b32.xlu1 %v241_v28, %s3333_s24 }
 0x1dc   :  { %256 = vperm.xlu1 %3130, %v254_v29  }
 0x24a   :  { %v244_v31 = vpop.permute.xlu1 %243 }
 0x24b   :  { %v246_v32 = vadd.f32 %v244_v31, %v236_v30 }
 0x24d   :  { %3161 = vtanh.f32 %v246_v32 }
 0x257   :  { %v3162_v33 = vpop.eup %3161 }
 0x258   :  { %249 = vrot.lane.b32.xlu0 %v3162_v33, %s3332_s2 }
 0x25b   :  { %v257_v35 = vpop.permute.xlu1 %256 }
 0x25c   :  { %264 = vperm.xlu0 %3129, %v2433_v34   ;;  %vm258_vm4 = vcmp.eq.s32.totalorder %v257_v35, 1  ;;  %v2445_v35 = vld [vmem:[%s4230_s1 + $0x18] sm:$0xff] }
 0x25d   :  { %v3523_v54 = vsel %vm258_vm4, %v246_v32, 0.0 }
 0x2ca   :  { %v250_v36 = vpop.permute.xlu0 %249 }
 0x2cb   :  { %v252_v37 = vmul.f32 %v3160_v26, %v250_v36 }
 0x2cd   :  { %v3486_v38 = vsel %vm258_vm4, %v252_v37, 0.0 }
 0x2ce   :  { %v270_v39 = vpack.c.bf16 %v3486_v38, %v3486_v38 }
 0x2d0   :  { %272 = vrot.lane.b32.xlu1 %v270_v39, %s3333_s24 }
 0x2db   :  { %v265_v41 = vpop.permute.xlu0 %264 }
 0x2dc   :  { %vm266_vm6 = vcmp.eq.s32.totalorder %v3462_v14, %v265_v41 }
 0x2dd   :  { %vm2436_vm7 = vmpackc.low %vm266_vm6, %vm266_vm6  ;;  %vm765_vm6 = vcmp.gt.s32.totalorder %v3476_v25, 4 }
 0x342   :  { %v273_v40 = vpop.permute.xlu1 %272 }
 0x343   :  { %2736 = vmatmul.mubr.msk.bf16.vlgmr.msra.gmra.mrb[0].mxu1 %vm97_vm5, %v273_v40 }
 0x344   :  { %2740 = vmatpush3.bf16.msra.mxu1 %v3403_v5  ;;  %2755 = vmatprep.mubr.msk.bf16.mxu1 %vm3330_vm0, %v3329_v2 }
 0x345   :  { %2741 = vmatprep.subr.bf16.mxu1 %v3329_v2 }
 0x348   :  { %2742 = vmatpush3.bf16.msra.mxu1 %v3413_v6 }
 0x349   :  { %2743 = vmatprep.subr.bf16.mxu1 %v3329_v2 }
 0x34c   :  { %2744 = vmatpush3.bf16.msra.mxu1 %v3422_v7 }
 0x34d   :  { %2745 = vmatprep.subr.bf16.mxu1 %v3329_v2 }
 0x350   :  { %2746 = vmatpush3.bf16.msra.mxu1 %v3429_v8 }
 0x351   :  { %2747 = vmatprep.subr.bf16.mxu1 %v3329_v2 }
 0x354   :  { %2748 = vmatpush3.bf16.msra.mxu1 %v3436_v9 }
 0x355   :  { %2749 = vmatprep.subr.bf16.mxu1 %v3329_v2 }
 0x358   :  { %2750 = vmatpush3.bf16.msra.mxu1 %v3443_v10 }
 0x359   :  { %2751 = vmatprep.subr.bf16.mxu1 %v3329_v2 }
 0x35c   :  { %2752 = vmatpush3.bf16.msra.mxu1 %v3450_v11 }
 0x35d   :  { %2753 = vmatprep.subr.bf16.mxu1 %v3329_v2 }
 0x360   :  { %2754 = vmatpush3.bf16.msra.mxu1 %v3457_v12 }
 0x361   :  { %2787 = vmatprep.subr.bf16.mxu1 %v3329_v2 }
 0x363   :  { %2756 = vmatmul.mubr.msk.bf16.vlgmr.msra.gmra.mrb[0].mxu1 %vm2436_vm7, %v3331_v16 }
 0x364   :  { %2788 = vmatpush3.bf16.msra.mxu1 %v3382_v3  ;;  %2791 = vmatprep.mubr.msk.bf16.mxu1 %vm3330_vm0, %v3329_v2 }
 0x365   :  { %2789 = vmatprep.subr.bf16.mxu1 %v3329_v2 }
 0x368   :  { %2790 = vmatpush3.bf16.msra.mxu1 %v3392_v4 }
 0x369   :  { %2795 = vmatprep.subr.bf16.mxu1 %v3329_v2 }
 0x436   :  { %v351_v42 = vpop.f32.mrb[0].mxu1 }
 0x437   :  { %3163 = vtanh.f32 %v351_v42  ;;  %v2757_v43 = vpop.f32.mrb[1].mxu1  ;;  %v2438_v48 = vmul.f32 -1.442695, %v351_v42 }
 0x438   :  { %v354_v44 = vpop.f32.mrb[2].mxu1 }
 0x439   :  { %v2758_v45 = vpop.f32.mrb[3].mxu1  ;;  %3165 = vpow2.f32 %v2438_v48  ;;  %v638_v48 = vsel %vm637_vm1, 1, %v3328_v0 }
 0x441   :  { %v3164_v46 = vpop.eup %3163 }
 0x442   :  { %366 = vrot.lane.b32.xlu1 %v3164_v46, %s3332_s2 }
 0x443   :  { %v3166_v49 = vpop.eup %3165 }
 0x444   :  { %v360_v50 = vadd.f32 1.0, %v3166_v49 }
 0x446   :  { %384 = vperm.xlu1 %3130, %v382_v47   ;;  %3167 = vrcp.f32 %v360_v50 }
 0x450   :  { %v3168_v51 = vpop.eup %3167 }
 0x451   :  { %v364_v55 = vmul.f32 %v3168_v51, %v3523_v54 }
 0x4b4   :  { %v367_v52 = vpop.permute.xlu1 %366 }
 0x4b5   :  { %v369_v53 = vmul.f32 %v3168_v51, %v367_v52 }
 0x4b7   :  { %371 = vrot.lane.b32.xlu0 %v369_v53, %s3333_s24 }
 0x4c5   :  { %v385_v60 = vpop.permute.xlu1 %384 }
 0x4c6   :  { %vm386_vm9 = vcmp.eq.s32.totalorder %v385_v60, 1  ;;  %v2451_v60 = vld [vmem:[%s4230_s1 + $0x20] sm:$0xff] }
 0x529   :  { %v372_v56 = vpop.permute.xlu0 %371 }
 0x52a   :  { %v374_v57 = vadd.f32 %v372_v56, %v364_v55 }
 0x52c   :  { %3169 = vtanh.f32 %v374_v57  ;;  %v3570_v30 = vsel %vm386_vm9, %v374_v57, %v3523_v54 }
 0x536   :  { %v3170_v58 = vpop.eup %3169 }
 0x537   :  { %377 = vrot.lane.b32.xlu0 %v3170_v58, %s3332_s2 }
 0x53b   :  { %392 = vperm.xlu0 %3129, %v2439_v59  }
 0x5a9   :  { %v378_v61 = vpop.permute.xlu0 %377 }
 0x5aa   :  { %v380_v62 = vmul.f32 %v3168_v51, %v378_v61 }
 0x5ac   :  { %v3532_v63 = vsel %vm386_vm9, %v380_v62, %v3486_v38 }
 0x5ad   :  { %v398_v1 = vpack.c.bf16 %v3532_v63, %v3532_v63 }
 0x5af   :  { %400 = vrot.lane.b32.xlu1 %v398_v1, %s3333_s24 }
 0x5ba   :  { %v393_v15 = vpop.permute.xlu0 %392 }
 0x5bb   :  { %vm394_vm10 = vcmp.eq.s32.totalorder %v3462_v14, %v393_v15 }
 0x5bc   :  { %vm2442_vm11 = vmpackc.low %vm394_vm10, %vm394_vm10  ;;  %vm893_vm10 = vcmp.gt.s32.totalorder %v3476_v25, 5 }
 0x621   :  { %v401_v13 = vpop.permute.xlu1 %400 }
 0x622   :  { %2764 = vmatmul.mubr.msk.bf16.vlgmr.msra.gmra.mrb[4].mxu0 %vm97_vm5, %v401_v13 }
 0x623   :  { %2768 = vmatpush3.bf16.msra.mxu0 %v3403_v5  ;;  %2783 = vmatprep.mubr.msk.bf16.mxu0 %vm3330_vm0, %v3329_v2 }
 0x624   :  { %2769 = vmatprep.subr.bf16.mxu0 %v3329_v2 }
 0x627   :  { %2770 = vmatpush3.bf16.msra.mxu0 %v3413_v6 }
 0x628   :  { %2771 = vmatprep.subr.bf16.mxu0 %v3329_v2 }
 0x62b   :  { %2772 = vmatpush3.bf16.msra.mxu0 %v3422_v7 }
 0x62c   :  { %2773 = vmatprep.subr.bf16.mxu0 %v3329_v2 }
 0x62f   :  { %2774 = vmatpush3.bf16.msra.mxu0 %v3429_v8 }
 0x630   :  { %2775 = vmatprep.subr.bf16.mxu0 %v3329_v2 }
 0x633   :  { %2776 = vmatpush3.bf16.msra.mxu0 %v3436_v9 }
 0x634   :  { %2777 = vmatprep.subr.bf16.mxu0 %v3329_v2 }
 0x637   :  { %2778 = vmatpush3.bf16.msra.mxu0 %v3443_v10 }
 0x638   :  { %2779 = vmatprep.subr.bf16.mxu0 %v3329_v2 }
 0x63b   :  { %2780 = vmatpush3.bf16.msra.mxu0 %v3450_v11 }
 0x63c   :  { %2781 = vmatprep.subr.bf16.mxu0 %v3329_v2 }
 0x63f   :  { %2782 = vmatpush3.bf16.msra.mxu0 %v3457_v12 }
 0x640   :  { %2815 = vmatprep.subr.bf16.mxu0 %v3329_v2 }
 0x642   :  { %2784 = vmatmul.mubr.msk.bf16.vlgmr.msra.gmra.mrb[4].mxu0 %vm2442_vm11, %v3331_v16 }
 0x643   :  { %2816 = vmatpush3.bf16.msra.mxu0 %v3382_v3  ;;  %2819 = vmatprep.mubr.msk.bf16.mxu0 %vm3330_vm0, %v3329_v2 }
 0x644   :  { %2817 = vmatprep.subr.bf16.mxu0 %v3329_v2 }
 0x647   :  { %2818 = vmatpush3.bf16.msra.mxu0 %v3392_v4 }
 0x648   :  { %2823 = vmatprep.subr.bf16.mxu0 %v3329_v2 }
 0x715   :  { %v479_v17 = vpop.f32.mrb[4].mxu0 }
 0x716   :  { %3171 = vtanh.f32 %v479_v17  ;;  %v2785_v18 = vpop.f32.mrb[5].mxu0  ;;  %v2444_v23 = vmul.f32 -1.442695, %v479_v17 }
 0x717   :  { %v482_v19 = vpop.f32.mrb[6].mxu0 }
 0x718   :  { %v2786_v20 = vpop.f32.mrb[7].mxu0  ;;  %3173 = vpow2.f32 %v2444_v23  ;;  %v766_v23 = vsel %vm765_vm6, 1, %v3328_v0  ;;  %vm1224_vm6 = vcmp.eq.s32.totalorder %v3462_v14, 1 }
 0x720   :  { %v3172_v21 = vpop.eup %3171 }
 0x721   :  { %494 = vrot.lane.b32.xlu1 %v3172_v21, %s3332_s2 }
 0x722   :  { %v3174_v24 = vpop.eup %3173 }
 0x723   :  { %v488_v26 = vadd.f32 1.0, %v3174_v24 }
 0x725   :  { %512 = vperm.xlu1 %3130, %v510_v22   ;;  %3175 = vrcp.f32 %v488_v26 }
 0x72f   :  { %v3176_v27 = vpop.eup %3175 }
 0x730   :  { %v492_v31 = vmul.f32 %v3176_v27, %v3570_v30 }
 0x793   :  { %v495_v28 = vpop.permute.xlu1 %494 }
 0x794   :  { %v497_v29 = vmul.f32 %v3176_v27, %v495_v28 }
 0x796   :  { %499 = vrot.lane.b32.xlu0 %v497_v29, %s3333_s24 }
 0x7a4   :  { %v513_v36 = vpop.permute.xlu1 %512 }
 0x7a5   :  { %vm514_vm13 = vcmp.eq.s32.totalorder %v513_v36, 1  ;;  %v2457_v36 = vld [vmem:[%s4230_s1 + $0x28] sm:$0xff] }
 0x808   :  { %v500_v32 = vpop.permute.xlu0 %499 }
 0x809   :  { %v502_v33 = vadd.f32 %v500_v32, %v492_v31 }
 0x80b   :  { %3177 = vtanh.f32 %v502_v33  ;;  %v3617_v55 = vsel %vm514_vm13, %v502_v33, %v3570_v30 }
 0x815   :  { %v3178_v34 = vpop.eup %3177 }
 0x816   :  { %505 = vrot.lane.b32.xlu0 %v3178_v34, %s3332_s2 }
 0x81a   :  { %520 = vperm.xlu0 %3129, %v2445_v35  }
 0x888   :  { %v506_v37 = vpop.permute.xlu0 %505 }
 0x889   :  { %v508_v38 = vmul.f32 %v3176_v27, %v506_v37 }
 0x88b   :  { %v3579_v39 = vsel %vm514_vm13, %v508_v38, %v3532_v63 }
 0x88c   :  { %v526_v40 = vpack.c.bf16 %v3579_v39, %v3579_v39 }
 0x88e   :  { %528 = vrot.lane.b32.xlu1 %v526_v40, %s3333_s24 }
 0x899   :  { %v521_v42 = vpop.permute.xlu0 %520 }
 0x89a   :  { %vm522_vm14 = vcmp.eq.s32.totalorder %v3462_v14, %v521_v42 }
 0x89b   :  { %vm2448_vm15 = vmpackc.low %vm522_vm14, %vm522_vm14  ;;  %vm1021_vm14 = vcmp.gt.s32.totalorder %v3476_v25, 6 }
 0x900   :  { %v529_v41 = vpop.permute.xlu1 %528 }
 0x901   :  { %2792 = vmatmul.mubr.msk.bf16.vlgmr.msra.gmra.mrb[4].mxu1 %vm97_vm5, %v529_v41 }
 0x902   :  { %2796 = vmatpush3.bf16.msra.mxu1 %v3403_v5  ;;  %2811 = vmatprep.mubr.msk.bf16.mxu1 %vm3330_vm0, %v3329_v2 }
 0x903   :  { %2797 = vmatprep.subr.bf16.mxu1 %v3329_v2 }
 0x906   :  { %2798 = vmatpush3.bf16.msra.mxu1 %v3413_v6 }
 0x907   :  { %2799 = vmatprep.subr.bf16.mxu1 %v3329_v2 }
 0x90a   :  { %2800 = vmatpush3.bf16.msra.mxu1 %v3422_v7 }
 0x90b   :  { %2801 = vmatprep.subr.bf16.mxu1 %v3329_v2 }
 0x90e   :  { %2802 = vmatpush3.bf16.msra.mxu1 %v3429_v8 }
 0x90f   :  { %2803 = vmatprep.subr.bf16.mxu1 %v3329_v2 }
 0x912   :  { %2804 = vmatpush3.bf16.msra.mxu1 %v3436_v9 }
 0x913   :  { %2805 = vmatprep.subr.bf16.mxu1 %v3329_v2 }
 0x916   :  { %2806 = vmatpush3.bf16.msra.mxu1 %v3443_v10 }
 0x917   :  { %2807 = vmatprep.subr.bf16.mxu1 %v3329_v2 }
 0x91a   :  { %2808 = vmatpush3.bf16.msra.mxu1 %v3450_v11 }
 0x91b   :  { %2809 = vmatprep.subr.bf16.mxu1 %v3329_v2 }
 0x91e   :  { %2810 = vmatpush3.bf16.msra.mxu1 %v3457_v12 }
 0x91f   :  { %2843 = vmatprep.subr.bf16.mxu1 %v3329_v2 }
 0x921   :  { %2812 = vmatmul.mubr.msk.bf16.vlgmr.msra.gmra.mrb[4].mxu1 %vm2448_vm15, %v3331_v16 }
 0x922   :  { %2844 = vmatpush3.bf16.msra.mxu1 %v3382_v3  ;;  %2847 = vmatprep.mubr.msk.bf16.mxu1 %vm3330_vm0, %v3329_v2 }
 0x923   :  { %2845 = vmatprep.subr.bf16.mxu1 %v3329_v2 }
 0x926   :  { %2846 = vmatpush3.bf16.msra.mxu1 %v3392_v4 }
 0x927   :  { %2851 = vmatprep.subr.bf16.mxu1 %v3329_v2 }
 0x9f4   :  { %v607_v43 = vpop.f32.mrb[4].mxu1 }
 0x9f5   :  { %3179 = vtanh.f32 %v607_v43  ;;  %v2813_v44 = vpop.f32.mrb[5].mxu1  ;;  %v2450_v49 = vmul.f32 -1.442695, %v607_v43 }
 0x9f6   :  { %v610_v45 = vpop.f32.mrb[6].mxu1 }
 0x9f7   :  { %v2814_v46 = vpop.f32.mrb[7].mxu1  ;;  %3181 = vpow2.f32 %v2450_v49 }
 0x9ff   :  { %v3180_v47 = vpop.eup %3179 }
 0xa00   :  { %622 = vrot.lane.b32.xlu1 %v3180_v47, %s3332_s2 }
 0xa01   :  { %v3182_v50 = vpop.eup %3181 }
 0xa02   :  { %v616_v51 = vadd.f32 1.0, %v3182_v50 }
 0xa04   :  { %640 = vperm.xlu1 %3130, %v638_v48   ;;  %3183 = vrcp.f32 %v616_v51 }
 0xa0e   :  { %v3184_v52 = vpop.eup %3183 }
 0xa0f   :  { %v620_v56 = vmul.f32 %v3184_v52, %v3617_v55 }
 0xa72   :  { %v623_v53 = vpop.permute.xlu1 %622 }
 0xa73   :  { %v625_v54 = vmul.f32 %v3184_v52, %v623_v53 }
 0xa75   :  { %627 = vrot.lane.b32.xlu0 %v625_v54, %s3333_s24 }
 0xa83   :  { %v641_v61 = vpop.permute.xlu1 %640 }
 0xa84   :  { %vm642_vm2 = vcmp.eq.s32.totalorder %v641_v61, 1 }
 0xae7   :  { %v628_v57 = vpop.permute.xlu0 %627 }
 0xae8   :  { %v630_v58 = vadd.f32 %v628_v57, %v620_v56 }
 0xaea   :  { %3185 = vtanh.f32 %v630_v58  ;;  %v3664_v31 = vsel %vm642_vm2, %v630_v58, %v3617_v55 }
 0xaf4   :  { %v3186_v59 = vpop.eup %3185 }
 0xaf5   :  { %633 = vrot.lane.b32.xlu0 %v3186_v59, %s3332_s2  ;;  %v2463_v59 = vld [vmem:[%s4230_s1 + $0x30] sm:$0xff] }
 0xaf9   :  { %648 = vperm.xlu0 %3129, %v2451_v60  }
 0xb67   :  { %v634_v62 = vpop.permute.xlu0 %633 }
 0xb68   :  { %v636_v63 = vmul.f32 %v3184_v52, %v634_v62 }
 0xb6a   :  { %v3626_v1 = vsel %vm642_vm2, %v636_v63, %v3579_v39 }
 0xb6b   :  { %v654_v13 = vpack.c.bf16 %v3626_v1, %v3626_v1 }
 0xb6d   :  { %656 = vrot.lane.b32.xlu1 %v654_v13, %s3333_s24 }
 0xb78   :  { %v649_v17 = vpop.permute.xlu0 %648 }
 0xb79   :  { %vm650_vm3 = vcmp.eq.s32.totalorder %v3462_v14, %v649_v17 }
 0xb7a   :  { %vm2454_vm4 = vmpackc.low %vm650_vm3, %vm650_vm3  ;;  %vm1149_vm3 = vcmp.gt.s32.totalorder %v3476_v25, 7 }
 0xbdf   :  { %v657_v15 = vpop.permute.xlu1 %656 }
 0xbe0   :  { %2820 = vmatmul.mubr.msk.bf16.vlgmr.msra.gmra.mrb[8].mxu0 %vm97_vm5, %v657_v15 }
 0xbe1   :  { %2824 = vmatpush3.bf16.msra.mxu0 %v3403_v5  ;;  %2839 = vmatprep.mubr.msk.bf16.mxu0 %vm3330_vm0, %v3329_v2 }
 0xbe2   :  { %2825 = vmatprep.subr.bf16.mxu0 %v3329_v2 }
 0xbe5   :  { %2826 = vmatpush3.bf16.msra.mxu0 %v3413_v6 }
 0xbe6   :  { %2827 = vmatprep.subr.bf16.mxu0 %v3329_v2 }
 0xbe9   :  { %2828 = vmatpush3.bf16.msra.mxu0 %v3422_v7 }
 0xbea   :  { %2829 = vmatprep.subr.bf16.mxu0 %v3329_v2 }
 0xbed   :  { %2830 = vmatpush3.bf16.msra.mxu0 %v3429_v8 }
 0xbee   :  { %2831 = vmatprep.subr.bf16.mxu0 %v3329_v2 }
 0xbf1   :  { %2832 = vmatpush3.bf16.msra.mxu0 %v3436_v9 }
 0xbf2   :  { %2833 = vmatprep.subr.bf16.mxu0 %v3329_v2 }
 0xbf5   :  { %2834 = vmatpush3.bf16.msra.mxu0 %v3443_v10 }
 0xbf6   :  { %2835 = vmatprep.subr.bf16.mxu0 %v3329_v2 }
 0xbf9   :  { %2836 = vmatpush3.bf16.msra.mxu0 %v3450_v11 }
 0xbfa   :  { %2837 = vmatprep.subr.bf16.mxu0 %v3329_v2 }
 0xbfd   :  { %2838 = vmatpush3.bf16.msra.mxu0 %v3457_v12 }
 0xbfe   :  { %2871 = vmatprep.subr.bf16.mxu0 %v3329_v2 }
 0xc00   :  { %2840 = vmatmul.mubr.msk.bf16.vlgmr.msra.gmra.mrb[8].mxu0 %vm2454_vm4, %v3331_v16 }
 0xc01   :  { %2872 = vmatpush3.bf16.msra.mxu0 %v3382_v3  ;;  %2875 = vmatprep.mubr.msk.bf16.mxu0 %vm3330_vm0, %v3329_v2 }
 0xc02   :  { %2873 = vmatprep.subr.bf16.mxu0 %v3329_v2 }
 0xc05   :  { %2874 = vmatpush3.bf16.msra.mxu0 %v3392_v4 }
 0xc06   :  { %2879 = vmatprep.subr.bf16.mxu0 %v3329_v2 }
 0xcd3   :  { %v735_v18 = vpop.f32.mrb[8].mxu0 }
 0xcd4   :  { %3187 = vtanh.f32 %v735_v18  ;;  %v2841_v19 = vpop.f32.mrb[9].mxu0  ;;  %v2456_v24 = vmul.f32 -1.442695, %v735_v18 }
 0xcd5   :  { %v738_v20 = vpop.f32.mrb[10].mxu0 }
 0xcd6   :  { %v2842_v21 = vpop.f32.mrb[11].mxu0  ;;  %3189 = vpow2.f32 %v2456_v24 }
 0xcde   :  { %v3188_v22 = vpop.eup %3187 }
 0xcdf   :  { %750 = vrot.lane.b32.xlu1 %v3188_v22, %s3332_s2  ;;  %v1022_v22 = vsel %vm1021_vm14, 1, %v3328_v0 }
 0xce0   :  { %v3190_v26 = vpop.eup %3189 }
 0xce1   :  { %v744_v27 = vadd.f32 1.0, %v3190_v26 }
 0xce3   :  { %768 = vperm.xlu1 %3130, %v766_v23   ;;  %3191 = vrcp.f32 %v744_v27 }
 0xced   :  { %v3192_v28 = vpop.eup %3191 }
 0xcee   :  { %v748_v32 = vmul.f32 %v3192_v28, %v3664_v31 }
 0xd51   :  { %v751_v29 = vpop.permute.xlu1 %750 }
 0xd52   :  { %v753_v30 = vmul.f32 %v3192_v28, %v751_v29 }
 0xd54   :  { %755 = vrot.lane.b32.xlu0 %v753_v30, %s3333_s24 }
 0xd62   :  { %v769_v37 = vpop.permute.xlu1 %768 }
 0xd63   :  { %vm770_vm7 = vcmp.eq.s32.totalorder %v769_v37, 1 }
 0xdc6   :  { %v756_v33 = vpop.permute.xlu0 %755 }
 0xdc7   :  { %v758_v34 = vadd.f32 %v756_v33, %v748_v32 }
 0xdc9   :  { %3193 = vtanh.f32 %v758_v34  ;;  %v772_v54 = vsel %vm770_vm7, %v758_v34, %v3664_v31 }
 0xdd3   :  { %v3194_v35 = vpop.eup %3193 }
 0xdd4   :  { %761 = vrot.lane.b32.xlu0 %v3194_v35, %s3332_s2  ;;  %v2469_v35 = vld [vmem:[%s4230_s1 + $0x38] sm:$0xff] }
 0xdd8   :  { %776 = vperm.xlu0 %3129, %v2457_v36  }
 0xe46   :  { %v762_v38 = vpop.permute.xlu0 %761 }
 0xe47   :  { %v764_v39 = vmul.f32 %v3192_v28, %v762_v38 }
 0xe49   :  { %v3673_v40 = vsel %vm770_vm7, %v764_v39, %v3626_v1  ;;  %vm2489_vm7 = vmpackc.low %vm1224_vm6, %vm1224_vm6 }
 0xe4a   :  { %v782_v41 = vpack.c.bf16 %v3673_v40, %v3673_v40 }
 0xe4c   :  { %784 = vrot.lane.b32.xlu1 %v782_v41, %s3333_s24 }
 0xe57   :  { %v777_v43 = vpop.permute.xlu0 %776 }
 0xe58   :  { %vm778_vm8 = vcmp.eq.s32.totalorder %v3462_v14, %v777_v43 }
 0xe59   :  { %vm2460_vm9 = vmpackc.low %vm778_vm8, %vm778_vm8 }
 0xebe   :  { %v785_v42 = vpop.permute.xlu1 %784 }
 0xebf   :  { %2848 = vmatmul.mubr.msk.bf16.vlgmr.msra.gmra.mrb[8].mxu1 %vm97_vm5, %v785_v42 }
 0xec0   :  { %2852 = vmatpush3.bf16.msra.mxu1 %v3403_v5  ;;  %2867 = vmatprep.mubr.msk.bf16.mxu1 %vm3330_vm0, %v3329_v2 }
 0xec1   :  { %2853 = vmatprep.subr.bf16.mxu1 %v3329_v2 }
 0xec4   :  { %2854 = vmatpush3.bf16.msra.mxu1 %v3413_v6 }
 0xec5   :  { %2855 = vmatprep.subr.bf16.mxu1 %v3329_v2 }
 0xec8   :  { %2856 = vmatpush3.bf16.msra.mxu1 %v3422_v7 }
 0xec9   :  { %2857 = vmatprep.subr.bf16.mxu1 %v3329_v2 }
 0xecc   :  { %2858 = vmatpush3.bf16.msra.mxu1 %v3429_v8 }
 0xecd   :  { %2859 = vmatprep.subr.bf16.mxu1 %v3329_v2 }
 0xed0   :  { %2860 = vmatpush3.bf16.msra.mxu1 %v3436_v9 }
 0xed1   :  { %2861 = vmatprep.subr.bf16.mxu1 %v3329_v2 }
 0xed4   :  { %2862 = vmatpush3.bf16.msra.mxu1 %v3443_v10 }
 0xed5   :  { %2863 = vmatprep.subr.bf16.mxu1 %v3329_v2 }
 0xed8   :  { %2864 = vmatpush3.bf16.msra.mxu1 %v3450_v11 }
 0xed9   :  { %2865 = vmatprep.subr.bf16.mxu1 %v3329_v2 }
 0xedc   :  { %2866 = vmatpush3.bf16.msra.mxu1 %v3457_v12 }
 0xedd   :  { %2899 = vmatprep.subr.bf16.mxu1 %v3329_v2 }
 0xedf   :  { %2868 = vmatmul.mubr.msk.bf16.vlgmr.msra.gmra.mrb[8].mxu1 %vm2460_vm9, %v3331_v16 }
 0xee0   :  { %2900 = vmatpush3.bf16.msra.mxu1 %v3382_v3  ;;  %2903 = vmatprep.mubr.msk.bf16.mxu1 %vm3330_vm0, %v3329_v2  ;;  %v894_v3 = vsel %vm893_vm10, 1, %v3328_v0 }
 0xee1   :  { %2901 = vmatprep.subr.bf16.mxu1 %v3329_v2 }
 0xee4   :  { %2902 = vmatpush3.bf16.msra.mxu1 %v3392_v4 }
 0xee5   :  { %2907 = vmatprep.subr.bf16.mxu1 %v3329_v2 }
 0xfb2   :  { %v863_v44 = vpop.f32.mrb[8].mxu1 }
 0xfb3   :  { %3195 = vtanh.f32 %v863_v44  ;;  %v2869_v45 = vpop.f32.mrb[9].mxu1  ;;  %v2462_v49 = vmul.f32 -1.442695, %v863_v44 }
 0xfb4   :  { %v866_v46 = vpop.f32.mrb[10].mxu1 }
 0xfb5   :  { %v2870_v47 = vpop.f32.mrb[11].mxu1  ;;  %3197 = vpow2.f32 %v2462_v49  ;;  %v3789_v49 = vld [vmem:[%s4234_s5 + $0x4] ss:$8 sps:$4 sm:$0xff]  }
 0xfbd   :  { %v3196_v48 = vpop.eup %3195 }
 0xfbe   :  { %878 = vrot.lane.b32.xlu1 %v3196_v48, %s3332_s2 }
 0xfbf   :  { %v3198_v50 = vpop.eup %3197 }
 0xfc0   :  { %v872_v51 = vadd.f32 1.0, %v3198_v50  ;;  %v3794_v50 = vld [vmem:[%s4234_s5] ss:$8 sps:$4 sm:$0xff]  }
 0xfc2   :  { %896 = vperm.xlu1 %3130, %v894_v3   ;;  %3199 = vrcp.f32 %v872_v51  ;;  %v3800_v51 = vld [vmem:[%s4234_s5 + $0x14] ss:$8 sps:$4 sm:$0xff]  }
 0xfcc   :  { %v3200_v4 = vpop.eup %3199 }
 0xfcd   :  { %v876_v55 = vmul.f32 %v3200_v4, %v772_v54 }
0x1030   :  { %v879_v52 = vpop.permute.xlu1 %878 }
0x1031   :  { %v881_v53 = vmul.f32 %v3200_v4, %v879_v52 }
0x1033   :  { %883 = vrot.lane.b32.xlu0 %v881_v53, %s3333_s24 }
0x1041   :  { %v897_v60 = vpop.permute.xlu1 %896 }
0x1042   :  { %vm898_vm11 = vcmp.eq.s32.totalorder %v897_v60, 1  ;;  %v3830_v60 = vld [vmem:[%s4235_s4 + $0x8] sm:$0xff]  }
0x10a5   :  { %v884_v56 = vpop.permute.xlu0 %883 }
0x10a6   :  { %v886_v57 = vadd.f32 %v884_v56, %v876_v55 }
0x10a8   :  { %3201 = vtanh.f32 %v886_v57  ;;  %v900_v30 = vsel %vm898_vm11, %v886_v57, %v772_v54 }
0x10b2   :  { %v3202_v58 = vpop.eup %3201 }
0x10b3   :  { %889 = vrot.lane.b32.xlu0 %v3202_v58, %s3332_s2  ;;  %v3823_v58 = vld [vmem:[%s4235_s4] sm:$0xff]  }
0x10b7   :  { %904 = vperm.xlu0 %3129, %v2463_v59  }
0x1125   :  { %v890_v61 = vpop.permute.xlu0 %889 }
0x1126   :  { %v892_v62 = vmul.f32 %v3200_v4, %v890_v61  ;;  %v3807_v4 = vld [vmem:[%s4234_s5 + $0x10] ss:$8 sps:$4 sm:$0xff]  }
0x1127   :  { %v3839_v61 = vld [vmem:[%s4235_s4 + $0x10] sm:$0xff]  }
0x1128   :  { %v899_v63 = vsel %vm898_vm11, %v892_v62, %v3673_v40  ;;  %v3846_v62 = vld [vmem:[%s4235_s4 + $0x18] sm:$0xff]  }
0x1129   :  { %v910_v1 = vpack.c.bf16 %v899_v63, %v899_v63 }
0x112b   :  { %912 = vrot.lane.b32.xlu1 %v910_v1, %s3333_s24  ;;  %v3860_v1 = vld [vmem:[%s4235_s4 + $0x28] sm:$0xff]  }
0x1136   :  { %v905_v15 = vpop.permute.xlu0 %904 }
0x1137   :  { %vm906_vm12 = vcmp.eq.s32.totalorder %v3462_v14, %v905_v15  ;;  %v3874_v15 = vld [vmem:[%s4235_s4 + $0x38] sm:$0xff]  }
0x1138   :  { %vm2466_vm13 = vmpackc.low %vm906_vm12, %vm906_vm12 }
0x119d   :  { %v913_v13 = vpop.permute.xlu1 %912 }
0x119e   :  { %2876 = vmatmul.mubr.msk.bf16.vlgmr.msra.gmra.mrb[12].mxu0 %vm97_vm5, %v913_v13  ;;  %v3867_v13 = vld [vmem:[%s4235_s4 + $0x30] sm:$0xff]  }
0x119f   :  { %2880 = vmatpush3.bf16.msra.mxu0 %v3403_v5  ;;  %2895 = vmatprep.mubr.msk.bf16.mxu0 %vm3330_vm0, %v3329_v2 }
0x11a0   :  { %2881 = vmatprep.subr.bf16.mxu0 %v3329_v2 }
0x11a3   :  { %2882 = vmatpush3.bf16.msra.mxu0 %v3413_v6 }
0x11a4   :  { %2883 = vmatprep.subr.bf16.mxu0 %v3329_v2 }
0x11a7   :  { %2884 = vmatpush3.bf16.msra.mxu0 %v3422_v7 }
0x11a8   :  { %2885 = vmatprep.subr.bf16.mxu0 %v3329_v2 }
0x11ab   :  { %2886 = vmatpush3.bf16.msra.mxu0 %v3429_v8 }
0x11ac   :  { %2887 = vmatprep.subr.bf16.mxu0 %v3329_v2 }
0x11af   :  { %2888 = vmatpush3.bf16.msra.mxu0 %v3436_v9 }
0x11b0   :  { %2889 = vmatprep.subr.bf16.mxu0 %v3329_v2 }
0x11b3   :  { %2890 = vmatpush3.bf16.msra.mxu0 %v3443_v10 }
0x11b4   :  { %2891 = vmatprep.subr.bf16.mxu0 %v3329_v2 }
0x11b7   :  { %2892 = vmatpush3.bf16.msra.mxu0 %v3450_v11 }
0x11b8   :  { %2893 = vmatprep.subr.bf16.mxu0 %v3329_v2 }
0x11bb   :  { %2894 = vmatpush3.bf16.msra.mxu0 %v3457_v12 }
0x11bc   :  { %1184 = vmatprep.subr.bf16.mxu0 %v3789_v49 }
0x11be   :  { %2896 = vmatmul.mubr.msk.bf16.vlgmr.msra.gmra.mrb[12].mxu0 %vm2466_vm13, %v3331_v16 }
0x11bf   :  { %1216 = vmatprep.mubr.bf16.mxu0 %v3328_v0  ;;  %1185 = vmatpush1.bf16.msra.mxu0 %v3794_v50 }
0x11c0   :  { %1186 = vmatprep.subr.bf16.mxu0 %v3800_v51 }
0x11c3   :  { %1187 = vmatpush1.bf16.msra.mxu0 %v3807_v4 }
0x11c4   :  { %2927 = vmatprep.subr.bf16.mxu0 %v3329_v2 }
0x1291   :  { %v991_v17 = vpop.f32.mrb[12].mxu0 }
0x1292   :  { %3203 = vtanh.f32 %v991_v17  ;;  %v2897_v18 = vpop.f32.mrb[13].mxu0  ;;  %v2468_v23 = vmul.f32 -1.442695, %v991_v17 }
0x1293   :  { %v994_v19 = vpop.f32.mrb[14].mxu0 }
0x1294   :  { %v2898_v20 = vpop.f32.mrb[15].mxu0  ;;  %3205 = vpow2.f32 %v2468_v23 }
0x129c   :  { %v3204_v21 = vpop.eup %3203 }
0x129d   :  { %1006 = vrot.lane.b32.xlu1 %v3204_v21, %s3332_s2 }
0x129e   :  { %v3206_v24 = vpop.eup %3205 }
0x129f   :  { %v1000_v26 = vadd.f32 1.0, %v3206_v24 }
0x12a1   :  { %1024 = vperm.xlu1 %3130, %v1022_v22   ;;  %3207 = vrcp.f32 %v1000_v26 }
0x12ab   :  { %v3208_v27 = vpop.eup %3207 }
0x12ac   :  { %v1004_v31 = vmul.f32 %v3208_v27, %v900_v30 }
0x130f   :  { %v1007_v28 = vpop.permute.xlu1 %1006 }
0x1310   :  { %v1009_v29 = vmul.f32 %v3208_v27, %v1007_v28 }
0x1312   :  { %1011 = vrot.lane.b32.xlu0 %v1009_v29, %s3333_s24 }
0x1320   :  { %v1025_v36 = vpop.permute.xlu1 %1024 }
0x1321   :  { %vm1026_vm15 = vcmp.eq.s32.totalorder %v1025_v36, 1 }
0x1384   :  { %v1012_v32 = vpop.permute.xlu0 %1011 }
0x1385   :  { %v1014_v33 = vadd.f32 %v1012_v32, %v1004_v31 }
0x1387   :  { %3209 = vtanh.f32 %v1014_v33  ;;  %v3780_v47 = vsel %vm1026_vm15, %v1014_v33, %v900_v30 }
0x1391   :  { %v3210_v34 = vpop.eup %3209 }
0x1392   :  { %1017 = vrot.lane.b32.xlu0 %v3210_v34, %s3332_s2 }
0x1396   :  { %1032 = vperm.xlu0 %3129, %v2469_v35  }
0x1404   :  { %v1018_v37 = vpop.permute.xlu0 %1017 }
0x1405   :  { %v1020_v38 = vmul.f32 %v3208_v27, %v1018_v37 }
0x1407   :  { %v3749_v39 = vsel %vm1026_vm15, %v1020_v38, %v899_v63  ;;  %v3853_v63 = vld [vmem:[%s4235_s4 + $0x20] sm:$0xff]  }
0x1408   :  { %v1038_v40 = vpack.c.bf16 %v3749_v39, %v3749_v39  ;;  %v3918_v38 = vld [vmem:[%s4236_s6] ss:$0 sm:$0xff] }
0x140a   :  { %1040 = vrot.lane.b32.xlu1 %v1038_v40, %s3333_s24 }
0x147c   :  { %v1041_v41 = vpop.permute.xlu1 %1040 }
0x147d   :  { %2904 = vmatmul.mubr.msk.bf16.vlgmr.msra.gmra.mrb[12].mxu1 %vm97_vm5, %v1041_v41 }
0x147e   :  { %2908 = vmatpush3.bf16.msra.mxu1 %v3403_v5  ;;  %2923 = vmatprep.mubr.msk.bf16.mxu1 %vm3330_vm0, %v3329_v2  ;;  %v1033_v5 = vpop.permute.xlu0 %1032 }
0x147f   :  { %2909 = vmatprep.subr.bf16.mxu1 %v3329_v2  ;;  %vm1034_vm1 = vcmp.eq.s32.totalorder %v3462_v14, %v1033_v5 }
0x1480   :  { %vm2472_vm2 = vmpackc.low %vm1034_vm1, %vm1034_vm1 }
0x1482   :  { %2910 = vmatpush3.bf16.msra.mxu1 %v3413_v6 }
0x1483   :  { %2911 = vmatprep.subr.bf16.mxu1 %v3329_v2 }
0x1486   :  { %2912 = vmatpush3.bf16.msra.mxu1 %v3422_v7 }
0x1487   :  { %2913 = vmatprep.subr.bf16.mxu1 %v3329_v2 }
0x148a   :  { %2914 = vmatpush3.bf16.msra.mxu1 %v3429_v8 }
0x148b   :  { %2915 = vmatprep.subr.bf16.mxu1 %v3329_v2 }
0x148e   :  { %2916 = vmatpush3.bf16.msra.mxu1 %v3436_v9 }
0x148f   :  { %2917 = vmatprep.subr.bf16.mxu1 %v3329_v2 }
0x1492   :  { %2918 = vmatpush3.bf16.msra.mxu1 %v3443_v10 }
0x1493   :  { %2919 = vmatprep.subr.bf16.mxu1 %v3329_v2 }
0x1496   :  { %2920 = vmatpush3.bf16.msra.mxu1 %v3450_v11  ;;  %v1150_v11 = vsel %vm1149_vm3, 1, %v3328_v0 }
0x1497   :  { %2921 = vmatprep.subr.bf16.mxu1 %v3329_v2 }
0x149a   :  { %2922 = vmatpush3.bf16.msra.mxu1 %v3457_v12 }
0x149b   :  { %1347 = vmatprep.subr.bf16.mxu1 %v3789_v49 }
0x149d   :  { %2924 = vmatmul.mubr.msk.bf16.vlgmr.msra.gmra.mrb[12].mxu1 %vm2472_vm2, %v3331_v16 }
0x149e   :  { %1379 = vmatprep.mubr.bf16.mxu1 %v3328_v0  ;;  %1348 = vmatpush1.bf16.msra.mxu1 %v3794_v50 }
0x149f   :  { %1349 = vmatprep.subr.bf16.mxu1 %v3800_v51 }
0x14a2   :  { %1350 = vmatpush1.bf16.msra.mxu1 %v3807_v4 }
0x14a3   :  { %2947 = vmatprep.subr.bf16.mxu1 %v3329_v2 }
0x1570   :  { %v1119_v6 = vpop.f32.mrb[12].mxu1 }
0x1571   :  { %3211 = vtanh.f32 %v1119_v6  ;;  %v2925_v7 = vpop.f32.mrb[13].mxu1  ;;  %v2474_v42 = vmul.f32 -1.442695, %v1119_v6 }
0x1572   :  { %v1122_v8 = vpop.f32.mrb[14].mxu1 }
0x1573   :  { %v2926_v9 = vpop.f32.mrb[15].mxu1  ;;  %3213 = vpow2.f32 %v2474_v42 }
0x157b   :  { %v3212_v10 = vpop.eup %3211 }
0x157c   :  { %1134 = vrot.lane.b32.xlu1 %v3212_v10, %s3332_s2 }
0x157d   :  { %v3214_v12 = vpop.eup %3213 }
0x157e   :  { %v1128_v43 = vadd.f32 1.0, %v3214_v12 }
0x1580   :  { %1152 = vperm.xlu1 %3130, %v1150_v11   ;;  %3215 = vrcp.f32 %v1128_v43 }
0x158a   :  { %v3216_v44 = vpop.eup %3215 }
0x158b   :  { %v1132_v25 = vmul.f32 %v3216_v44, %v3780_v47 }
0x15ee   :  { %v1135_v45 = vpop.permute.xlu1 %1134 }
0x15ef   :  { %v1137_v46 = vmul.f32 %v3216_v44, %v1135_v45 }
0x15f1   :  { %1139 = vrot.lane.b32.xlu0 %v1137_v46, %s3333_s24 }
0x15ff   :  { %v1153_v53 = vpop.permute.xlu1 %1152 }
0x1600   :  { %vm1154_vm4 = vcmp.eq.s32.totalorder %v1153_v53, 1 }
0x1663   :  { %v1140_v48 = vpop.permute.xlu0 %1139 }
0x1664   :  { %v3783_v3 = vadd.f32 %v1140_v48, %v1132_v25 }
0x1666   :  { %3217 = vtanh.f32 %v3783_v3  ;;  %v1156_v29 = vsel %vm1154_vm4, %v3783_v3, %v3780_v47 }
0x1670   :  { %v3218_v52 = vpop.eup %3217 }
0x1671   :  { %1145 = vrot.lane.b32.xlu0 %v3218_v52, %s3332_s2 }
0x16e3   :  { %v1146_v54 = vpop.permute.xlu0 %1145 }
0x16e4   :  { %v1148_v55 = vmul.f32 %v3216_v44, %v1146_v54 }
0x16e6   :  { %v1155_v56 = vsel %vm1154_vm4, %v1148_v55, %v3749_v39 }
0x16e7   :  { %v1157_v57 = vpack.c.bf16 %v1155_v56, %v1155_v56 }
0x16e9   :  { %1159 = vrot.lane.b32.xlu1 %v1157_v57, %s3333_s24 }
0x175b   :  { %v1160_v59 = vpop.permute.xlu1 %1159 }
0x175c   :  { %2479 = vmatmul.mubr.msk.bf16.vlgmr.msra.gmra.mrb[16].mxu0 %vm97_vm5, %v1160_v59 }
0x175d   :  { %2928 = vmatpush3.bf16.msra.mxu0 %v3823_v58  ;;  %2943 = vmatprep.mubr.msk.bf16.mxu0 %vm3330_vm0, %v3329_v2 }
0x175e   :  { %2929 = vmatprep.subr.bf16.mxu0 %v3329_v2 }
0x1761   :  { %2930 = vmatpush3.bf16.msra.mxu0 %v3830_v60 }
0x1762   :  { %2931 = vmatprep.subr.bf16.mxu0 %v3329_v2 }
0x1765   :  { %2932 = vmatpush3.bf16.msra.mxu0 %v3839_v61 }
0x1766   :  { %2933 = vmatprep.subr.bf16.mxu0 %v3329_v2 }
0x1769   :  { %2934 = vmatpush3.bf16.msra.mxu0 %v3846_v62 }
0x176a   :  { %2935 = vmatprep.subr.bf16.mxu0 %v3329_v2 }
0x176d   :  { %2936 = vmatpush3.bf16.msra.mxu0 %v3853_v63 }
0x176e   :  { %2937 = vmatprep.subr.bf16.mxu0 %v3329_v2 }
0x1771   :  { %2938 = vmatpush3.bf16.msra.mxu0 %v3860_v1 }
0x1772   :  { %2939 = vmatprep.subr.bf16.mxu0 %v3329_v2 }
0x1775   :  { %2940 = vmatpush3.bf16.msra.mxu0 %v3867_v13 }
0x1776   :  { %2941 = vmatprep.subr.bf16.mxu0 %v3329_v2 }
0x1779   :  { %2942 = vmatpush3.bf16.msra.mxu0 %v3874_v15 }
0x177a   :  { %1491 = vmatprep.subr.bf16.mxu0 %v3789_v49 }
0x177c   :  { %2944 = vmatmul.mubr.msk.bf16.vlgmr.msra.gmra.mrb[16].mxu0 %vm2489_vm7, %v3331_v16 }
0x177d   :  { %1492 = vmatpush1.bf16.msra.mxu0 %v3794_v50  ;;  %1523 = vmatprep.mubr.bf16.mxu0 %v3328_v0 }
0x177e   :  { %1493 = vmatprep.subr.bf16.mxu0 %v3800_v51 }
0x1781   :  { %1494 = vmatpush1.bf16.msra.mxu0 %v3807_v4 }
0x1782   :  { %1636 = vmatprep.subr.bf16.mxu0 %v3789_v49 }
0x184f   :  { %v1310_v17 = vpop.f32.mrb[16].mxu0 }
0x1850   :  { %3219 = vtanh.f32 %v1310_v17  ;;  %v2945_v18 = vpop.f32.mrb[17].mxu0  ;;  %v2491_v22 = vmul.f32 -1.442695, %v1310_v17 }
0x1851   :  { %v1313_v19 = vpop.f32.mrb[18].mxu0 }
0x1852   :  { %v2946_v20 = vpop.f32.mrb[19].mxu0  ;;  %3221 = vpow2.f32 %v2491_v22 }
0x185a   :  { %v3220_v21 = vpop.eup %3219 }
0x185b   :  { %1325 = vrot.lane.b32.xlu0 %v3220_v21, %s3332_s2 }
0x185c   :  { %v3222_v23 = vpop.eup %3221 }
0x185d   :  { %v1319_v24 = vadd.f32 1.0, %v3222_v23 }
0x185f   :  { %3223 = vrcp.f32 %v1319_v24 }
0x1869   :  { %v3224_v26 = vpop.eup %3223 }
0x186a   :  { %v1323_v30 = vmul.f32 %v3224_v26, %v1156_v29 }
0x18cd   :  { %v1326_v27 = vpop.permute.xlu0 %1325 }
0x18ce   :  { %v1328_v28 = vmul.f32 %v3224_v26, %v1326_v27 }
0x18d0   :  { %1330 = vrot.lane.b32.xlu1 %v1328_v28, %s3333_s24 }
0x1942   :  { %v1331_v31 = vpop.permute.xlu1 %1330 }
0x1943   :  { %v3891_v32 = vadd.f32 %v1331_v31, %v1323_v30 }
0x1945   :  { %3225 = vtanh.f32 %v3891_v32 }
0x194f   :  { %v3226_v33 = vpop.eup %3225 }
0x1950   :  { %1336 = vrot.lane.b32.xlu0 %v3226_v33, %s3332_s2 }
0x19c2   :  { %v1337_v34 = vpop.permute.xlu0 %1336 }
0x19c3   :  { %v1339_v35 = vmul.f32 %v3224_v26, %v1337_v34 }
0x19c5   :  { %v1340_v36 = vpack.c.bf16 %v1339_v35, %v1339_v35 }
0x19c7   :  { %1342 = vrot.lane.b32.xlu1 %v1340_v36, %s3333_s24 }
0x1a39   :  { %v1343_v37 = vpop.permute.xlu1 %1342 }
0x1a3a   :  { %2492 = vmatmul.mubr.msk.bf16.vlgmr.msra.gmra.mrb[16].mxu1 %vm97_vm5, %v1343_v37 }
0x1a3b   :  { %2948 = vmatpush3.bf16.msra.mxu1 %v3823_v58  ;;  %2963 = vmatprep.mubr.msk.bf16.mxu1 %vm3330_vm0, %v3329_v2 }
0x1a3c   :  { %2949 = vmatprep.subr.bf16.mxu1 %v3329_v2 }
0x1a3f   :  { %2950 = vmatpush3.bf16.msra.mxu1 %v3830_v60 }
0x1a40   :  { %2951 = vmatprep.subr.bf16.mxu1 %v3329_v2 }
0x1a43   :  { %2952 = vmatpush3.bf16.msra.mxu1 %v3839_v61 }
0x1a44   :  { %2953 = vmatprep.subr.bf16.mxu1 %v3329_v2 }
0x1a47   :  { %2954 = vmatpush3.bf16.msra.mxu1 %v3846_v62 }
0x1a48   :  { %2955 = vmatprep.subr.bf16.mxu1 %v3329_v2 }
0x1a4b   :  { %2956 = vmatpush3.bf16.msra.mxu1 %v3853_v63 }
0x1a4c   :  { %2957 = vmatprep.subr.bf16.mxu1 %v3329_v2 }
0x1a4f   :  { %2958 = vmatpush3.bf16.msra.mxu1 %v3860_v1 }
0x1a50   :  { %2959 = vmatprep.subr.bf16.mxu1 %v3329_v2 }
0x1a53   :  { %2960 = vmatpush3.bf16.msra.mxu1 %v3867_v13 }
0x1a54   :  { %2961 = vmatprep.subr.bf16.mxu1 %v3329_v2 }
0x1a57   :  { %2962 = vmatpush3.bf16.msra.mxu1 %v3874_v15 }
0x1a58   :  { %2967 = vmatprep.subr.bf16.mxu1 %v3329_v2 }
0x1b0d   :  { %v1381_v39 = vpop.f32.mrb[16].mxu1 }
0x1b0e   :  { %v1383_v40 = vpop.f32.mrb[17].mxu1 }
0x1b0f   :  { %v1388_v41 = vadd.f32 %v3918_v38, %v1383_v40  ;;  %v1385_v5 = vpop.f32.mrb[18].mxu1 }
0x1b10   :  { %v1386_v6 = vpop.f32.mrb[19].mxu1 }
0x1b11   :  { %1389 = vmax.xlane.f32.xlu0 %v1388_v41 }
0x1b9e   :  { %v1390_v7 = vpop.xlane.xlu0 %1389 }
0x1b9f   :  { %v3921_v8 = vsub.f32 %v1388_v41, %v1390_v7 }
0x1ba1   :  { %vm1400_vm8 = vcmp.ge.f32.partialorder %v3921_v8, 0.0 }
0x1ba2   :  { %v1401_v9 = vsel %vm1400_vm8, %v3462_v14, 128 }
0x1ba3   :  { %v1403_v10 = vshra.s32 %v1401_v9, 16  ;;  %v1402_v42 = vand.u32 65535, %v1401_v9 }
0x1ba5   :  { %v1405_v11 = vcvt.s32.f32 %v1403_v10  ;;  %v1404_v43 = vcvt.s32.f32 %v1402_v42 }
0x1ba7   :  { %1406 = vmin.xlane.f32.xlu1 %v1405_v11 }
0x1c34   :  { %v1407_v12 = vpop.xlane.xlu1 %1406 }
0x1c35   :  { %vm1408_vm9 = vcmp.eq.f32.partialorder %v1405_v11, %v1407_v12  ;;  %v1413_v45 = vcvt.f32.s32 %v1407_v12 }
0x1c36   :  { %v1409_v44 = vsel %vm1408_vm9, %v1404_v43, inf }
0x1c37   :  { %1410 = vmin.xlane.f32.xlu0 %v1409_v44  ;;  %v1414_v47 = vshll.u32 %v1413_v45, 16 }
0x1cc4   :  { %v1411_v46 = vpop.xlane.xlu0 %1410 }
0x1cc5   :  { %v1412_v25 = vcvt.f32.s32 %v1411_v46 }
0x1cc7   :  { %v1415_v48 = vadd.s32 %v1414_v47, %v1412_v25 }
0x1cc9   :  { %vm1416_vm10 = vcmp.eq.s32.totalorder %v3462_v14, %v1415_v48 }
0x1cca   :  { %vm2494_vm11 = vmpackc.low %vm1416_vm10, %vm1416_vm10 }
0x1ccb   :  { %2964 = vmatmul.mubr.msk.bf16.vlgmr.msra.gmra.mrb[20].mxu1 %vm2494_vm11, %v3331_v16 }
0x1ccc   :  { %2968 = vmatpush3.bf16.msra.mxu1 %v3823_v58  ;;  %2983 = vmatprep.mubr.msk.bf16.mxu1 %vm3330_vm0, %v3329_v2 }
0x1ccd   :  { %2969 = vmatprep.subr.bf16.mxu1 %v3329_v2 }
0x1cd0   :  { %2970 = vmatpush3.bf16.msra.mxu1 %v3830_v60 }
0x1cd1   :  { %2971 = vmatprep.subr.bf16.mxu1 %v3329_v2 }
0x1cd4   :  { %2972 = vmatpush3.bf16.msra.mxu1 %v3839_v61 }
0x1cd5   :  { %2973 = vmatprep.subr.bf16.mxu1 %v3329_v2 }
0x1cd8   :  { %2974 = vmatpush3.bf16.msra.mxu1 %v3846_v62 }
0x1cd9   :  { %2975 = vmatprep.subr.bf16.mxu1 %v3329_v2 }
0x1cdc   :  { %2976 = vmatpush3.bf16.msra.mxu1 %v3853_v63 }
0x1cdd   :  { %2977 = vmatprep.subr.bf16.mxu1 %v3329_v2 }
0x1ce0   :  { %2978 = vmatpush3.bf16.msra.mxu1 %v3860_v1 }
0x1ce1   :  { %2979 = vmatprep.subr.bf16.mxu1 %v3329_v2 }
0x1ce4   :  { %2980 = vmatpush3.bf16.msra.mxu1 %v3867_v13 }
0x1ce5   :  { %2981 = vmatprep.subr.bf16.mxu1 %v3329_v2 }
0x1ce8   :  { %2982 = vmatpush3.bf16.msra.mxu1 %v3874_v15 }
0x1ce9   :  { %1781 = vmatprep.subr.bf16.mxu1 %v3789_v49 }
0x1d9e   :  { %v1454_v3 = vpop.f32.mrb[20].mxu1 }
0x1d9f   :  { %v1455_v52 = vadd.f32 %v1454_v3, %v1381_v39  ;;  %v2965_v53 = vpop.f32.mrb[21].mxu1 }
0x1da0   :  { %v1457_v54 = vpop.f32.mrb[22].mxu1 }
0x1da1   :  { %3227 = vtanh.f32 %v1455_v52  ;;  %v2966_v55 = vpop.f32.mrb[23].mxu1  ;;  %v2496_v57 = vmul.f32 -1.442695, %v1455_v52 }
0x1da3   :  { %3229 = vpow2.f32 %v2496_v57 }
0x1dab   :  { %v3228_v56 = vpop.eup %3227 }
0x1dac   :  { %1469 = vrot.lane.b32.xlu0 %v3228_v56, %s3332_s2 }
0x1dad   :  { %v3230_v59 = vpop.eup %3229 }
0x1dae   :  { %v1463_v17 = vadd.f32 1.0, %v3230_v59 }
0x1db0   :  { %3231 = vrcp.f32 %v1463_v17 }
0x1dba   :  { %v3232_v18 = vpop.eup %3231 }
0x1dbb   :  { %v1467_v21 = vmul.f32 %v3232_v18, %v3891_v32 }
0x1e1e   :  { %v1470_v19 = vpop.permute.xlu0 %1469 }
0x1e1f   :  { %v1472_v20 = vmul.f32 %v3232_v18, %v1470_v19 }
0x1e21   :  { %1474 = vrot.lane.b32.xlu1 %v1472_v20, %s3333_s24 }
0x1e93   :  { %v1475_v22 = vpop.permute.xlu1 %1474 }
0x1e94   :  { %v3948_v23 = vadd.f32 %v1475_v22, %v1467_v21 }
0x1e96   :  { %3233 = vtanh.f32 %v3948_v23 }
0x1ea0   :  { %v3234_v24 = vpop.eup %3233 }
0x1ea1   :  { %1480 = vrot.lane.b32.xlu1 %v3234_v24, %s3332_s2 }
0x1f13   :  { %v1481_v26 = vpop.permute.xlu1 %1480 }
0x1f14   :  { %v1483_v27 = vmul.f32 %v3232_v18, %v1481_v26 }
0x1f16   :  { %v1484_v28 = vpack.c.bf16 %v1483_v27, %v1483_v27 }
0x1f18   :  { %1486 = vrot.lane.b32.xlu0 %v1484_v28, %s3333_s24 }
0x1f8a   :  { %v1487_v29 = vpop.permute.xlu0 %1486 }
0x1f8b   :  { %2497 = vmatmul.mubr.msk.bf16.vlgmr.msra.gmra.mrb[20].mxu0 %vm97_vm5, %v1487_v29 }
0x1f8c   :  { %1637 = vmatpush1.bf16.msra.mxu0 %v3794_v50  ;;  %1668 = vmatprep.mubr.bf16.mxu0 %v3328_v0 }
0x1f8d   :  { %1638 = vmatprep.subr.bf16.mxu0 %v3800_v51 }
0x1f90   :  { %1639 = vmatpush1.bf16.msra.mxu0 %v3807_v4 }
0x1f91   :  { %2987 = vmatprep.subr.bf16.mxu0 %v3329_v2 }
0x205e   :  { %v1525_v30 = vpop.f32.mrb[20].mxu0 }
0x205f   :  { %v1527_v31 = vpop.f32.mrb[21].mxu0 }
0x2060   :  { %v1532_v32 = vadd.f32 %v3918_v38, %v1527_v31  ;;  %v1529_v33 = vpop.f32.mrb[22].mxu0 }
0x2061   :  { %v1530_v34 = vpop.f32.mrb[23].mxu0 }
0x2062   :  { %1533 = vmax.xlane.f32.xlu1 %v1532_v32 }
0x20ef   :  { %v1534_v35 = vpop.xlane.xlu1 %1533 }
0x20f0   :  { %v3960_v36 = vsub.f32 %v1532_v32, %v1534_v35 }
0x20f2   :  { %vm1545_vm12 = vcmp.ge.f32.partialorder %v3960_v36, 0.0 }
0x20f3   :  { %v1546_v37 = vsel %vm1545_vm12, %v3462_v14, 128 }
0x20f4   :  { %v1548_v39 = vshra.s32 %v1546_v37, 16  ;;  %v1547_v41 = vand.u32 65535, %v1546_v37 }
0x20f6   :  { %v1550_v40 = vcvt.s32.f32 %v1548_v39  ;;  %v1549_v6 = vcvt.s32.f32 %v1547_v41 }
0x20f8   :  { %1551 = vmin.xlane.f32.xlu0 %v1550_v40 }
0x2185   :  { %v1552_v5 = vpop.xlane.xlu0 %1551 }
0x2186   :  { %vm1553_vm13 = vcmp.eq.f32.partialorder %v1550_v40, %v1552_v5  ;;  %v1558_v9 = vcvt.f32.s32 %v1552_v5 }
0x2187   :  { %v1554_v7 = vsel %vm1553_vm13, %v1549_v6, inf }
0x2188   :  { %1555 = vmin.xlane.f32.xlu0 %v1554_v7  ;;  %v1559_v11 = vshll.u32 %v1558_v9, 16 }
0x2215   :  { %v1556_v10 = vpop.xlane.xlu0 %1555 }
0x2216   :  { %v1557_v42 = vcvt.f32.s32 %v1556_v10 }
0x2218   :  { %v1560_v12 = vadd.s32 %v1559_v11, %v1557_v42 }
0x221a   :  { %vm1561_vm14 = vcmp.eq.s32.totalorder %v3462_v14, %v1560_v12 }
0x221b   :  { %vm2500_vm15 = vmpackc.low %vm1561_vm14, %vm1561_vm14 }
0x221c   :  { %2984 = vmatmul.mubr.msk.bf16.vlgmr.msra.gmra.mrb[24].mxu1 %vm2500_vm15, %v3331_v16 }
0x221d   :  { %1782 = vmatpush1.bf16.msra.mxu1 %v3794_v50  ;;  %1813 = vmatprep.mubr.bf16.mxu1 %v3328_v0 }
0x221e   :  { %1783 = vmatprep.subr.bf16.mxu1 %v3800_v51 }
0x2221   :  { %1784 = vmatpush1.bf16.msra.mxu1 %v3807_v4 }
0x2222   :  { %3007 = vmatprep.subr.bf16.mxu1 %v3329_v2 }
0x22ef   :  { %v1599_v43 = vpop.f32.mrb[24].mxu1 }
0x22f0   :  { %v1600_v44 = vadd.f32 %v1599_v43, %v1525_v30  ;;  %v2985_v45 = vpop.f32.mrb[25].mxu1 }
0x22f1   :  { %v1602_v46 = vpop.f32.mrb[26].mxu1 }
0x22f2   :  { %3235 = vtanh.f32 %v1600_v44  ;;  %v2986_v47 = vpop.f32.mrb[27].mxu1  ;;  %v2502_v48 = vmul.f32 -1.442695, %v1600_v44 }
0x22f4   :  { %3237 = vpow2.f32 %v2502_v48 }
0x22fc   :  { %v3236_v25 = vpop.eup %3235 }
0x22fd   :  { %1614 = vrot.lane.b32.xlu1 %v3236_v25, %s3332_s2 }
0x22fe   :  { %v3238_v3 = vpop.eup %3237 }
0x22ff   :  { %v1608_v52 = vadd.f32 1.0, %v3238_v3 }
0x2301   :  { %3239 = vrcp.f32 %v1608_v52 }
0x230b   :  { %v3240_v53 = vpop.eup %3239 }
0x230c   :  { %v1612_v56 = vmul.f32 %v3240_v53, %v3948_v23 }
0x236f   :  { %v1615_v54 = vpop.permute.xlu1 %1614 }
0x2370   :  { %v1617_v55 = vmul.f32 %v3240_v53, %v1615_v54 }
0x2372   :  { %1619 = vrot.lane.b32.xlu0 %v1617_v55, %s3333_s24 }
0x23e4   :  { %v1620_v57 = vpop.permute.xlu0 %1619 }
0x23e5   :  { %v3974_v59 = vadd.f32 %v1620_v57, %v1612_v56 }
0x23e7   :  { %3241 = vtanh.f32 %v3974_v59 }
0x23f1   :  { %v3242_v17 = vpop.eup %3241 }
0x23f2   :  { %1625 = vrot.lane.b32.xlu1 %v3242_v17, %s3332_s2 }
0x2464   :  { %v1626_v18 = vpop.permute.xlu1 %1625 }
0x2465   :  { %v1628_v19 = vmul.f32 %v3240_v53, %v1626_v18 }
0x2467   :  { %v1629_v20 = vpack.c.bf16 %v1628_v19, %v1628_v19 }
0x2469   :  { %1631 = vrot.lane.b32.xlu1 %v1629_v20, %s3333_s24 }
0x24db   :  { %v1632_v21 = vpop.permute.xlu1 %1631 }
0x24dc   :  { %2503 = vmatmul.mubr.msk.bf16.vlgmr.msra.gmra.mrb[24].mxu0 %vm97_vm5, %v1632_v21 }
0x24dd   :  { %2988 = vmatpush3.bf16.msra.mxu0 %v3823_v58  ;;  %3003 = vmatprep.mubr.msk.bf16.mxu0 %vm3330_vm0, %v3329_v2 }
0x24de   :  { %2989 = vmatprep.subr.bf16.mxu0 %v3329_v2 }
0x24e1   :  { %2990 = vmatpush3.bf16.msra.mxu0 %v3830_v60 }
0x24e2   :  { %2991 = vmatprep.subr.bf16.mxu0 %v3329_v2 }
0x24e5   :  { %2992 = vmatpush3.bf16.msra.mxu0 %v3839_v61 }
0x24e6   :  { %2993 = vmatprep.subr.bf16.mxu0 %v3329_v2 }
0x24e9   :  { %2994 = vmatpush3.bf16.msra.mxu0 %v3846_v62 }
0x24ea   :  { %2995 = vmatprep.subr.bf16.mxu0 %v3329_v2 }
0x24ed   :  { %2996 = vmatpush3.bf16.msra.mxu0 %v3853_v63 }
0x24ee   :  { %2997 = vmatprep.subr.bf16.mxu0 %v3329_v2 }
0x24f1   :  { %2998 = vmatpush3.bf16.msra.mxu0 %v3860_v1 }
0x24f2   :  { %2999 = vmatprep.subr.bf16.mxu0 %v3329_v2 }
0x24f5   :  { %3000 = vmatpush3.bf16.msra.mxu0 %v3867_v13 }
0x24f6   :  { %3001 = vmatprep.subr.bf16.mxu0 %v3329_v2 }
0x24f9   :  { %3002 = vmatpush3.bf16.msra.mxu0 %v3874_v15 }
0x24fa   :  { %1926 = vmatprep.subr.bf16.mxu0 %v3789_v49 }
0x25af   :  { %v1670_v22 = vpop.f32.mrb[24].mxu0 }
0x25b0   :  { %v1672_v23 = vpop.f32.mrb[25].mxu0 }
0x25b1   :  { %v1677_v24 = vadd.f32 %v3918_v38, %v1672_v23  ;;  %v1674_v26 = vpop.f32.mrb[26].mxu0 }
0x25b2   :  { %v1675_v27 = vpop.f32.mrb[27].mxu0 }
0x25b3   :  { %1678 = vmax.xlane.f32.xlu0 %v1677_v24 }
0x2640   :  { %v1679_v28 = vpop.xlane.xlu0 %1678 }
0x2641   :  { %v3999_v29 = vsub.f32 %v1677_v24, %v1679_v28 }
0x2643   :  { %vm1690_vm1 = vcmp.ge.f32.partialorder %v3999_v29, 0.0 }
0x2644   :  { %v1691_v30 = vsel %vm1690_vm1, %v3462_v14, 128 }
0x2645   :  { %v1693_v31 = vshra.s32 %v1691_v30, 16  ;;  %v1692_v33 = vand.u32 65535, %v1691_v30 }
0x2647   :  { %v1695_v32 = vcvt.s32.f32 %v1693_v31  ;;  %v1694_v35 = vcvt.s32.f32 %v1692_v33 }
0x2649   :  { %1696 = vmin.xlane.f32.xlu1 %v1695_v32 }
0x26d6   :  { %v1697_v34 = vpop.xlane.xlu1 %1696 }
0x26d7   :  { %vm1698_vm2 = vcmp.eq.f32.partialorder %v1695_v32, %v1697_v34  ;;  %v1703_v39 = vcvt.f32.s32 %v1697_v34 }
0x26d8   :  { %v1699_v37 = vsel %vm1698_vm2, %v1694_v35, inf }
0x26d9   :  { %1700 = vmin.xlane.f32.xlu0 %v1699_v37  ;;  %v1704_v41 = vshll.u32 %v1703_v39, 16 }
0x2766   :  { %v1701_v40 = vpop.xlane.xlu0 %1700 }
0x2767   :  { %v1702_v5 = vcvt.f32.s32 %v1701_v40 }
0x2769   :  { %v1705_v6 = vadd.s32 %v1704_v41, %v1702_v5 }
0x276b   :  { %vm1706_vm3 = vcmp.eq.s32.totalorder %v3462_v14, %v1705_v6 }
0x276c   :  { %vm2506_vm4 = vmpackc.low %vm1706_vm3, %vm1706_vm3 }
0x276d   :  { %3004 = vmatmul.mubr.msk.bf16.vlgmr.msra.gmra.mrb[28].mxu0 %vm2506_vm4, %v3331_v16 }
0x276e   :  { %1927 = vmatpush1.bf16.msra.mxu0 %v3794_v50  ;;  %1958 = vmatprep.mubr.bf16.mxu0 %v3328_v0 }
0x276f   :  { %1928 = vmatprep.subr.bf16.mxu0 %v3800_v51 }
0x2772   :  { %1929 = vmatpush1.bf16.msra.mxu0 %v3807_v4 }
0x2773   :  { %3027 = vmatprep.subr.bf16.mxu0 %v3329_v2 }
0x2840   :  { %v1744_v7 = vpop.f32.mrb[28].mxu0 }
0x2841   :  { %v1745_v9 = vadd.f32 %v1744_v7, %v1670_v22  ;;  %v3005_v10 = vpop.f32.mrb[29].mxu0 }
0x2842   :  { %v1747_v11 = vpop.f32.mrb[30].mxu0 }
0x2843   :  { %3243 = vtanh.f32 %v1745_v9  ;;  %v3006_v42 = vpop.f32.mrb[31].mxu0  ;;  %v2508_v43 = vmul.f32 -1.442695, %v1745_v9 }
0x2845   :  { %3245 = vpow2.f32 %v2508_v43 }
0x284d   :  { %v3244_v12 = vpop.eup %3243 }
0x284e   :  { %1759 = vrot.lane.b32.xlu0 %v3244_v12, %s3332_s2 }
0x284f   :  { %v3246_v44 = vpop.eup %3245 }
0x2850   :  { %v1753_v45 = vadd.f32 1.0, %v3246_v44 }
0x2852   :  { %3247 = vrcp.f32 %v1753_v45 }
0x285c   :  { %v3248_v46 = vpop.eup %3247 }
0x285d   :  { %v1757_v48 = vmul.f32 %v3248_v46, %v3974_v59 }
0x28c0   :  { %v1760_v47 = vpop.permute.xlu0 %1759 }
0x28c1   :  { %v1762_v25 = vmul.f32 %v3248_v46, %v1760_v47 }
0x28c3   :  { %1764 = vrot.lane.b32.xlu1 %v1762_v25, %s3333_s24 }
0x2935   :  { %v1765_v3 = vpop.permute.xlu1 %1764 }
0x2936   :  { %v4013_v52 = vadd.f32 %v1765_v3, %v1757_v48 }
0x2938   :  { %3249 = vtanh.f32 %v4013_v52 }
0x2942   :  { %v3250_v53 = vpop.eup %3249 }
0x2943   :  { %1770 = vrot.lane.b32.xlu1 %v3250_v53, %s3332_s2 }
0x29b5   :  { %v1771_v54 = vpop.permute.xlu1 %1770 }
0x29b6   :  { %v1773_v55 = vmul.f32 %v3248_v46, %v1771_v54 }
0x29b8   :  { %v1774_v56 = vpack.c.bf16 %v1773_v55, %v1773_v55 }
0x29ba   :  { %1776 = vrot.lane.b32.xlu0 %v1774_v56, %s3333_s24 }
0x2a2c   :  { %v1777_v57 = vpop.permute.xlu0 %1776 }
0x2a2d   :  { %2509 = vmatmul.mubr.msk.bf16.vlgmr.msra.gmra.mrb[28].mxu1 %vm97_vm5, %v1777_v57 }
0x2a2e   :  { %3008 = vmatpush3.bf16.msra.mxu1 %v3823_v58  ;;  %3023 = vmatprep.mubr.msk.bf16.mxu1 %vm3330_vm0, %v3329_v2 }
0x2a2f   :  { %3009 = vmatprep.subr.bf16.mxu1 %v3329_v2 }
0x2a32   :  { %3010 = vmatpush3.bf16.msra.mxu1 %v3830_v60 }
0x2a33   :  { %3011 = vmatprep.subr.bf16.mxu1 %v3329_v2 }
0x2a36   :  { %3012 = vmatpush3.bf16.msra.mxu1 %v3839_v61 }
0x2a37   :  { %3013 = vmatprep.subr.bf16.mxu1 %v3329_v2 }
0x2a3a   :  { %3014 = vmatpush3.bf16.msra.mxu1 %v3846_v62 }
0x2a3b   :  { %3015 = vmatprep.subr.bf16.mxu1 %v3329_v2 }
0x2a3e   :  { %3016 = vmatpush3.bf16.msra.mxu1 %v3853_v63 }
0x2a3f   :  { %3017 = vmatprep.subr.bf16.mxu1 %v3329_v2 }
0x2a42   :  { %3018 = vmatpush3.bf16.msra.mxu1 %v3860_v1 }
0x2a43   :  { %3019 = vmatprep.subr.bf16.mxu1 %v3329_v2 }
0x2a46   :  { %3020 = vmatpush3.bf16.msra.mxu1 %v3867_v13 }
0x2a47   :  { %3021 = vmatprep.subr.bf16.mxu1 %v3329_v2 }
0x2a4a   :  { %3022 = vmatpush3.bf16.msra.mxu1 %v3874_v15 }
0x2a4b   :  { %2071 = vmatprep.subr.bf16.mxu1 %v3789_v49 }
0x2b00   :  { %v1815_v59 = vpop.f32.mrb[28].mxu1 }
0x2b01   :  { %v1817_v17 = vpop.f32.mrb[29].mxu1 }
0x2b02   :  { %v1822_v18 = vadd.f32 %v3918_v38, %v1817_v17  ;;  %v1819_v19 = vpop.f32.mrb[30].mxu1 }
0x2b03   :  { %v1820_v20 = vpop.f32.mrb[31].mxu1 }
0x2b04   :  { %1823 = vmax.xlane.f32.xlu1 %v1822_v18 }
0x2b91   :  { %v1824_v21 = vpop.xlane.xlu1 %1823 }
0x2b92   :  { %v4038_v22 = vsub.f32 %v1822_v18, %v1824_v21 }
0x2b94   :  { %vm1835_vm6 = vcmp.ge.f32.partialorder %v4038_v22, 0.0 }
0x2b95   :  { %v1836_v23 = vsel %vm1835_vm6, %v3462_v14, 128 }
0x2b96   :  { %v1838_v24 = vshra.s32 %v1836_v23, 16  ;;  %v1837_v27 = vand.u32 65535, %v1836_v23 }
0x2b98   :  { %v1840_v26 = vcvt.s32.f32 %v1838_v24  ;;  %v1839_v30 = vcvt.s32.f32 %v1837_v27 }
0x2b9a   :  { %1841 = vmin.xlane.f32.xlu0 %v1840_v26 }
0x2c27   :  { %v1842_v28 = vpop.xlane.xlu0 %1841 }
0x2c28   :  { %vm1843_vm7 = vcmp.eq.f32.partialorder %v1840_v26, %v1842_v28  ;;  %v1848_v32 = vcvt.f32.s32 %v1842_v28 }
0x2c29   :  { %v1844_v31 = vsel %vm1843_vm7, %v1839_v30, inf }
0x2c2a   :  { %1845 = vmin.xlane.f32.xlu0 %v1844_v31  ;;  %v1849_v34 = vshll.u32 %v1848_v32, 16 }
0x2cb7   :  { %v1846_v33 = vpop.xlane.xlu0 %1845 }
0x2cb8   :  { %v1847_v35 = vcvt.f32.s32 %v1846_v33 }
0x2cba   :  { %v1850_v37 = vadd.s32 %v1849_v34, %v1847_v35 }
0x2cbc   :  { %vm1851_vm8 = vcmp.eq.s32.totalorder %v3462_v14, %v1850_v37 }
0x2cbd   :  { %vm2512_vm9 = vmpackc.low %vm1851_vm8, %vm1851_vm8 }
0x2cbe   :  { %3024 = vmatmul.mubr.msk.bf16.vlgmr.msra.gmra.mrb[32].mxu1 %vm2512_vm9, %v3331_v16 }
0x2cbf   :  { %2072 = vmatpush1.bf16.msra.mxu1 %v3794_v50  ;;  %2103 = vmatprep.mubr.bf16.mxu1 %v3328_v0 }
0x2cc0   :  { %2073 = vmatprep.subr.bf16.mxu1 %v3800_v51 }
0x2cc3   :  { %2074 = vmatpush1.bf16.msra.mxu1 %v3807_v4 }
0x2cc4   :  { %3047 = vmatprep.subr.bf16.mxu1 %v3329_v2 }
0x2d91   :  { %v1889_v39 = vpop.f32.mrb[32].mxu1 }
0x2d92   :  { %v1890_v40 = vadd.f32 %v1889_v39, %v1815_v59  ;;  %v3025_v41 = vpop.f32.mrb[33].mxu1 }
0x2d93   :  { %v1892_v5 = vpop.f32.mrb[34].mxu1 }
0x2d94   :  { %3251 = vtanh.f32 %v1890_v40  ;;  %v3026_v6 = vpop.f32.mrb[35].mxu1  ;;  %v2514_v9 = vmul.f32 -1.442695, %v1890_v40 }
0x2d96   :  { %3253 = vpow2.f32 %v2514_v9 }
0x2d9e   :  { %v3252_v7 = vpop.eup %3251 }
0x2d9f   :  { %1904 = vrot.lane.b32.xlu1 %v3252_v7, %s3332_s2 }
0x2da0   :  { %v3254_v10 = vpop.eup %3253 }
0x2da1   :  { %v1898_v11 = vadd.f32 1.0, %v3254_v10 }
0x2da3   :  { %3255 = vrcp.f32 %v1898_v11 }
0x2dad   :  { %v3256_v42 = vpop.eup %3255 }
0x2dae   :  { %v1902_v44 = vmul.f32 %v3256_v42, %v4013_v52 }
0x2e11   :  { %v1905_v12 = vpop.permute.xlu1 %1904 }
0x2e12   :  { %v1907_v43 = vmul.f32 %v3256_v42, %v1905_v12 }
0x2e14   :  { %1909 = vrot.lane.b32.xlu0 %v1907_v43, %s3333_s24 }
0x2e86   :  { %v1910_v45 = vpop.permute.xlu0 %1909 }
0x2e87   :  { %v4052_v46 = vadd.f32 %v1910_v45, %v1902_v44 }
0x2e89   :  { %3257 = vtanh.f32 %v4052_v46 }
0x2e93   :  { %v3258_v47 = vpop.eup %3257 }
0x2e94   :  { %1915 = vrot.lane.b32.xlu1 %v3258_v47, %s3332_s2 }
0x2f06   :  { %v1916_v25 = vpop.permute.xlu1 %1915 }
0x2f07   :  { %v1918_v48 = vmul.f32 %v3256_v42, %v1916_v25 }
0x2f09   :  { %v1919_v3 = vpack.c.bf16 %v1918_v48, %v1918_v48 }
0x2f0b   :  { %1921 = vrot.lane.b32.xlu1 %v1919_v3, %s3333_s24 }
0x2f7d   :  { %v1922_v53 = vpop.permute.xlu1 %1921 }
0x2f7e   :  { %2515 = vmatmul.mubr.msk.bf16.vlgmr.msra.gmra.mrb[32].mxu0 %vm97_vm5, %v1922_v53 }
0x2f7f   :  { %3028 = vmatpush3.bf16.msra.mxu0 %v3823_v58  ;;  %3043 = vmatprep.mubr.msk.bf16.mxu0 %vm3330_vm0, %v3329_v2 }
0x2f80   :  { %3029 = vmatprep.subr.bf16.mxu0 %v3329_v2 }
0x2f83   :  { %3030 = vmatpush3.bf16.msra.mxu0 %v3830_v60 }
0x2f84   :  { %3031 = vmatprep.subr.bf16.mxu0 %v3329_v2 }
0x2f87   :  { %3032 = vmatpush3.bf16.msra.mxu0 %v3839_v61 }
0x2f88   :  { %3033 = vmatprep.subr.bf16.mxu0 %v3329_v2 }
0x2f8b   :  { %3034 = vmatpush3.bf16.msra.mxu0 %v3846_v62 }
0x2f8c   :  { %3035 = vmatprep.subr.bf16.mxu0 %v3329_v2 }
0x2f8f   :  { %3036 = vmatpush3.bf16.msra.mxu0 %v3853_v63 }
0x2f90   :  { %3037 = vmatprep.subr.bf16.mxu0 %v3329_v2 }
0x2f93   :  { %3038 = vmatpush3.bf16.msra.mxu0 %v3860_v1 }
0x2f94   :  { %3039 = vmatprep.subr.bf16.mxu0 %v3329_v2 }
0x2f97   :  { %3040 = vmatpush3.bf16.msra.mxu0 %v3867_v13 }
0x2f98   :  { %3041 = vmatprep.subr.bf16.mxu0 %v3329_v2 }
0x2f9b   :  { %3042 = vmatpush3.bf16.msra.mxu0 %v3874_v15 }
0x2f9c   :  { %2216 = vmatprep.subr.bf16.mxu0 %v3789_v49 }
0x3051   :  { %v1960_v52 = vpop.f32.mrb[32].mxu0 }
0x3052   :  { %v1962_v54 = vpop.f32.mrb[33].mxu0 }
0x3053   :  { %v1967_v55 = vadd.f32 %v3918_v38, %v1962_v54  ;;  %v1964_v56 = vpop.f32.mrb[34].mxu0 }
0x3054   :  { %v1965_v57 = vpop.f32.mrb[35].mxu0 }
0x3055   :  { %1968 = vmax.xlane.f32.xlu0 %v1967_v55  ;;  %v3316_v57 = vld [vmem:[%s4234_s5] ss:$8 sps:$4 sm:$0xff]  }
0x30e2   :  { %v1969_v59 = vpop.xlane.xlu0 %1968 }
0x30e3   :  { %v4077_v17 = vsub.f32 %v1967_v55, %v1969_v59  ;;  %v3317_v59 = vld [vmem:[%s4234_s5 + $0x14] ss:$8 sps:$4 sm:$0xff]  }
0x30e5   :  { %vm1980_vm10 = vcmp.ge.f32.partialorder %v4077_v17, 0.0 }
0x30e6   :  { %v1981_v18 = vsel %vm1980_vm10, %v3462_v14, 128 }
0x30e7   :  { %v1983_v19 = vshra.s32 %v1981_v18, 16  ;;  %v1982_v21 = vand.u32 65535, %v1981_v18  ;;  %v3318_v18 = vld [vmem:[%s4234_s5 + $0x10] ss:$8 sps:$4 sm:$0xff]  }
0x30e9   :  { %v1985_v20 = vcvt.s32.f32 %v1983_v19  ;;  %v1984_v49 = vcvt.s32.f32 %v1982_v21 }
0x30eb   :  { %1986 = vmin.xlane.f32.xlu1 %v1985_v20 }
0x3178   :  { %v1987_v23 = vpop.xlane.xlu1 %1986 }
0x3179   :  { %vm1988_vm11 = vcmp.eq.f32.partialorder %v1985_v20, %v1987_v23  ;;  %v1993_v26 = vcvt.f32.s32 %v1987_v23 }
0x317a   :  { %v1989_v24 = vsel %vm1988_vm11, %v1984_v49, inf }
0x317b   :  { %1990 = vmin.xlane.f32.xlu0 %v1989_v24  ;;  %v1994_v28 = vshll.u32 %v1993_v26, 16 }
0x3208   :  { %v1991_v27 = vpop.xlane.xlu0 %1990 }
0x3209   :  { %v1992_v30 = vcvt.f32.s32 %v1991_v27 }
0x320b   :  { %v1995_v31 = vadd.s32 %v1994_v28, %v1992_v30 }
0x320d   :  { %vm1996_vm12 = vcmp.eq.s32.totalorder %v3462_v14, %v1995_v31 }
0x320e   :  { %vm2518_vm13 = vmpackc.low %vm1996_vm12, %vm1996_vm12 }
0x320f   :  { %3044 = vmatmul.mubr.msk.bf16.vlgmr.msra.gmra.mrb[36].mxu0 %vm2518_vm13, %v3331_v16 }
0x3210   :  { %2217 = vmatpush1.bf16.msra.mxu0 %v3794_v50  ;;  %2248 = vmatprep.mubr.bf16.mxu0 %v3328_v0 }
0x3211   :  { %2218 = vmatprep.subr.bf16.mxu0 %v3800_v51 }
0x3214   :  { %2219 = vmatpush1.bf16.msra.mxu0 %v3807_v4 }
0x3215   :  { %3067 = vmatprep.subr.bf16.mxu0 %v3329_v2 }
0x32e2   :  { %v2034_v32 = vpop.f32.mrb[36].mxu0 }
0x32e3   :  { %v2035_v33 = vadd.f32 %v2034_v32, %v1960_v52  ;;  %v3045_v34 = vpop.f32.mrb[37].mxu0 }
0x32e4   :  { %v2037_v35 = vpop.f32.mrb[38].mxu0 }
0x32e5   :  { %3259 = vtanh.f32 %v2035_v33  ;;  %v3046_v37 = vpop.f32.mrb[39].mxu0  ;;  %v2520_v40 = vmul.f32 -1.442695, %v2035_v33 }
0x32e7   :  { %3261 = vpow2.f32 %v2520_v40 }
0x32ef   :  { %v3260_v39 = vpop.eup %3259 }
0x32f0   :  { %2049 = vrot.lane.b32.xlu0 %v3260_v39, %s3332_s2 }
0x32f1   :  { %v3262_v50 = vpop.eup %3261 }
0x32f2   :  { %v2043_v41 = vadd.f32 1.0, %v3262_v50 }
0x32f4   :  { %3263 = vrcp.f32 %v2043_v41  ;;  %v3319_v41 = vld [vmem:[%s4235_s4] sm:$0xff]  }
0x32fe   :  { %v3264_v5 = vpop.eup %3263 }
0x32ff   :  { %v2047_v4 = vmul.f32 %v3264_v5, %v4052_v46 }
0x3362   :  { %v2050_v51 = vpop.permute.xlu0 %2049 }
0x3363   :  { %v2052_v6 = vmul.f32 %v3264_v5, %v2050_v51  ;;  %v3321_v51 = vld [vmem:[%s4235_s4 + $0x10] sm:$0xff]  }
0x3365   :  { %2054 = vrot.lane.b32.xlu1 %v2052_v6, %s3333_s24  ;;  %v3322_v6 = vld [vmem:[%s4235_s4 + $0x18] sm:$0xff]  }
0x33d7   :  { %v2055_v7 = vpop.permute.xlu1 %2054 }
0x33d8   :  { %v4091_v9 = vadd.f32 %v2055_v7, %v2047_v4  ;;  %v3323_v4 = vld [vmem:[%s4235_s4 + $0x20] sm:$0xff]   ;;  %v3324_v7 = vld [vmem:[%s4235_s4 + $0x28] sm:$0xff]  }
0x33da   :  { %3265 = vtanh.f32 %v4091_v9 }
0x33e4   :  { %v3266_v10 = vpop.eup %3265 }
0x33e5   :  { %2060 = vrot.lane.b32.xlu1 %v3266_v10, %s3332_s2  ;;  %v3326_v10 = vld [vmem:[%s4235_s4 + $0x38] sm:$0xff]  }
0x3457   :  { %v2061_v11 = vpop.permute.xlu1 %2060 }
0x3458   :  { %v2063_v42 = vmul.f32 %v3264_v5, %v2061_v11  ;;  %v3320_v5 = vld [vmem:[%s4235_s4 + $0x8] sm:$0xff]  }
0x345a   :  { %v2064_v12 = vpack.c.bf16 %v2063_v42, %v2063_v42 }
0x345c   :  { %2066 = vrot.lane.b32.xlu0 %v2064_v12, %s3333_s24 }
0x34ce   :  { %v2067_v43 = vpop.permute.xlu0 %2066 }
0x34cf   :  { %2521 = vmatmul.mubr.msk.bf16.vlgmr.msra.gmra.mrb[36].mxu1 %vm97_vm5, %v2067_v43 }
0x34d0   :  { %3048 = vmatpush3.bf16.msra.mxu1 %v3823_v58  ;;  %3063 = vmatprep.mubr.msk.bf16.mxu1 %vm3330_vm0, %v3329_v2  ;;  %v3315_v58 = vld [vmem:[%s4234_s5 + $0x4] ss:$8 sps:$4 sm:$0xff]  }
0x34d1   :  { %3049 = vmatprep.subr.bf16.mxu1 %v3329_v2 }
0x34d4   :  { %3050 = vmatpush3.bf16.msra.mxu1 %v3830_v60 }
0x34d5   :  { %3051 = vmatprep.subr.bf16.mxu1 %v3329_v2 }
0x34d8   :  { %3052 = vmatpush3.bf16.msra.mxu1 %v3839_v61 }
0x34d9   :  { %3053 = vmatprep.subr.bf16.mxu1 %v3329_v2 }
0x34dc   :  { %3054 = vmatpush3.bf16.msra.mxu1 %v3846_v62 }
0x34dd   :  { %3055 = vmatprep.subr.bf16.mxu1 %v3329_v2 }
0x34e0   :  { %3056 = vmatpush3.bf16.msra.mxu1 %v3853_v63 }
0x34e1   :  { %3057 = vmatprep.subr.bf16.mxu1 %v3329_v2 }
0x34e4   :  { %3058 = vmatpush3.bf16.msra.mxu1 %v3860_v1 }
0x34e5   :  { %3059 = vmatprep.subr.bf16.mxu1 %v3329_v2 }
0x34e8   :  { %3060 = vmatpush3.bf16.msra.mxu1 %v3867_v13 }
0x34e9   :  { %3061 = vmatprep.subr.bf16.mxu1 %v3329_v2 }
0x34ec   :  { %3062 = vmatpush3.bf16.msra.mxu1 %v3874_v15 }
0x34ed   :  { %2361 = vmatprep.subr.bf16.mxu1 %v3315_v58 }
0x35a2   :  { %v2105_v60 = vpop.f32.mrb[36].mxu1 }
0x35a3   :  { %v2107_v61 = vpop.f32.mrb[37].mxu1 }
0x35a4   :  { %v2112_v62 = vadd.f32 %v3918_v38, %v2107_v61  ;;  %v2109_v63 = vpop.f32.mrb[38].mxu1 }
0x35a5   :  { %v2110_v44 = vpop.f32.mrb[39].mxu1 }
0x35a6   :  { %2113 = vmax.xlane.f32.xlu1 %v2112_v62 }
0x3633   :  { %v2114_v1 = vpop.xlane.xlu1 %2113 }
0x3634   :  { %v4118_v45 = vsub.f32 %v2112_v62, %v2114_v1 }
0x3636   :  { %vm2125_vm14 = vcmp.ge.f32.partialorder %v4118_v45, 0.0 }
0x3637   :  { %v2126_v13 = vsel %vm2125_vm14, %v3462_v14, 128 }
0x3638   :  { %v2128_v15 = vshra.s32 %v2126_v13, 16  ;;  %v2127_v47 = vand.u32 65535, %v2126_v13 }
0x363a   :  { %v2130_v46 = vcvt.s32.f32 %v2128_v15  ;;  %v2129_v48 = vcvt.s32.f32 %v2127_v47 }
0x363c   :  { %2131 = vmin.xlane.f32.xlu0 %v2130_v46 }
0x36c9   :  { %v2132_v25 = vpop.xlane.xlu0 %2131 }
0x36ca   :  { %vm2133_vm15 = vcmp.eq.f32.partialorder %v2130_v46, %v2132_v25  ;;  %v2138_v53 = vcvt.f32.s32 %v2132_v25 }
0x36cb   :  { %v2134_v3 = vsel %vm2133_vm15, %v2129_v48, inf }
0x36cc   :  { %2135 = vmin.xlane.f32.xlu0 %v2134_v3  ;;  %v2139_v54 = vshll.u32 %v2138_v53, 16 }
0x3759   :  { %v2136_v52 = vpop.xlane.xlu0 %2135 }
0x375a   :  { %v2137_v55 = vcvt.f32.s32 %v2136_v52 }
0x375c   :  { %v2140_v56 = vadd.s32 %v2139_v54, %v2137_v55 }
0x375e   :  { %vm2141_vm1 = vcmp.eq.s32.totalorder %v3462_v14, %v2140_v56 }
0x375f   :  { %vm2524_vm2 = vmpackc.low %vm2141_vm1, %vm2141_vm1 }
0x3760   :  { %3064 = vmatmul.mubr.msk.bf16.vlgmr.msra.gmra.mrb[40].mxu1 %vm2524_vm2, %v3331_v16 }
0x3761   :  { %2362 = vmatpush1.bf16.msra.mxu1 %v3316_v57  ;;  %2393 = vmatprep.mubr.bf16.mxu1 %v3328_v0 }
0x3762   :  { %2363 = vmatprep.subr.bf16.mxu1 %v3317_v59 }
0x3765   :  { %2364 = vmatpush1.bf16.msra.mxu1 %v3318_v18 }
0x3833   :  { %v2179_v19 = vpop.f32.mrb[40].mxu1 }
0x3834   :  { %v2180_v20 = vadd.f32 %v2179_v19, %v2105_v60  ;;  %v3065_v21 = vpop.f32.mrb[41].mxu1 }
0x3835   :  { %v2182_v23 = vpop.f32.mrb[42].mxu1 }
0x3836   :  { %3267 = vtanh.f32 %v2180_v20  ;;  %v3066_v49 = vpop.f32.mrb[43].mxu1  ;;  %v2526_v0 = vmul.f32 -1.442695, %v2180_v20 }
0x3838   :  { %3269 = vpow2.f32 %v2526_v0 }
0x3840   :  { %v3268_v24 = vpop.eup %3267 }
0x3841   :  { %2194 = vrot.lane.b32.xlu1 %v3268_v24, %s3332_s2 }
0x3842   :  { %v3270_v26 = vpop.eup %3269 }
0x3843   :  { %v2188_v27 = vadd.f32 1.0, %v3270_v26 }
0x3845   :  { %3271 = vrcp.f32 %v2188_v27  ;;  %v1392_v27 = vmul.f32 1.442695, %v3921_v8 }
0x384f   :  { %v3272_v28 = vpop.eup %3271 }
0x3850   :  { %v2192_v32 = vmul.f32 %v3272_v28, %v4091_v9  ;;  %v3325_v9 = vld [vmem:[%s4235_s4 + $0x30] sm:$0xff]  }
0x38b3   :  { %v2195_v30 = vpop.permute.xlu1 %2194 }
0x38b4   :  { %v2197_v31 = vmul.f32 %v3272_v28, %v2195_v30  ;;  %v1826_v30 = vmul.f32 1.442695, %v4038_v22 }
0x38b6   :  { %2199 = vrot.lane.b32.xlu0 %v2197_v31, %s3333_s24  ;;  %v2116_v31 = vmul.f32 1.442695, %v4118_v45 }
0x3928   :  { %v2200_v33 = vpop.permute.xlu0 %2199 }
0x3929   :  { %v4137_v34 = vadd.f32 %v2200_v33, %v2192_v32 }
0x392b   :  { %3273 = vtanh.f32 %v4137_v34 }
0x3935   :  { %v3274_v35 = vpop.eup %3273 }
0x3936   :  { %2205 = vrot.lane.b32.xlu1 %v3274_v35, %s3332_s2 }
0x39a8   :  { %v2206_v37 = vpop.permute.xlu1 %2205 }
0x39a9   :  { %v2208_v39 = vmul.f32 %v3272_v28, %v2206_v37  ;;  %v1536_v28 = vmul.f32 1.442695, %v3960_v36 }
0x39ab   :  { %v2209_v40 = vpack.c.bf16 %v2208_v39, %v2208_v39 }
0x39ad   :  { %2211 = vrot.lane.b32.xlu1 %v2209_v40, %s3333_s24 }
0x3a1f   :  { %v2212_v50 = vpop.permute.xlu1 %2211 }
0x3a20   :  { %2527 = vmatmul.mubr.msk.bf16.vlgmr.msra.gmra.mrb[40].mxu0 %vm97_vm5, %v2212_v50 }
0x3a21   :  { %3068 = vmatpush3.bf16.msra.mxu0 %v3319_v41  ;;  %3083 = vmatprep.mubr.msk.bf16.mxu0 %vm3330_vm0, %v3329_v2 }
0x3a22   :  { %3069 = vmatprep.subr.bf16.mxu0 %v3329_v2 }
0x3a25   :  { %3070 = vmatpush3.bf16.msra.mxu0 %v3320_v5 }
0x3a26   :  { %3071 = vmatprep.subr.bf16.mxu0 %v3329_v2 }
0x3a29   :  { %3072 = vmatpush3.bf16.msra.mxu0 %v3321_v51 }
0x3a2a   :  { %3073 = vmatprep.subr.bf16.mxu0 %v3329_v2 }
0x3a2d   :  { %3074 = vmatpush3.bf16.msra.mxu0 %v3322_v6 }
0x3a2e   :  { %3075 = vmatprep.subr.bf16.mxu0 %v3329_v2 }
0x3a31   :  { %3076 = vmatpush3.bf16.msra.mxu0 %v3323_v4 }
0x3a32   :  { %3077 = vmatprep.subr.bf16.mxu0 %v3329_v2 }
0x3a35   :  { %3078 = vmatpush3.bf16.msra.mxu0 %v3324_v7 }
0x3a36   :  { %3079 = vmatprep.subr.bf16.mxu0 %v3329_v2 }
0x3a39   :  { %3080 = vmatpush3.bf16.msra.mxu0 %v3325_v9 }
0x3a3a   :  { %3081 = vmatprep.subr.bf16.mxu0 %v3329_v2 }
0x3a3d   :  { %3082 = vmatpush3.bf16.msra.mxu0 %v3326_v10 }
0x3af3   :  { %v2250_v11 = vpop.f32.mrb[40].mxu0 }
0x3af4   :  { %v2252_v42 = vpop.f32.mrb[41].mxu0 }
0x3af5   :  { %v2257_v12 = vadd.f32 %v3918_v38, %v2252_v42  ;;  %v2254_v43 = vpop.f32.mrb[42].mxu0 }
0x3af6   :  { %v2255_v58 = vpop.f32.mrb[43].mxu0 }
0x3af7   :  { %2258 = vmax.xlane.f32.xlu0 %v2257_v12  ;;  %v1971_v58 = vmul.f32 1.442695, %v4077_v17 }
0x3b84   :  { %v2259_v60 = vpop.xlane.xlu0 %2258 }
0x3b85   :  { %v4177_v61 = vsub.f32 %v2257_v12, %v2259_v60 }
0x3b87   :  { %vm2270_vm0 = vcmp.ge.f32.partialorder %v4177_v61, 0.0 }
0x3b88   :  { %v2271_v62 = vsel %vm2270_vm0, %v3462_v14, 128 }
0x3b89   :  { %v2273_v2 = vshra.s32 %v2271_v62, 16  ;;  %v2272_v44 = vand.u32 65535, %v2271_v62 }
0x3b8b   :  { %v2275_v63 = vcvt.s32.f32 %v2273_v2  ;;  %v2274_v13 = vcvt.s32.f32 %v2272_v44  ;;  %v3327_v2 = vld [vmem:[%s4236_s6] ss:$0 sm:$0xff] }
0x3b8d   :  { %2276 = vmin.xlane.f32.xlu1 %v2275_v63 }
0x3c1a   :  { %v2277_v1 = vpop.xlane.xlu1 %2276 }
0x3c1b   :  { %vm2278_vm3 = vcmp.eq.f32.partialorder %v2275_v63, %v2277_v1  ;;  %v2283_v38 = vcvt.f32.s32 %v2277_v1 }
0x3c1c   :  { %v2279_v15 = vsel %vm2278_vm3, %v2274_v13, inf }
0x3c1d   :  { %2280 = vmin.xlane.f32.xlu0 %v2279_v15  ;;  %v2284_v47 = vshll.u32 %v2283_v38, 16 }
0x3caa   :  { %v2281_v46 = vpop.xlane.xlu0 %2280 }
0x3cab   :  { %v2282_v25 = vcvt.f32.s32 %v2281_v46 }
0x3cad   :  { %v2285_v48 = vadd.s32 %v2284_v47, %v2282_v25 }
0x3caf   :  { %vm2286_vm4 = vcmp.eq.s32.totalorder %v3462_v14, %v2285_v48 }
0x3cb0   :  { %vm2530_vm6 = vmpackc.low %vm2286_vm4, %vm2286_vm4 }
0x3cb1   :  { %3084 = vmatmul.mubr.msk.bf16.vlgmr.msra.gmra.mrb[44].mxu0 %vm2530_vm6, %v3331_v16 }
0x3d84   :  { %v2324_v3 = vpop.f32.mrb[44].mxu0 }
0x3d85   :  { %v2325_v53 = vadd.f32 %v2324_v3, %v2250_v11  ;;  %v3085_v52 = vpop.f32.mrb[45].mxu0 }
0x3d86   :  { %v2327_v54 = vpop.f32.mrb[46].mxu0 }
0x3d87   :  { %3275 = vtanh.f32 %v2325_v53  ;;  %v3086_v55 = vpop.f32.mrb[47].mxu0  ;;  %v2532_v57 = vmul.f32 -1.442695, %v2325_v53 }
0x3d89   :  { %3277 = vpow2.f32 %v2532_v57 }
0x3d91   :  { %v3276_v56 = vpop.eup %3275 }
0x3d92   :  { %2339 = vrot.lane.b32.xlu0 %v3276_v56, %s3332_s2 }
0x3d93   :  { %v3278_v59 = vpop.eup %3277 }
0x3d94   :  { %v2333_v18 = vadd.f32 1.0, %v3278_v59 }
0x3d96   :  { %3279 = vrcp.f32 %v2333_v18 }
0x3da0   :  { %v3280_v19 = vpop.eup %3279 }
0x3da1   :  { %v2337_v16 = vmul.f32 %v3280_v19, %v4137_v34 }
0x3e04   :  { %v2340_v20 = vpop.permute.xlu0 %2339 }
0x3e05   :  { %v2342_v14 = vmul.f32 %v3280_v19, %v2340_v20 }
0x3e07   :  { %2344 = vrot.lane.b32.xlu1 %v2342_v14, %s3333_s24 }
0x3e79   :  { %v2345_v21 = vpop.permute.xlu1 %2344 }
0x3e7a   :  { %v2347_v23 = vadd.f32 %v2345_v21, %v2337_v16 }
0x3e7c   :  { %3281 = vtanh.f32 %v2347_v23 }
0x3e7d   :  { %3283 = vpow2.f32 %v1392_v27 }
0x3e7e   :  { %3285 = vpow2.f32 %v1536_v28 }
0x3e7f   :  { %3287 = vpow2.f32 %v1826_v30 }
0x3e80   :  { %3289 = vpow2.f32 %v2116_v31 }
0x3e86   :  { %v3282_v49 = vpop.eup %3281 }
0x3e87   :  { %2350 = vrot.lane.b32.xlu1 %v3282_v49, %s3332_s2  ;;  %v3284_v32 = vpop.eup %3283 }
0x3e88   :  { %v3286_v33 = vpop.eup %3285 }
0x3e89   :  { %v3288_v34 = vpop.eup %3287 }
0x3e8a   :  { %v3290_v35 = vpop.eup %3289 }
0x3ef9   :  { %v2351_v24 = vpop.permute.xlu1 %2350 }
0x3efa   :  { %v2353_v0 = vmul.f32 %v3280_v19, %v2351_v24 }
0x3efc   :  { %v2354_v26 = vpack.c.bf16 %v2353_v0, %v2353_v0 }
0x3efe   :  { %2356 = vrot.lane.b32.xlu0 %v2354_v26, %s3333_s24 }
0x3f1d   :  { %1394 = vadd.xlane.f32.xlu0 %v3284_v32 }
0x3f21   :  { %1538 = vadd.xlane.f32.xlu0 %v3286_v33 }
0x3f25   :  { %1828 = vadd.xlane.f32.xlu0 %v3288_v34 }
0x3f29   :  { %2118 = vadd.xlane.f32.xlu0 %v3290_v35 }
0x3f70   :  { %v2357_v37 = vpop.permute.xlu0 %2356 }
0x3f71   :  { %2533 = vmatmul.mubr.msk.bf16.vlgmr.msra.gmra.mrb[44].mxu1 %vm97_vm5, %v2357_v37 }
0x3faa   :  { %v1395_v39 = vpop.xlane.xlu0 %1394 }
0x3fab   :  { %3291 = vlog2.f32 %v1395_v39 }
0x3fae   :  { %v1539_v40 = vpop.xlane.xlu0 %1538 }
0x3faf   :  { %3293 = vlog2.f32 %v1539_v40 }
0x3fb2   :  { %v1829_v50 = vpop.xlane.xlu0 %1828 }
0x3fb3   :  { %3295 = vlog2.f32 %v1829_v50 }
0x3fb5   :  { %v3292_v41 = vpop.eup %3291 }
0x3fb6   :  { %v1397_v5 = vmul.f32 0.6931472, %v3292_v41  ;;  %v2119_v51 = vpop.xlane.xlu0 %2118 }
0x3fb7   :  { %3297 = vlog2.f32 %v2119_v51 }
0x3fb8   :  { %v1398_v6 = vsub.f32 %v3921_v8, %v1397_v5 }
0x3fb9   :  { %v3294_v4 = vpop.eup %3293 }
0x3fba   :  { %1399 = vst [vmem:[%s4237_s7] sm:$0xff] %v1398_v6  ;;  %v1541_v7 = vmul.f32 0.6931472, %v3294_v4 }
0x3fbc   :  { %v1542_v9 = vsub.f32 %v3960_v36, %v1541_v7  ;;  %v1681_v36 = vmul.f32 1.442695, %v3999_v29 }
0x3fbd   :  { %v3296_v10 = vpop.eup %3295 }
0x3fbe   :  { %2498 = vst [vmem:[%s4237_s7 + $0x8] sm:$0xff] %v1542_v9  ;;  %v1831_v11 = vmul.f32 0.6931472, %v3296_v10  ;;  %3299 = vpow2.f32 %v1681_v36 }
0x3fbf   :  { %3301 = vpow2.f32 %v1971_v58 }
0x3fc0   :  { %v1832_v42 = vsub.f32 %v4038_v22, %v1831_v11  ;;  %v2261_v22 = vmul.f32 1.442695, %v4177_v61 }
0x3fc1   :  { %v3298_v12 = vpop.eup %3297 }
0x3fc2   :  { %2510 = vst [vmem:[%s4237_s7 + $0x18] sm:$0xff] %v1832_v42  ;;  %v2121_v8 = vmul.f32 0.6931472, %v3298_v12  ;;  %3303 = vpow2.f32 %v2261_v22 }
0x3fc4   :  { %v2122_v43 = vsub.f32 %v4118_v45, %v2121_v8 }
0x3fc6   :  { %2522 = vst [vmem:[%s4237_s7 + $0x28] sm:$0xff] %v2122_v43 }
0x3fc8   :  { %v3300_v1 = vpop.eup %3299 }
0x3fc9   :  { %v3302_v13 = vpop.eup %3301 }
0x3fcc   :  { %v3304_v15 = vpop.eup %3303 }
0x4044   :  { %v2395_v60 = vpop.f32.mrb[44].mxu1 }
0x4045   :  { %v2396_v62 = vpop.f32.mrb[45].mxu1 }
0x4046   :  { %v2401_v63 = vadd.f32 %v3327_v2, %v2396_v62  ;;  %v2398_v45 = vpop.f32.mrb[46].mxu1 }
0x4047   :  { %v2399_v44 = vpop.f32.mrb[47].mxu1 }
0x4048   :  { %2402 = vmax.xlane.f32.xlu1 %v2401_v63 }
0x404c   :  { %1683 = vadd.xlane.f32.xlu1 %v3300_v1 }
0x4050   :  { %1973 = vadd.xlane.f32.xlu1 %v3302_v13 }
0x4054   :  { %2263 = vadd.xlane.f32.xlu1 %v3304_v15 }
0x40d5   :  { %v2403_v38 = vpop.xlane.xlu1 %2402 }
0x40d6   :  { %v2404_v46 = vsub.f32 %v2401_v63, %v2403_v38 }
0x40d8   :  { %v2405_v47 = vmul.f32 1.442695, %v2404_v46 }
0x40d9   :  { %v1684_v25 = vpop.xlane.xlu1 %1683 }
0x40da   :  { %3305 = vpow2.f32 %v2405_v47 }
0x40db   :  { %3307 = vlog2.f32 %v1684_v25 }
0x40dd   :  { %v1974_v48 = vpop.xlane.xlu1 %1973 }
0x40de   :  { %3309 = vlog2.f32 %v1974_v48 }
0x40e1   :  { %v2264_v3 = vpop.xlane.xlu1 %2263 }
0x40e2   :  { %3311 = vlog2.f32 %v2264_v3 }
0x40e4   :  { %v3306_v53 = vpop.eup %3305 }
0x40e5   :  { %v3308_v52 = vpop.eup %3307  ;;  %2407 = vadd.xlane.f32.xlu0 %v3306_v53 }
0x40e6   :  { %v1686_v54 = vmul.f32 0.6931472, %v3308_v52 }
0x40e8   :  { %v3310_v55 = vpop.eup %3309  ;;  %v1687_v56 = vsub.f32 %v3999_v29, %v1686_v54 }
0x40e9   :  { %v1976_v57 = vmul.f32 0.6931472, %v3310_v55 }
0x40ea   :  { %2504 = vst [vmem:[%s4237_s7 + $0x10] sm:$0xff] %v1687_v56 }
0x40eb   :  { %v1977_v59 = vsub.f32 %v4077_v17, %v1976_v57 }
0x40ec   :  { %v3312_v18 = vpop.eup %3311 }
0x40ed   :  { %2516 = vst [vmem:[%s4237_s7 + $0x20] sm:$0xff] %v1977_v59  ;;  %v2266_v19 = vmul.f32 0.6931472, %v3312_v18 }
0x40ef   :  { %v2267_v20 = vsub.f32 %v4177_v61, %v2266_v19 }
0x40f1   :  { %2528 = vst [vmem:[%s4237_s7 + $0x30] sm:$0xff] %v2267_v20 }
0x4172   :  { %v2408_v29 = vpop.xlane.xlu0 %2407 }
0x4173   :  { %3313 = vlog2.f32 %v2408_v29 }
0x417d   :  { %v3314_v14 = vpop.eup %3313 }
0x417e   :  { %v2410_v16 = vmul.f32 0.6931472, %v3314_v14 }
0x4180   :  { %v2411_v21 = vsub.f32 %v2404_v46, %v2410_v16 }
0x4182   :  { %2534 = vst [vmem:[%s4237_s7 + $0x38] sm:$0xff] %v2411_v21 }

</bundles_post_ra>
